<compile_context>
chip_gen: v6e
topology: v6e:2x2x1
jax: 0.10.0
libtpu: 0.0.40
codegen_flags: <defaults>
</compile_context>

<pallas_src>
import jax
import jax.numpy as jnp
import numpy as np
from jax import lax
from jax.experimental import pallas as pl
from jax.experimental.pallas import tpu as pltpu


def stride_generator(N, reverse=False):
    strides = [1, 2] * 10
    return list(reversed(strides[:N])) if reverse else strides[:N]


# ----------------------------------------------------------------------------
# Fused decoder kernel (one grid step == one batch element, all in VMEM)
# ----------------------------------------------------------------------------
def _make_decoder_kernel(C, strides, sizes):
    n_layers = len(strides)

    def kernel(*refs):
        hid_ref, enc_ref = refs[0], refs[1]
        f_refs = refs[2:2 + n_layers]            # frame-placement matrices
        w_ref = refs[2 + n_layers]               # packed conv weights ((L+1)*C, 9C)
        bgb_ref = refs[3 + n_layers]             # packed bias/gamma/beta (C, 3L)
        wrb_ref = refs[4 + n_layers]             # packed readout [W_r | b_r]
        o_ref = refs[5 + n_layers]
        f32 = jnp.float32

        def col_masks(H, W):
            ow = lax.broadcasted_iota(jnp.int32, (C, H * W), 1) % W
            return ow >= 1, ow <= W - 2

        def im2col(zp, H, W, m_l, m_r):
            # zp: (C, (W+1) + H*W + (W+1)) zero-margined flat frame.
            # Tap (kh,kw) == static lane slice shifted by (kh-1)*W + (kw-1);
            # row over/underflow lands in the zero margins, column wrap is
            # killed by the column masks.
            HW, off = H * W, W + 1
            taps = []
            for kh in range(3):
                for kw in range(3):
                    sh = (kh - 1) * W + (kw - 1)
                    t = zp[:, off + sh: off + sh + HW]
                    if kw == 0:
                        t = jnp.where(m_l, t, 0.0)
                    elif kw == 2:
                        t = jnp.where(m_r, t, 0.0)
                    taps.append(t)
            return jnp.concatenate(taps, axis=0)  # (9*C, H*W), sublane concat

        def gn_lrelu(a, l):
            # GroupNorm(2 groups): contiguous channel halves -> static slices.
            gam = bgb_ref[:, 3 * l + 1: 3 * l + 2]
            bet = bgb_ref[:, 3 * l + 2: 3 * l + 3]
            Cg = a.shape[0] // 2
            halves = []
            for g in range(2):
                h = a[g * Cg:(g + 1) * Cg, :]
                mu = jnp.mean(h, keepdims=True)
                var = jnp.mean((h - mu) * (h - mu), keepdims=True)
                halves.append((h - mu) * lax.rsqrt(var + 1e-5))
            y = jnp.concatenate(halves, axis=0) * gam + bet
            return jnp.maximum(y, 0.2 * y)        # LeakyReLU(0.2)

        mask_cache = {}
        x = hid_ref[0]                            # (C, H0*W0)
        for l in range(n_layers):
            H, W = sizes[l]
            if (H, W) not in mask_cache:
                mask_cache[(H, W)] = col_masks(H, W)
            m_l, m_r = mask_cache[(H, W)]
            # Place layer input into its zero-margined output frame.  For the
            # stride-2 (ConvTranspose) layers this 0/1 matmul also performs the
            # zero-dilation; for stride-1 layers it is a plain pad placement.
            zp = jnp.dot(x, f_refs[l][...], preferred_element_type=f32)
            acc = jnp.dot(w_ref[C * l: C * (l + 1), :],
                          im2col(zp, H, W, m_l, m_r),
                          preferred_element_type=f32)
            if l == n_layers - 1:
                # cat([hid, enc1], dim=1) folded in as a split contraction.
                ezp = jnp.dot(enc_ref[0], f_refs[l][...],
                              preferred_element_type=f32)
                acc = acc + jnp.dot(w_ref[C * (l + 1): C * (l + 2), :],
                                    im2col(ezp, H, W, m_l, m_r),
                                    preferred_element_type=f32)
            x = gn_lrelu(acc + bgb_ref[:, 3 * l: 3 * l + 1], l)

        # fused 1x1 readout conv: (C_fin, C) @ (C, HW) + bias
        out = jnp.dot(wrb_ref[:, :C], x, preferred_element_type=f32) \
            + wrb_ref[:, C:C + 1]
        o_ref[...] = out[None].astype(o_ref.dtype)

    return kernel


# ----------------------------------------------------------------------------
# Host-side packing (layout-only glue, no compute)
# ----------------------------------------------------------------------------
def _pack_conv_weight(w):
    # (C_out, C_in, 3, 3) -> (C_out, 9*C_in), flattened as (kh, kw, ci)
    Co, Ci, K, _ = w.shape
    return jnp.transpose(w, (0, 2, 3, 1)).reshape(Co, K * K * Ci)


def _frame_matrix(Hi, Wi, Ho, Wo, stride):
    # Exact 0/1 matrix placing input pixel (r, c) at flat frame position
    #   (Wo+1) + (stride*r)*Wo + (stride*c)
    # inside a zero-margined frame of length (Wo+1) + Ho*Wo + (Wo+1).
    idx = np.arange(Hi * Wi)
    r, c = idx // Wi, idx % Wi
    dest = (Wo + 1) + (stride * r) * Wo + stride * c
    F = np.zeros((Hi * Wi, Ho * Wo + 2 * (Wo + 1)), np.float32)
    F[idx, dest] = 1.0
    return jnp.asarray(F)


def decoder_forward(hid, enc1, params, N_S):
    strides = stride_generator(N_S, reverse=True)
    assert strides[-1] == 1                      # always true for this generator
    n_layers = len(strides)
    N, C, H0, W0 = hid.shape
    C_fin = params["w_r"].shape[0]

    sizes, H, W = [], H0, W0
    for s in strides:
        H, W = H * s, W * s
        sizes.append((H, W))
    H_last, W_last = sizes[-1]
    HW_last = H_last * W_last

    # --- pack parameters into single DMA-able blocks ---
    w_blocks = []
    for i, s in enumerate(strides):
        w = params["dec"][i]["weight"]
        # ConvTranspose2d == conv over the zero-dilated input with the
        # spatially flipped, IO-swapped kernel.
        w_eq = jnp.transpose(w[:, :, ::-1, ::-1], (1, 0, 2, 3)) if s == 2 else w
        if i < n_layers - 1:
            w_blocks.append(_pack_conv_weight(w_eq))
        else:                                    # split cat([hid, enc1]) contraction
            w_blocks.append(_pack_conv_weight(w_eq[:, :C]))
            w_blocks.append(_pack_conv_weight(w_eq[:, C:]))
    w_pack = jnp.concatenate(w_blocks, axis=0)                      # ((L+1)*C, 9C)

    bgb_cols = []
    for i in range(n_layers):
        p = params["dec"][i]
        bgb_cols += [p["bias"], p["gamma"], p["beta"]]
    bgb = jnp.stack(bgb_cols, axis=1)                               # (C, 3L)

    wrb = jnp.concatenate([params["w_r"], params["b_r"][:, None]], axis=1)

    # --- constant frame-placement (dilation / pad) matrices ---
    f_mats, Hi, Wi = [], H0, W0
    for i, s in enumerate(strides):
        Ho, Wo = sizes[i]
        f_mats.append(_frame_matrix(Hi, Wi, Ho, Wo, s))
        Hi, Wi = Ho, Wo

    hid_flat = hid.reshape(N, C, H0 * W0)
    enc_flat = enc1.reshape(N, C, HW_last)

    kernel = _make_decoder_kernel(C, strides, sizes)

    def _const2d(arr):
        return pl.BlockSpec(arr.shape, lambda n: (0, 0))

    in_specs = [
        pl.BlockSpec((1, C, H0 * W0), lambda n: (n, 0, 0)),
        pl.BlockSpec((1, C, HW_last), lambda n: (n, 0, 0)),
        *[_const2d(f) for f in f_mats],
        _const2d(w_pack),
        _const2d(bgb),
        _const2d(wrb),
    ]

    out = pl.pallas_call(
        kernel,
        out_shape=jax.ShapeDtypeStruct((N, C_fin, HW_last), jnp.float32),
        grid_spec=pltpu.PrefetchScalarGridSpec(
            num_scalar_prefetch=0,
            grid=(N,),
            in_specs=in_specs,
            out_specs=pl.BlockSpec((1, C_fin, HW_last), lambda n: (n, 0, 0)),
        ),
        compiler_params=pltpu.CompilerParams(
            dimension_semantics=("parallel",)),
    )(hid_flat, enc_flat, *f_mats, w_pack, bgb, wrb)
    return out.reshape(N, C_fin, H_last, W_last)


# ----------------------------------------------------------------------------
# Deterministic parameter init (shapes follow the PyTorch module __init__)
# ----------------------------------------------------------------------------
def init_params(key, C_hid, C_out_final, N_S):
    strides = stride_generator(N_S, reverse=True)
    n_layers = len(strides)
    ks = jax.random.split(key, 4 * n_layers + 2)
    dec = []
    for i, s in enumerate(strides):
        C_in = C_hid if i < n_layers - 1 else 2 * C_hid
        kw_, kb_, kg_, kbe_ = ks[4 * i: 4 * i + 4]
        if s == 2:   # ConvTranspose2d weight layout (C_in, C_out, kH, kW)
            w = 0.2 * jax.random.normal(kw_, (C_in, C_hid, 3, 3), jnp.float32)
        else:        # Conv2d weight layout (C_out, C_in, kH, kW)
            w = 0.2 * jax.random.normal(kw_, (C_hid, C_in, 3, 3), jnp.float32)
        dec.append({
            "weight": w,
            "bias": 0.1 * jax.random.normal(kb_, (C_hid,), jnp.float32),
            "gamma": 1.0 + 0.1 * jax.random.normal(kg_, (C_hid,), jnp.float32),
            "beta": 0.1 * jax.random.normal(kbe_, (C_hid,), jnp.float32),
        })
    w_r = 0.2 * jax.random.normal(ks[-2], (C_out_final, C_hid), jnp.float32)
    b_r = 0.1 * jax.random.normal(ks[-1], (C_out_final,), jnp.float32)
    return {"dec": dec, "w_r": w_r, "b_r": b_r}


# ----------------------------------------------------------------------------
# Pure-JAX reference (mirrors PyTorch semantics) for validation
# ----------------------------------------------------------------------------
def reference_decoder(hid, enc1, params, N_S):
    def gn_act(z, gamma, beta):
        N, C, H, W = z.shape
        zg = z.reshape(N, 2, C // 2, H, W)
        mu = zg.mean(axis=(2, 3, 4), keepdims=True)
        var = ((zg - mu) ** 2).mean(axis=(2, 3, 4), keepdims=True)
        zg = (zg - mu) * lax.rsqrt(var + 1e-5)
        z = zg.reshape(N, C, H, W) * gamma[None, :, None, None] \
            + beta[None, :, None, None]
        return jnp.where(z >= 0, z, 0.2 * z)

    def basic(x, p, stride):
        if stride == 2:   # ConvTranspose2d(3, 2, pad=1, output_padding=1)
            w = jnp.transpose(p["weight"][:, :, ::-1, ::-1], (1, 0, 2, 3))
            z = lax.conv_general_dilated(
                x, w, (1, 1), [(1, 2), (1, 2)], lhs_dilation=(2, 2),
                dimension_numbers=("NCHW", "OIHW", "NCHW"))
        else:             # Conv2d(3, 1, pad=1)
            z = lax.conv_general_dilated(
                x, p["weight"], (1, 1), [(1, 1), (1, 1)],
                dimension_numbers=("NCHW", "OIHW", "NCHW"))
        z = z + p["bias"][None, :, None, None]
        return gn_act(z, p["gamma"], p["beta"])

    strides = stride_generator(N_S, reverse=True)
    x = hid
    for i in range(len(strides) - 1):
        x = basic(x, params["dec"][i], strides[i])
    x = basic(jnp.concatenate([x, enc1], axis=1), params["dec"][-1], strides[-1])
    return jnp.einsum("nchw,oc->nohw", x, params["w_r"]) \
        + params["b_r"][None, :, None, None]


if __name__ == "__main__":
    N, C_hid, C_out, N_S = 2, 32, 4, 4
    H0 = W0 = 4
    up = 1
    for s in stride_generator(N_S, reverse=True):
        up *= s                                   # total upsampling (= 4 for N_S=4)

    key = jax.random.PRNGKey(0)
    kh_, ke_, kp_ = jax.random.split(key, 3)
    hid = jax.random.normal(kh_, (N, C_hid, H0, W0), jnp.float32)
    enc1 = jax.random.normal(ke_, (N, C_hid, H0 * up, W0 * up), jnp.float32)
    params = init_params(kp_, C_hid, C_out, N_S)

    fwd = jax.jit(lambda h, e: decoder_forward(h, e, params, N_S))
    out = jax.block_until_ready(fwd(hid, enc1))

    ref = reference_decoder(hid, enc1, params, N_S)
    assert out.shape == ref.shape == (N, C_out, H0 * up, W0 * up)
    # Loose tolerance accounts for MXU matmul precision; semantic bugs are O(1).
    if not bool(jnp.allclose(out, ref, rtol=2e-2, atol=2e-2)):
        raise AssertionError(
            f"mismatch, max abs err {float(jnp.max(jnp.abs(out - ref)))}")
    print("KERNEL_OK")
</pallas_src>

<mosaic_0001>
module attributes {stable_mosaic.version = 11 : i64} {
  func.func @kernel(%arg0: i32, %arg1: memref<1x32x16xf32, #tpu.memory_space<vmem>>, %arg2: memref<1x32x256xf32, #tpu.memory_space<vmem>>, %arg3: memref<16x82xf32, #tpu.memory_space<vmem>>, %arg4: memref<64x82xf32, #tpu.memory_space<vmem>>, %arg5: memref<64x290xf32, #tpu.memory_space<vmem>>, %arg6: memref<256x290xf32, #tpu.memory_space<vmem>>, %arg7: memref<160x288xf32, #tpu.memory_space<vmem>>, %arg8: memref<32x12xf32, #tpu.memory_space<vmem>>, %arg9: memref<4x33xf32, #tpu.memory_space<vmem>>, %arg10: memref<1x4x256xf32, #tpu.memory_space<vmem>>) attributes {dimension_semantics = [#tpu.dimension_semantics<parallel>], iteration_bounds = array<i64: 2>, scalar_prefetch = 0 : i64, scratch_operands = 0 : i64, tpu.core_type = #tpu.core_type<tc>, window_params = [{transform_indices = @transform_0, window_bounds = array<i64: 1, 32, 16>}, {transform_indices = @transform_1, window_bounds = array<i64: 1, 32, 256>}, {pipeline_mode = #tpu.pipeline_mode<synchronous>, transform_indices = @transform_2, window_bounds = array<i64: 16, 82>}, {pipeline_mode = #tpu.pipeline_mode<synchronous>, transform_indices = @transform_3, window_bounds = array<i64: 64, 82>}, {pipeline_mode = #tpu.pipeline_mode<synchronous>, transform_indices = @transform_4, window_bounds = array<i64: 64, 290>}, {pipeline_mode = #tpu.pipeline_mode<synchronous>, transform_indices = @transform_5, window_bounds = array<i64: 256, 290>}, {pipeline_mode = #tpu.pipeline_mode<synchronous>, transform_indices = @transform_6, window_bounds = array<i64: 160, 288>}, {pipeline_mode = #tpu.pipeline_mode<synchronous>, transform_indices = @transform_7, window_bounds = array<i64: 32, 12>}, {pipeline_mode = #tpu.pipeline_mode<synchronous>, transform_indices = @transform_8, window_bounds = array<i64: 4, 33>}, {transform_indices = @transform_9, window_bounds = array<i64: 1, 4, 256>}]} {
    %c0 = arith.constant 0 : index
    %c0_0 = arith.constant 0 : index
    %c0_1 = arith.constant 0 : index
    %0 = vector.load %arg1[%c0, %c0_0, %c0_1] : memref<1x32x16xf32, #tpu.memory_space<vmem>>, vector<1x32x16xf32>
    %1 = vector.shape_cast %0 : vector<1x32x16xf32> to vector<32x16xf32>
    %2 = tpu.iota {dimensions = array<i32: 1>} : vector<32x64xi32>
    %c8_i32 = arith.constant 8 : i32
    %c0_i32 = arith.constant 0 : i32
    %3 = arith.cmpi eq, %c8_i32, %c0_i32 : i32
    %c1_i32 = arith.constant 1 : i32
    %4 = arith.select %3, %c1_i32, %c8_i32 : i32
    %5 = vector.broadcast %4 : i32 to vector<32x64xi32>
    %6 = arith.remsi %2, %5 : vector<32x64xi32>
    %c0_i32_2 = arith.constant 0 : i32
    %7 = vector.broadcast %c0_i32_2 : i32 to vector<32x64xi32>
    %8 = arith.cmpi ne, %6, %7 : vector<32x64xi32>
    %c0_i32_3 = arith.constant 0 : i32
    %9 = vector.broadcast %c0_i32_3 : i32 to vector<32x64xi32>
    %10 = arith.cmpi slt, %6, %9 : vector<32x64xi32>
    %c0_i32_4 = arith.constant 0 : i32
    %11 = arith.cmpi slt, %4, %c0_i32_4 : i32
    %12 = vector.broadcast %11 : i1 to vector<32x64xi1>
    %13 = vector.broadcast %12 : vector<32x64xi1> to vector<32x64xi1>
    %14 = arith.xori %10, %13 : vector<32x64xi1>
    %15 = arith.andi %14, %8 : vector<32x64xi1>
    %16 = vector.broadcast %4 : i32 to vector<32x64xi32>
    %17 = arith.addi %6, %16 : vector<32x64xi32>
    %18 = arith.select %15, %17, %6 : vector<32x64xi1>, vector<32x64xi32>
    %c1_i32_5 = arith.constant 1 : i32
    %19 = vector.broadcast %c1_i32_5 : i32 to vector<32x64xi32>
    %20 = arith.cmpi sge, %18, %19 : vector<32x64xi32>
    %c6_i32 = arith.constant 6 : i32
    %21 = vector.broadcast %c6_i32 : i32 to vector<32x64xi32>
    %22 = arith.cmpi sle, %18, %21 : vector<32x64xi32>
    %c0_6 = arith.constant 0 : index
    %c0_7 = arith.constant 0 : index
    %23 = vector.load %arg3[%c0_6, %c0_7] : memref<16x82xf32, #tpu.memory_space<vmem>>, vector<16x82xf32>
    %cst = arith.constant dense<0.000000e+00> : vector<32x82xf32>
    %24 = tpu.matmul %1, %23, %cst {dimension_numbers = #tpu.dot_dimension_numbers<[1], [0], [0], [1], [0, 0, 1, 1], [], []>} : vector<32x16xf32>, vector<16x82xf32>, vector<32x82xf32> -> vector<32x82xf32>
    %c0_8 = arith.constant 0 : index
    %c0_9 = arith.constant 0 : index
    %25 = vector.load %arg7[%c0_8, %c0_9] : memref<160x288xf32, #tpu.memory_space<vmem>>, vector<32x288xf32>
    %26 = vector.extract_strided_slice %24 {offsets = [0, 0], sizes = [32, 64], strides = [1, 1]} : vector<32x82xf32> to vector<32x64xf32>
    %cst_10 = arith.constant 0.000000e+00 : f32
    %27 = vector.broadcast %cst_10 : f32 to vector<32x64xf32>
    %28 = arith.select %20, %26, %27 : vector<32x64xi1>, vector<32x64xf32>
    %29 = vector.extract_strided_slice %24 {offsets = [0, 1], sizes = [32, 64], strides = [1, 1]} : vector<32x82xf32> to vector<32x64xf32>
    %30 = vector.extract_strided_slice %24 {offsets = [0, 2], sizes = [32, 64], strides = [1, 1]} : vector<32x82xf32> to vector<32x64xf32>
    %cst_11 = arith.constant 0.000000e+00 : f32
    %31 = vector.broadcast %cst_11 : f32 to vector<32x64xf32>
    %32 = arith.select %22, %30, %31 : vector<32x64xi1>, vector<32x64xf32>
    %33 = vector.extract_strided_slice %24 {offsets = [0, 8], sizes = [32, 64], strides = [1, 1]} : vector<32x82xf32> to vector<32x64xf32>
    %cst_12 = arith.constant 0.000000e+00 : f32
    %34 = vector.broadcast %cst_12 : f32 to vector<32x64xf32>
    %35 = arith.select %20, %33, %34 : vector<32x64xi1>, vector<32x64xf32>
    %36 = vector.extract_strided_slice %24 {offsets = [0, 9], sizes = [32, 64], strides = [1, 1]} : vector<32x82xf32> to vector<32x64xf32>
    %37 = vector.extract_strided_slice %24 {offsets = [0, 10], sizes = [32, 64], strides = [1, 1]} : vector<32x82xf32> to vector<32x64xf32>
    %cst_13 = arith.constant 0.000000e+00 : f32
    %38 = vector.broadcast %cst_13 : f32 to vector<32x64xf32>
    %39 = arith.select %22, %37, %38 : vector<32x64xi1>, vector<32x64xf32>
    %40 = vector.extract_strided_slice %24 {offsets = [0, 16], sizes = [32, 64], strides = [1, 1]} : vector<32x82xf32> to vector<32x64xf32>
    %cst_14 = arith.constant 0.000000e+00 : f32
    %41 = vector.broadcast %cst_14 : f32 to vector<32x64xf32>
    %42 = arith.select %20, %40, %41 : vector<32x64xi1>, vector<32x64xf32>
    %43 = vector.extract_strided_slice %24 {offsets = [0, 17], sizes = [32, 64], strides = [1, 1]} : vector<32x82xf32> to vector<32x64xf32>
    %44 = vector.extract_strided_slice %24 {offsets = [0, 18], sizes = [32, 64], strides = [1, 1]} : vector<32x82xf32> to vector<32x64xf32>
    %cst_15 = arith.constant 0.000000e+00 : f32
    %45 = vector.broadcast %cst_15 : f32 to vector<32x64xf32>
    %46 = arith.select %22, %44, %45 : vector<32x64xi1>, vector<32x64xf32>
    %47 = tpu.concatenate %28, %29, %32, %35, %36, %39, %42, %43, %46 in 0 : vector<32x64xf32>, vector<32x64xf32>, vector<32x64xf32>, vector<32x64xf32>, vector<32x64xf32>, vector<32x64xf32>, vector<32x64xf32>, vector<32x64xf32>, vector<32x64xf32> -> vector<288x64xf32>
    %cst_16 = arith.constant dense<0.000000e+00> : vector<32x64xf32>
    %48 = tpu.matmul %25, %47, %cst_16 {dimension_numbers = #tpu.dot_dimension_numbers<[1], [0], [0], [1], [0, 0, 1, 1], [], []>} : vector<32x288xf32>, vector<288x64xf32>, vector<32x64xf32> -> vector<32x64xf32>
    %c0_17 = arith.constant 0 : index
    %c0_18 = arith.constant 0 : index
    %49 = vector.load %arg8[%c0_17, %c0_18] : memref<32x12xf32, #tpu.memory_space<vmem>>, vector<32x1xf32>
    %50 = vector.broadcast %49 : vector<32x1xf32> to vector<32x64xf32>
    %51 = arith.addf %48, %50 : vector<32x64xf32>
    %c0_19 = arith.constant 0 : index
    %c1 = arith.constant 1 : index
    %52 = vector.load %arg8[%c0_19, %c1] : memref<32x12xf32, #tpu.memory_space<vmem>>, vector<32x1xf32>
    %c0_20 = arith.constant 0 : index
    %c2 = arith.constant 2 : index
    %53 = vector.load %arg8[%c0_20, %c2] : memref<32x12xf32, #tpu.memory_space<vmem>>, vector<32x1xf32>
    %54 = vector.extract_strided_slice %51 {offsets = [0, 0], sizes = [16, 64], strides = [1, 1]} : vector<32x64xf32> to vector<16x64xf32>
    %55 = vector.shape_cast %54 : vector<16x64xf32> to vector<1x16x64xf32>
    %cst_21 = arith.constant dense<0.000000e+00> : vector<1xf32>
    %56 = vector.multi_reduction <add>, %55, %cst_21 [1, 2] : vector<1x16x64xf32> to vector<1xf32>
    %57 = vector.shape_cast %56 : vector<1xf32> to vector<1x1x1xf32>
    %58 = vector.extract %57[0, 0, 0] : f32 from vector<1x1x1xf32>
    %59 = vector.broadcast %58 : f32 to vector<1x1xf32>
    %cst_22 = arith.constant 1.024000e+03 : f32
    %60 = vector.broadcast %cst_22 : f32 to vector<1x1xf32>
    %61 = arith.divf %59, %60 : vector<1x1xf32>
    %62 = vector.broadcast %61 : vector<1x1xf32> to vector<16x64xf32>
    %63 = arith.subf %54, %62 : vector<16x64xf32>
    %64 = vector.broadcast %61 : vector<1x1xf32> to vector<16x64xf32>
    %65 = arith.subf %54, %64 : vector<16x64xf32>
    %66 = arith.mulf %63, %65 : vector<16x64xf32>
    %67 = vector.shape_cast %66 : vector<16x64xf32> to vector<1x16x64xf32>
    %cst_23 = arith.constant dense<0.000000e+00> : vector<1xf32>
    %68 = vector.multi_reduction <add>, %67, %cst_23 [1, 2] : vector<1x16x64xf32> to vector<1xf32>
    %69 = vector.shape_cast %68 : vector<1xf32> to vector<1x1x1xf32>
    %70 = vector.extract %69[0, 0, 0] : f32 from vector<1x1x1xf32>
    %71 = vector.broadcast %70 : f32 to vector<1x1xf32>
    %cst_24 = arith.constant 1.024000e+03 : f32
    %72 = vector.broadcast %cst_24 : f32 to vector<1x1xf32>
    %73 = arith.divf %71, %72 : vector<1x1xf32>
    %74 = vector.broadcast %61 : vector<1x1xf32> to vector<16x64xf32>
    %75 = arith.subf %54, %74 : vector<16x64xf32>
    %cst_25 = arith.constant 9.99999974E-6 : f32
    %76 = vector.broadcast %cst_25 : f32 to vector<1x1xf32>
    %77 = arith.addf %73, %76 : vector<1x1xf32>
    %78 = math.rsqrt %77 : vector<1x1xf32>
    %79 = vector.broadcast %78 : vector<1x1xf32> to vector<16x64xf32>
    %80 = arith.mulf %75, %79 : vector<16x64xf32>
    %81 = vector.extract_strided_slice %51 {offsets = [16, 0], sizes = [16, 64], strides = [1, 1]} : vector<32x64xf32> to vector<16x64xf32>
    %82 = vector.shape_cast %81 : vector<16x64xf32> to vector<1x16x64xf32>
    %cst_26 = arith.constant dense<0.000000e+00> : vector<1xf32>
    %83 = vector.multi_reduction <add>, %82, %cst_26 [1, 2] : vector<1x16x64xf32> to vector<1xf32>
    %84 = vector.shape_cast %83 : vector<1xf32> to vector<1x1x1xf32>
    %85 = vector.extract %84[0, 0, 0] : f32 from vector<1x1x1xf32>
    %86 = vector.broadcast %85 : f32 to vector<1x1xf32>
    %cst_27 = arith.constant 1.024000e+03 : f32
    %87 = vector.broadcast %cst_27 : f32 to vector<1x1xf32>
    %88 = arith.divf %86, %87 : vector<1x1xf32>
    %89 = vector.broadcast %88 : vector<1x1xf32> to vector<16x64xf32>
    %90 = arith.subf %81, %89 : vector<16x64xf32>
    %91 = vector.broadcast %88 : vector<1x1xf32> to vector<16x64xf32>
    %92 = arith.subf %81, %91 : vector<16x64xf32>
    %93 = arith.mulf %90, %92 : vector<16x64xf32>
    %94 = vector.shape_cast %93 : vector<16x64xf32> to vector<1x16x64xf32>
    %cst_28 = arith.constant dense<0.000000e+00> : vector<1xf32>
    %95 = vector.multi_reduction <add>, %94, %cst_28 [1, 2] : vector<1x16x64xf32> to vector<1xf32>
    %96 = vector.shape_cast %95 : vector<1xf32> to vector<1x1x1xf32>
    %97 = vector.extract %96[0, 0, 0] : f32 from vector<1x1x1xf32>
    %98 = vector.broadcast %97 : f32 to vector<1x1xf32>
    %cst_29 = arith.constant 1.024000e+03 : f32
    %99 = vector.broadcast %cst_29 : f32 to vector<1x1xf32>
    %100 = arith.divf %98, %99 : vector<1x1xf32>
    %101 = vector.broadcast %88 : vector<1x1xf32> to vector<16x64xf32>
    %102 = arith.subf %81, %101 : vector<16x64xf32>
    %cst_30 = arith.constant 9.99999974E-6 : f32
    %103 = vector.broadcast %cst_30 : f32 to vector<1x1xf32>
    %104 = arith.addf %100, %103 : vector<1x1xf32>
    %105 = math.rsqrt %104 : vector<1x1xf32>
    %106 = vector.broadcast %105 : vector<1x1xf32> to vector<16x64xf32>
    %107 = arith.mulf %102, %106 : vector<16x64xf32>
    %108 = tpu.concatenate %80, %107 in 0 : vector<16x64xf32>, vector<16x64xf32> -> vector<32x64xf32>
    %109 = vector.broadcast %52 : vector<32x1xf32> to vector<32x64xf32>
    %110 = arith.mulf %108, %109 : vector<32x64xf32>
    %111 = vector.broadcast %53 : vector<32x1xf32> to vector<32x64xf32>
    %112 = arith.addf %110, %111 : vector<32x64xf32>
    %cst_31 = arith.constant 2.000000e-01 : f32
    %113 = vector.broadcast %cst_31 : f32 to vector<32x64xf32>
    %114 = arith.mulf %113, %112 : vector<32x64xf32>
    %115 = arith.maximumf %112, %114 : vector<32x64xf32>
    %c0_32 = arith.constant 0 : index
    %c0_33 = arith.constant 0 : index
    %116 = vector.load %arg4[%c0_32, %c0_33] : memref<64x82xf32, #tpu.memory_space<vmem>>, vector<64x82xf32>
    %cst_34 = arith.constant dense<0.000000e+00> : vector<32x82xf32>
    %117 = tpu.matmul %115, %116, %cst_34 {dimension_numbers = #tpu.dot_dimension_numbers<[1], [0], [0], [1], [0, 0, 1, 1], [], []>} : vector<32x64xf32>, vector<64x82xf32>, vector<32x82xf32> -> vector<32x82xf32>
    %c32 = arith.constant 32 : index
    %c0_35 = arith.constant 0 : index
    %118 = vector.load %arg7[%c32, %c0_35] : memref<160x288xf32, #tpu.memory_space<vmem>>, vector<32x288xf32>
    %119 = vector.extract_strided_slice %117 {offsets = [0, 0], sizes = [32, 64], strides = [1, 1]} : vector<32x82xf32> to vector<32x64xf32>
    %cst_36 = arith.constant 0.000000e+00 : f32
    %120 = vector.broadcast %cst_36 : f32 to vector<32x64xf32>
    %121 = arith.select %20, %119, %120 : vector<32x64xi1>, vector<32x64xf32>
    %122 = vector.extract_strided_slice %117 {offsets = [0, 1], sizes = [32, 64], strides = [1, 1]} : vector<32x82xf32> to vector<32x64xf32>
    %123 = vector.extract_strided_slice %117 {offsets = [0, 2], sizes = [32, 64], strides = [1, 1]} : vector<32x82xf32> to vector<32x64xf32>
    %cst_37 = arith.constant 0.000000e+00 : f32
    %124 = vector.broadcast %cst_37 : f32 to vector<32x64xf32>
    %125 = arith.select %22, %123, %124 : vector<32x64xi1>, vector<32x64xf32>
    %126 = vector.extract_strided_slice %117 {offsets = [0, 8], sizes = [32, 64], strides = [1, 1]} : vector<32x82xf32> to vector<32x64xf32>
    %cst_38 = arith.constant 0.000000e+00 : f32
    %127 = vector.broadcast %cst_38 : f32 to vector<32x64xf32>
    %128 = arith.select %20, %126, %127 : vector<32x64xi1>, vector<32x64xf32>
    %129 = vector.extract_strided_slice %117 {offsets = [0, 9], sizes = [32, 64], strides = [1, 1]} : vector<32x82xf32> to vector<32x64xf32>
    %130 = vector.extract_strided_slice %117 {offsets = [0, 10], sizes = [32, 64], strides = [1, 1]} : vector<32x82xf32> to vector<32x64xf32>
    %cst_39 = arith.constant 0.000000e+00 : f32
    %131 = vector.broadcast %cst_39 : f32 to vector<32x64xf32>
    %132 = arith.select %22, %130, %131 : vector<32x64xi1>, vector<32x64xf32>
    %133 = vector.extract_strided_slice %117 {offsets = [0, 16], sizes = [32, 64], strides = [1, 1]} : vector<32x82xf32> to vector<32x64xf32>
    %cst_40 = arith.constant 0.000000e+00 : f32
    %134 = vector.broadcast %cst_40 : f32 to vector<32x64xf32>
    %135 = arith.select %20, %133, %134 : vector<32x64xi1>, vector<32x64xf32>
    %136 = vector.extract_strided_slice %117 {offsets = [0, 17], sizes = [32, 64], strides = [1, 1]} : vector<32x82xf32> to vector<32x64xf32>
    %137 = vector.extract_strided_slice %117 {offsets = [0, 18], sizes = [32, 64], strides = [1, 1]} : vector<32x82xf32> to vector<32x64xf32>
    %cst_41 = arith.constant 0.000000e+00 : f32
    %138 = vector.broadcast %cst_41 : f32 to vector<32x64xf32>
    %139 = arith.select %22, %137, %138 : vector<32x64xi1>, vector<32x64xf32>
    %140 = tpu.concatenate %121, %122, %125, %128, %129, %132, %135, %136, %139 in 0 : vector<32x64xf32>, vector<32x64xf32>, vector<32x64xf32>, vector<32x64xf32>, vector<32x64xf32>, vector<32x64xf32>, vector<32x64xf32>, vector<32x64xf32>, vector<32x64xf32> -> vector<288x64xf32>
    %cst_42 = arith.constant dense<0.000000e+00> : vector<32x64xf32>
    %141 = tpu.matmul %118, %140, %cst_42 {dimension_numbers = #tpu.dot_dimension_numbers<[1], [0], [0], [1], [0, 0, 1, 1], [], []>} : vector<32x288xf32>, vector<288x64xf32>, vector<32x64xf32> -> vector<32x64xf32>
    %c0_43 = arith.constant 0 : index
    %c3 = arith.constant 3 : index
    %142 = vector.load %arg8[%c0_43, %c3] : memref<32x12xf32, #tpu.memory_space<vmem>>, vector<32x1xf32>
    %143 = vector.broadcast %142 : vector<32x1xf32> to vector<32x64xf32>
    %144 = arith.addf %141, %143 : vector<32x64xf32>
    %c0_44 = arith.constant 0 : index
    %c4 = arith.constant 4 : index
    %145 = vector.load %arg8[%c0_44, %c4] : memref<32x12xf32, #tpu.memory_space<vmem>>, vector<32x1xf32>
    %c0_45 = arith.constant 0 : index
    %c5 = arith.constant 5 : index
    %146 = vector.load %arg8[%c0_45, %c5] : memref<32x12xf32, #tpu.memory_space<vmem>>, vector<32x1xf32>
    %147 = vector.extract_strided_slice %144 {offsets = [0, 0], sizes = [16, 64], strides = [1, 1]} : vector<32x64xf32> to vector<16x64xf32>
    %148 = vector.shape_cast %147 : vector<16x64xf32> to vector<1x16x64xf32>
    %cst_46 = arith.constant dense<0.000000e+00> : vector<1xf32>
    %149 = vector.multi_reduction <add>, %148, %cst_46 [1, 2] : vector<1x16x64xf32> to vector<1xf32>
    %150 = vector.shape_cast %149 : vector<1xf32> to vector<1x1x1xf32>
    %151 = vector.extract %150[0, 0, 0] : f32 from vector<1x1x1xf32>
    %152 = vector.broadcast %151 : f32 to vector<1x1xf32>
    %cst_47 = arith.constant 1.024000e+03 : f32
    %153 = vector.broadcast %cst_47 : f32 to vector<1x1xf32>
    %154 = arith.divf %152, %153 : vector<1x1xf32>
    %155 = vector.broadcast %154 : vector<1x1xf32> to vector<16x64xf32>
    %156 = arith.subf %147, %155 : vector<16x64xf32>
    %157 = vector.broadcast %154 : vector<1x1xf32> to vector<16x64xf32>
    %158 = arith.subf %147, %157 : vector<16x64xf32>
    %159 = arith.mulf %156, %158 : vector<16x64xf32>
    %160 = vector.shape_cast %159 : vector<16x64xf32> to vector<1x16x64xf32>
    %cst_48 = arith.constant dense<0.000000e+00> : vector<1xf32>
    %161 = vector.multi_reduction <add>, %160, %cst_48 [1, 2] : vector<1x16x64xf32> to vector<1xf32>
    %162 = vector.shape_cast %161 : vector<1xf32> to vector<1x1x1xf32>
    %163 = vector.extract %162[0, 0, 0] : f32 from vector<1x1x1xf32>
    %164 = vector.broadcast %163 : f32 to vector<1x1xf32>
    %cst_49 = arith.constant 1.024000e+03 : f32
    %165 = vector.broadcast %cst_49 : f32 to vector<1x1xf32>
    %166 = arith.divf %164, %165 : vector<1x1xf32>
    %167 = vector.broadcast %154 : vector<1x1xf32> to vector<16x64xf32>
    %168 = arith.subf %147, %167 : vector<16x64xf32>
    %cst_50 = arith.constant 9.99999974E-6 : f32
    %169 = vector.broadcast %cst_50 : f32 to vector<1x1xf32>
    %170 = arith.addf %166, %169 : vector<1x1xf32>
    %171 = math.rsqrt %170 : vector<1x1xf32>
    %172 = vector.broadcast %171 : vector<1x1xf32> to vector<16x64xf32>
    %173 = arith.mulf %168, %172 : vector<16x64xf32>
    %174 = vector.extract_strided_slice %144 {offsets = [16, 0], sizes = [16, 64], strides = [1, 1]} : vector<32x64xf32> to vector<16x64xf32>
    %175 = vector.shape_cast %174 : vector<16x64xf32> to vector<1x16x64xf32>
    %cst_51 = arith.constant dense<0.000000e+00> : vector<1xf32>
    %176 = vector.multi_reduction <add>, %175, %cst_51 [1, 2] : vector<1x16x64xf32> to vector<1xf32>
    %177 = vector.shape_cast %176 : vector<1xf32> to vector<1x1x1xf32>
    %178 = vector.extract %177[0, 0, 0] : f32 from vector<1x1x1xf32>
    %179 = vector.broadcast %178 : f32 to vector<1x1xf32>
    %cst_52 = arith.constant 1.024000e+03 : f32
    %180 = vector.broadcast %cst_52 : f32 to vector<1x1xf32>
    %181 = arith.divf %179, %180 : vector<1x1xf32>
    %182 = vector.broadcast %181 : vector<1x1xf32> to vector<16x64xf32>
    %183 = arith.subf %174, %182 : vector<16x64xf32>
    %184 = vector.broadcast %181 : vector<1x1xf32> to vector<16x64xf32>
    %185 = arith.subf %174, %184 : vector<16x64xf32>
    %186 = arith.mulf %183, %185 : vector<16x64xf32>
    %187 = vector.shape_cast %186 : vector<16x64xf32> to vector<1x16x64xf32>
    %cst_53 = arith.constant dense<0.000000e+00> : vector<1xf32>
    %188 = vector.multi_reduction <add>, %187, %cst_53 [1, 2] : vector<1x16x64xf32> to vector<1xf32>
    %189 = vector.shape_cast %188 : vector<1xf32> to vector<1x1x1xf32>
    %190 = vector.extract %189[0, 0, 0] : f32 from vector<1x1x1xf32>
    %191 = vector.broadcast %190 : f32 to vector<1x1xf32>
    %cst_54 = arith.constant 1.024000e+03 : f32
    %192 = vector.broadcast %cst_54 : f32 to vector<1x1xf32>
    %193 = arith.divf %191, %192 : vector<1x1xf32>
    %194 = vector.broadcast %181 : vector<1x1xf32> to vector<16x64xf32>
    %195 = arith.subf %174, %194 : vector<16x64xf32>
    %cst_55 = arith.constant 9.99999974E-6 : f32
    %196 = vector.broadcast %cst_55 : f32 to vector<1x1xf32>
    %197 = arith.addf %193, %196 : vector<1x1xf32>
    %198 = math.rsqrt %197 : vector<1x1xf32>
    %199 = vector.broadcast %198 : vector<1x1xf32> to vector<16x64xf32>
    %200 = arith.mulf %195, %199 : vector<16x64xf32>
    %201 = tpu.concatenate %173, %200 in 0 : vector<16x64xf32>, vector<16x64xf32> -> vector<32x64xf32>
    %202 = vector.broadcast %145 : vector<32x1xf32> to vector<32x64xf32>
    %203 = arith.mulf %201, %202 : vector<32x64xf32>
    %204 = vector.broadcast %146 : vector<32x1xf32> to vector<32x64xf32>
    %205 = arith.addf %203, %204 : vector<32x64xf32>
    %cst_56 = arith.constant 2.000000e-01 : f32
    %206 = vector.broadcast %cst_56 : f32 to vector<32x64xf32>
    %207 = arith.mulf %206, %205 : vector<32x64xf32>
    %208 = arith.maximumf %205, %207 : vector<32x64xf32>
    %209 = tpu.iota {dimensions = array<i32: 1>} : vector<32x256xi32>
    %c16_i32 = arith.constant 16 : i32
    %c0_i32_57 = arith.constant 0 : i32
    %210 = arith.cmpi eq, %c16_i32, %c0_i32_57 : i32
    %c1_i32_58 = arith.constant 1 : i32
    %211 = arith.select %210, %c1_i32_58, %c16_i32 : i32
    %212 = vector.broadcast %211 : i32 to vector<32x256xi32>
    %213 = arith.remsi %209, %212 : vector<32x256xi32>
    %c0_i32_59 = arith.constant 0 : i32
    %214 = vector.broadcast %c0_i32_59 : i32 to vector<32x256xi32>
    %215 = arith.cmpi ne, %213, %214 : vector<32x256xi32>
    %c0_i32_60 = arith.constant 0 : i32
    %216 = vector.broadcast %c0_i32_60 : i32 to vector<32x256xi32>
    %217 = arith.cmpi slt, %213, %216 : vector<32x256xi32>
    %c0_i32_61 = arith.constant 0 : i32
    %218 = arith.cmpi slt, %211, %c0_i32_61 : i32
    %219 = vector.broadcast %218 : i1 to vector<32x256xi1>
    %220 = vector.broadcast %219 : vector<32x256xi1> to vector<32x256xi1>
    %221 = arith.xori %217, %220 : vector<32x256xi1>
    %222 = arith.andi %221, %215 : vector<32x256xi1>
    %223 = vector.broadcast %211 : i32 to vector<32x256xi32>
    %224 = arith.addi %213, %223 : vector<32x256xi32>
    %225 = arith.select %222, %224, %213 : vector<32x256xi1>, vector<32x256xi32>
    %c1_i32_62 = arith.constant 1 : i32
    %226 = vector.broadcast %c1_i32_62 : i32 to vector<32x256xi32>
    %227 = arith.cmpi sge, %225, %226 : vector<32x256xi32>
    %c14_i32 = arith.constant 14 : i32
    %228 = vector.broadcast %c14_i32 : i32 to vector<32x256xi32>
    %229 = arith.cmpi sle, %225, %228 : vector<32x256xi32>
    %c0_63 = arith.constant 0 : index
    %c0_64 = arith.constant 0 : index
    %230 = vector.load %arg5[%c0_63, %c0_64] : memref<64x290xf32, #tpu.memory_space<vmem>>, vector<64x290xf32>
    %cst_65 = arith.constant dense<0.000000e+00> : vector<32x290xf32>
    %231 = tpu.matmul %208, %230, %cst_65 {dimension_numbers = #tpu.dot_dimension_numbers<[1], [0], [0], [1], [0, 0, 1, 1], [], []>} : vector<32x64xf32>, vector<64x290xf32>, vector<32x290xf32> -> vector<32x290xf32>
    %c64 = arith.constant 64 : index
    %c0_66 = arith.constant 0 : index
    %232 = vector.load %arg7[%c64, %c0_66] : memref<160x288xf32, #tpu.memory_space<vmem>>, vector<32x288xf32>
    %233 = vector.extract_strided_slice %231 {offsets = [0, 0], sizes = [32, 256], strides = [1, 1]} : vector<32x290xf32> to vector<32x256xf32>
    %cst_67 = arith.constant 0.000000e+00 : f32
    %234 = vector.broadcast %cst_67 : f32 to vector<32x256xf32>
    %235 = arith.select %227, %233, %234 : vector<32x256xi1>, vector<32x256xf32>
    %236 = vector.extract_strided_slice %231 {offsets = [0, 1], sizes = [32, 256], strides = [1, 1]} : vector<32x290xf32> to vector<32x256xf32>
    %237 = vector.extract_strided_slice %231 {offsets = [0, 2], sizes = [32, 256], strides = [1, 1]} : vector<32x290xf32> to vector<32x256xf32>
    %cst_68 = arith.constant 0.000000e+00 : f32
    %238 = vector.broadcast %cst_68 : f32 to vector<32x256xf32>
    %239 = arith.select %229, %237, %238 : vector<32x256xi1>, vector<32x256xf32>
    %240 = vector.extract_strided_slice %231 {offsets = [0, 16], sizes = [32, 256], strides = [1, 1]} : vector<32x290xf32> to vector<32x256xf32>
    %cst_69 = arith.constant 0.000000e+00 : f32
    %241 = vector.broadcast %cst_69 : f32 to vector<32x256xf32>
    %242 = arith.select %227, %240, %241 : vector<32x256xi1>, vector<32x256xf32>
    %243 = vector.extract_strided_slice %231 {offsets = [0, 17], sizes = [32, 256], strides = [1, 1]} : vector<32x290xf32> to vector<32x256xf32>
    %244 = vector.extract_strided_slice %231 {offsets = [0, 18], sizes = [32, 256], strides = [1, 1]} : vector<32x290xf32> to vector<32x256xf32>
    %cst_70 = arith.constant 0.000000e+00 : f32
    %245 = vector.broadcast %cst_70 : f32 to vector<32x256xf32>
    %246 = arith.select %229, %244, %245 : vector<32x256xi1>, vector<32x256xf32>
    %247 = vector.extract_strided_slice %231 {offsets = [0, 32], sizes = [32, 256], strides = [1, 1]} : vector<32x290xf32> to vector<32x256xf32>
    %cst_71 = arith.constant 0.000000e+00 : f32
    %248 = vector.broadcast %cst_71 : f32 to vector<32x256xf32>
    %249 = arith.select %227, %247, %248 : vector<32x256xi1>, vector<32x256xf32>
    %250 = vector.extract_strided_slice %231 {offsets = [0, 33], sizes = [32, 256], strides = [1, 1]} : vector<32x290xf32> to vector<32x256xf32>
    %251 = vector.extract_strided_slice %231 {offsets = [0, 34], sizes = [32, 256], strides = [1, 1]} : vector<32x290xf32> to vector<32x256xf32>
    %cst_72 = arith.constant 0.000000e+00 : f32
    %252 = vector.broadcast %cst_72 : f32 to vector<32x256xf32>
    %253 = arith.select %229, %251, %252 : vector<32x256xi1>, vector<32x256xf32>
    %254 = tpu.concatenate %235, %236, %239, %242, %243, %246, %249, %250, %253 in 0 : vector<32x256xf32>, vector<32x256xf32>, vector<32x256xf32>, vector<32x256xf32>, vector<32x256xf32>, vector<32x256xf32>, vector<32x256xf32>, vector<32x256xf32>, vector<32x256xf32> -> vector<288x256xf32>
    %cst_73 = arith.constant dense<0.000000e+00> : vector<32x256xf32>
    %255 = tpu.matmul %232, %254, %cst_73 {dimension_numbers = #tpu.dot_dimension_numbers<[1], [0], [0], [1], [0, 0, 1, 1], [], []>} : vector<32x288xf32>, vector<288x256xf32>, vector<32x256xf32> -> vector<32x256xf32>
    %c0_74 = arith.constant 0 : index
    %c6 = arith.constant 6 : index
    %256 = vector.load %arg8[%c0_74, %c6] : memref<32x12xf32, #tpu.memory_space<vmem>>, vector<32x1xf32>
    %257 = vector.broadcast %256 : vector<32x1xf32> to vector<32x256xf32>
    %258 = arith.addf %255, %257 : vector<32x256xf32>
    %c0_75 = arith.constant 0 : index
    %c7 = arith.constant 7 : index
    %259 = vector.load %arg8[%c0_75, %c7] : memref<32x12xf32, #tpu.memory_space<vmem>>, vector<32x1xf32>
    %c0_76 = arith.constant 0 : index
    %c8 = arith.constant 8 : index
    %260 = vector.load %arg8[%c0_76, %c8] : memref<32x12xf32, #tpu.memory_space<vmem>>, vector<32x1xf32>
    %261 = vector.extract_strided_slice %258 {offsets = [0, 0], sizes = [16, 256], strides = [1, 1]} : vector<32x256xf32> to vector<16x256xf32>
    %262 = vector.shape_cast %261 : vector<16x256xf32> to vector<1x16x256xf32>
    %cst_77 = arith.constant dense<0.000000e+00> : vector<1xf32>
    %263 = vector.multi_reduction <add>, %262, %cst_77 [1, 2] : vector<1x16x256xf32> to vector<1xf32>
    %264 = vector.shape_cast %263 : vector<1xf32> to vector<1x1x1xf32>
    %265 = vector.extract %264[0, 0, 0] : f32 from vector<1x1x1xf32>
    %266 = vector.broadcast %265 : f32 to vector<1x1xf32>
    %cst_78 = arith.constant 4.096000e+03 : f32
    %267 = vector.broadcast %cst_78 : f32 to vector<1x1xf32>
    %268 = arith.divf %266, %267 : vector<1x1xf32>
    %269 = vector.broadcast %268 : vector<1x1xf32> to vector<16x256xf32>
    %270 = arith.subf %261, %269 : vector<16x256xf32>
    %271 = vector.broadcast %268 : vector<1x1xf32> to vector<16x256xf32>
    %272 = arith.subf %261, %271 : vector<16x256xf32>
    %273 = arith.mulf %270, %272 : vector<16x256xf32>
    %274 = vector.shape_cast %273 : vector<16x256xf32> to vector<1x16x256xf32>
    %cst_79 = arith.constant dense<0.000000e+00> : vector<1xf32>
    %275 = vector.multi_reduction <add>, %274, %cst_79 [1, 2] : vector<1x16x256xf32> to vector<1xf32>
    %276 = vector.shape_cast %275 : vector<1xf32> to vector<1x1x1xf32>
    %277 = vector.extract %276[0, 0, 0] : f32 from vector<1x1x1xf32>
    %278 = vector.broadcast %277 : f32 to vector<1x1xf32>
    %cst_80 = arith.constant 4.096000e+03 : f32
    %279 = vector.broadcast %cst_80 : f32 to vector<1x1xf32>
    %280 = arith.divf %278, %279 : vector<1x1xf32>
    %281 = vector.broadcast %268 : vector<1x1xf32> to vector<16x256xf32>
    %282 = arith.subf %261, %281 : vector<16x256xf32>
    %cst_81 = arith.constant 9.99999974E-6 : f32
    %283 = vector.broadcast %cst_81 : f32 to vector<1x1xf32>
    %284 = arith.addf %280, %283 : vector<1x1xf32>
    %285 = math.rsqrt %284 : vector<1x1xf32>
    %286 = vector.broadcast %285 : vector<1x1xf32> to vector<16x256xf32>
    %287 = arith.mulf %282, %286 : vector<16x256xf32>
    %288 = vector.extract_strided_slice %258 {offsets = [16, 0], sizes = [16, 256], strides = [1, 1]} : vector<32x256xf32> to vector<16x256xf32>
    %289 = vector.shape_cast %288 : vector<16x256xf32> to vector<1x16x256xf32>
    %cst_82 = arith.constant dense<0.000000e+00> : vector<1xf32>
    %290 = vector.multi_reduction <add>, %289, %cst_82 [1, 2] : vector<1x16x256xf32> to vector<1xf32>
    %291 = vector.shape_cast %290 : vector<1xf32> to vector<1x1x1xf32>
    %292 = vector.extract %291[0, 0, 0] : f32 from vector<1x1x1xf32>
    %293 = vector.broadcast %292 : f32 to vector<1x1xf32>
    %cst_83 = arith.constant 4.096000e+03 : f32
    %294 = vector.broadcast %cst_83 : f32 to vector<1x1xf32>
    %295 = arith.divf %293, %294 : vector<1x1xf32>
    %296 = vector.broadcast %295 : vector<1x1xf32> to vector<16x256xf32>
    %297 = arith.subf %288, %296 : vector<16x256xf32>
    %298 = vector.broadcast %295 : vector<1x1xf32> to vector<16x256xf32>
    %299 = arith.subf %288, %298 : vector<16x256xf32>
    %300 = arith.mulf %297, %299 : vector<16x256xf32>
    %301 = vector.shape_cast %300 : vector<16x256xf32> to vector<1x16x256xf32>
    %cst_84 = arith.constant dense<0.000000e+00> : vector<1xf32>
    %302 = vector.multi_reduction <add>, %301, %cst_84 [1, 2] : vector<1x16x256xf32> to vector<1xf32>
    %303 = vector.shape_cast %302 : vector<1xf32> to vector<1x1x1xf32>
    %304 = vector.extract %303[0, 0, 0] : f32 from vector<1x1x1xf32>
    %305 = vector.broadcast %304 : f32 to vector<1x1xf32>
    %cst_85 = arith.constant 4.096000e+03 : f32
    %306 = vector.broadcast %cst_85 : f32 to vector<1x1xf32>
    %307 = arith.divf %305, %306 : vector<1x1xf32>
    %308 = vector.broadcast %295 : vector<1x1xf32> to vector<16x256xf32>
    %309 = arith.subf %288, %308 : vector<16x256xf32>
    %cst_86 = arith.constant 9.99999974E-6 : f32
    %310 = vector.broadcast %cst_86 : f32 to vector<1x1xf32>
    %311 = arith.addf %307, %310 : vector<1x1xf32>
    %312 = math.rsqrt %311 : vector<1x1xf32>
    %313 = vector.broadcast %312 : vector<1x1xf32> to vector<16x256xf32>
    %314 = arith.mulf %309, %313 : vector<16x256xf32>
    %315 = tpu.concatenate %287, %314 in 0 : vector<16x256xf32>, vector<16x256xf32> -> vector<32x256xf32>
    %316 = vector.broadcast %259 : vector<32x1xf32> to vector<32x256xf32>
    %317 = arith.mulf %315, %316 : vector<32x256xf32>
    %318 = vector.broadcast %260 : vector<32x1xf32> to vector<32x256xf32>
    %319 = arith.addf %317, %318 : vector<32x256xf32>
    %cst_87 = arith.constant 2.000000e-01 : f32
    %320 = vector.broadcast %cst_87 : f32 to vector<32x256xf32>
    %321 = arith.mulf %320, %319 : vector<32x256xf32>
    %322 = arith.maximumf %319, %321 : vector<32x256xf32>
    %c0_88 = arith.constant 0 : index
    %c0_89 = arith.constant 0 : index
    %323 = vector.load %arg6[%c0_88, %c0_89] : memref<256x290xf32, #tpu.memory_space<vmem>>, vector<256x290xf32>
    %cst_90 = arith.constant dense<0.000000e+00> : vector<32x290xf32>
    %324 = tpu.matmul %322, %323, %cst_90 {dimension_numbers = #tpu.dot_dimension_numbers<[1], [0], [0], [1], [0, 0, 1, 1], [], []>} : vector<32x256xf32>, vector<256x290xf32>, vector<32x290xf32> -> vector<32x290xf32>
    %c96 = arith.constant 96 : index
    %c0_91 = arith.constant 0 : index
    %325 = vector.load %arg7[%c96, %c0_91] : memref<160x288xf32, #tpu.memory_space<vmem>>, vector<32x288xf32>
    %326 = vector.extract_strided_slice %324 {offsets = [0, 0], sizes = [32, 256], strides = [1, 1]} : vector<32x290xf32> to vector<32x256xf32>
    %cst_92 = arith.constant 0.000000e+00 : f32
    %327 = vector.broadcast %cst_92 : f32 to vector<32x256xf32>
    %328 = arith.select %227, %326, %327 : vector<32x256xi1>, vector<32x256xf32>
    %329 = vector.extract_strided_slice %324 {offsets = [0, 1], sizes = [32, 256], strides = [1, 1]} : vector<32x290xf32> to vector<32x256xf32>
    %330 = vector.extract_strided_slice %324 {offsets = [0, 2], sizes = [32, 256], strides = [1, 1]} : vector<32x290xf32> to vector<32x256xf32>
    %cst_93 = arith.constant 0.000000e+00 : f32
    %331 = vector.broadcast %cst_93 : f32 to vector<32x256xf32>
    %332 = arith.select %229, %330, %331 : vector<32x256xi1>, vector<32x256xf32>
    %333 = vector.extract_strided_slice %324 {offsets = [0, 16], sizes = [32, 256], strides = [1, 1]} : vector<32x290xf32> to vector<32x256xf32>
    %cst_94 = arith.constant 0.000000e+00 : f32
    %334 = vector.broadcast %cst_94 : f32 to vector<32x256xf32>
    %335 = arith.select %227, %333, %334 : vector<32x256xi1>, vector<32x256xf32>
    %336 = vector.extract_strided_slice %324 {offsets = [0, 17], sizes = [32, 256], strides = [1, 1]} : vector<32x290xf32> to vector<32x256xf32>
    %337 = vector.extract_strided_slice %324 {offsets = [0, 18], sizes = [32, 256], strides = [1, 1]} : vector<32x290xf32> to vector<32x256xf32>
    %cst_95 = arith.constant 0.000000e+00 : f32
    %338 = vector.broadcast %cst_95 : f32 to vector<32x256xf32>
    %339 = arith.select %229, %337, %338 : vector<32x256xi1>, vector<32x256xf32>
    %340 = vector.extract_strided_slice %324 {offsets = [0, 32], sizes = [32, 256], strides = [1, 1]} : vector<32x290xf32> to vector<32x256xf32>
    %cst_96 = arith.constant 0.000000e+00 : f32
    %341 = vector.broadcast %cst_96 : f32 to vector<32x256xf32>
    %342 = arith.select %227, %340, %341 : vector<32x256xi1>, vector<32x256xf32>
    %343 = vector.extract_strided_slice %324 {offsets = [0, 33], sizes = [32, 256], strides = [1, 1]} : vector<32x290xf32> to vector<32x256xf32>
    %344 = vector.extract_strided_slice %324 {offsets = [0, 34], sizes = [32, 256], strides = [1, 1]} : vector<32x290xf32> to vector<32x256xf32>
    %cst_97 = arith.constant 0.000000e+00 : f32
    %345 = vector.broadcast %cst_97 : f32 to vector<32x256xf32>
    %346 = arith.select %229, %344, %345 : vector<32x256xi1>, vector<32x256xf32>
    %347 = tpu.concatenate %328, %329, %332, %335, %336, %339, %342, %343, %346 in 0 : vector<32x256xf32>, vector<32x256xf32>, vector<32x256xf32>, vector<32x256xf32>, vector<32x256xf32>, vector<32x256xf32>, vector<32x256xf32>, vector<32x256xf32>, vector<32x256xf32> -> vector<288x256xf32>
    %cst_98 = arith.constant dense<0.000000e+00> : vector<32x256xf32>
    %348 = tpu.matmul %325, %347, %cst_98 {dimension_numbers = #tpu.dot_dimension_numbers<[1], [0], [0], [1], [0, 0, 1, 1], [], []>} : vector<32x288xf32>, vector<288x256xf32>, vector<32x256xf32> -> vector<32x256xf32>
    %c0_99 = arith.constant 0 : index
    %c0_100 = arith.constant 0 : index
    %c0_101 = arith.constant 0 : index
    %349 = vector.load %arg2[%c0_99, %c0_100, %c0_101] : memref<1x32x256xf32, #tpu.memory_space<vmem>>, vector<1x32x256xf32>
    %350 = vector.shape_cast %349 : vector<1x32x256xf32> to vector<32x256xf32>
    %c0_102 = arith.constant 0 : index
    %c0_103 = arith.constant 0 : index
    %351 = vector.load %arg6[%c0_102, %c0_103] : memref<256x290xf32, #tpu.memory_space<vmem>>, vector<256x290xf32>
    %cst_104 = arith.constant dense<0.000000e+00> : vector<32x290xf32>
    %352 = tpu.matmul %350, %351, %cst_104 {dimension_numbers = #tpu.dot_dimension_numbers<[1], [0], [0], [1], [0, 0, 1, 1], [], []>} : vector<32x256xf32>, vector<256x290xf32>, vector<32x290xf32> -> vector<32x290xf32>
    %c128 = arith.constant 128 : index
    %c0_105 = arith.constant 0 : index
    %353 = vector.load %arg7[%c128, %c0_105] : memref<160x288xf32, #tpu.memory_space<vmem>>, vector<32x288xf32>
    %354 = vector.extract_strided_slice %352 {offsets = [0, 0], sizes = [32, 256], strides = [1, 1]} : vector<32x290xf32> to vector<32x256xf32>
    %cst_106 = arith.constant 0.000000e+00 : f32
    %355 = vector.broadcast %cst_106 : f32 to vector<32x256xf32>
    %356 = arith.select %227, %354, %355 : vector<32x256xi1>, vector<32x256xf32>
    %357 = vector.extract_strided_slice %352 {offsets = [0, 1], sizes = [32, 256], strides = [1, 1]} : vector<32x290xf32> to vector<32x256xf32>
    %358 = vector.extract_strided_slice %352 {offsets = [0, 2], sizes = [32, 256], strides = [1, 1]} : vector<32x290xf32> to vector<32x256xf32>
    %cst_107 = arith.constant 0.000000e+00 : f32
    %359 = vector.broadcast %cst_107 : f32 to vector<32x256xf32>
    %360 = arith.select %229, %358, %359 : vector<32x256xi1>, vector<32x256xf32>
    %361 = vector.extract_strided_slice %352 {offsets = [0, 16], sizes = [32, 256], strides = [1, 1]} : vector<32x290xf32> to vector<32x256xf32>
    %cst_108 = arith.constant 0.000000e+00 : f32
    %362 = vector.broadcast %cst_108 : f32 to vector<32x256xf32>
    %363 = arith.select %227, %361, %362 : vector<32x256xi1>, vector<32x256xf32>
    %364 = vector.extract_strided_slice %352 {offsets = [0, 17], sizes = [32, 256], strides = [1, 1]} : vector<32x290xf32> to vector<32x256xf32>
    %365 = vector.extract_strided_slice %352 {offsets = [0, 18], sizes = [32, 256], strides = [1, 1]} : vector<32x290xf32> to vector<32x256xf32>
    %cst_109 = arith.constant 0.000000e+00 : f32
    %366 = vector.broadcast %cst_109 : f32 to vector<32x256xf32>
    %367 = arith.select %229, %365, %366 : vector<32x256xi1>, vector<32x256xf32>
    %368 = vector.extract_strided_slice %352 {offsets = [0, 32], sizes = [32, 256], strides = [1, 1]} : vector<32x290xf32> to vector<32x256xf32>
    %cst_110 = arith.constant 0.000000e+00 : f32
    %369 = vector.broadcast %cst_110 : f32 to vector<32x256xf32>
    %370 = arith.select %227, %368, %369 : vector<32x256xi1>, vector<32x256xf32>
    %371 = vector.extract_strided_slice %352 {offsets = [0, 33], sizes = [32, 256], strides = [1, 1]} : vector<32x290xf32> to vector<32x256xf32>
    %372 = vector.extract_strided_slice %352 {offsets = [0, 34], sizes = [32, 256], strides = [1, 1]} : vector<32x290xf32> to vector<32x256xf32>
    %cst_111 = arith.constant 0.000000e+00 : f32
    %373 = vector.broadcast %cst_111 : f32 to vector<32x256xf32>
    %374 = arith.select %229, %372, %373 : vector<32x256xi1>, vector<32x256xf32>
    %375 = tpu.concatenate %356, %357, %360, %363, %364, %367, %370, %371, %374 in 0 : vector<32x256xf32>, vector<32x256xf32>, vector<32x256xf32>, vector<32x256xf32>, vector<32x256xf32>, vector<32x256xf32>, vector<32x256xf32>, vector<32x256xf32>, vector<32x256xf32> -> vector<288x256xf32>
    %cst_112 = arith.constant dense<0.000000e+00> : vector<32x256xf32>
    %376 = tpu.matmul %353, %375, %cst_112 {dimension_numbers = #tpu.dot_dimension_numbers<[1], [0], [0], [1], [0, 0, 1, 1], [], []>} : vector<32x288xf32>, vector<288x256xf32>, vector<32x256xf32> -> vector<32x256xf32>
    %377 = arith.addf %348, %376 : vector<32x256xf32>
    %c0_113 = arith.constant 0 : index
    %c9 = arith.constant 9 : index
    %378 = vector.load %arg8[%c0_113, %c9] : memref<32x12xf32, #tpu.memory_space<vmem>>, vector<32x1xf32>
    %379 = vector.broadcast %378 : vector<32x1xf32> to vector<32x256xf32>
    %380 = arith.addf %377, %379 : vector<32x256xf32>
    %c0_114 = arith.constant 0 : index
    %c10 = arith.constant 10 : index
    %381 = vector.load %arg8[%c0_114, %c10] : memref<32x12xf32, #tpu.memory_space<vmem>>, vector<32x1xf32>
    %c0_115 = arith.constant 0 : index
    %c11 = arith.constant 11 : index
    %382 = vector.load %arg8[%c0_115, %c11] : memref<32x12xf32, #tpu.memory_space<vmem>>, vector<32x1xf32>
    %383 = vector.extract_strided_slice %380 {offsets = [0, 0], sizes = [16, 256], strides = [1, 1]} : vector<32x256xf32> to vector<16x256xf32>
    %384 = vector.shape_cast %383 : vector<16x256xf32> to vector<1x16x256xf32>
    %cst_116 = arith.constant dense<0.000000e+00> : vector<1xf32>
    %385 = vector.multi_reduction <add>, %384, %cst_116 [1, 2] : vector<1x16x256xf32> to vector<1xf32>
    %386 = vector.shape_cast %385 : vector<1xf32> to vector<1x1x1xf32>
    %387 = vector.extract %386[0, 0, 0] : f32 from vector<1x1x1xf32>
    %388 = vector.broadcast %387 : f32 to vector<1x1xf32>
    %cst_117 = arith.constant 4.096000e+03 : f32
    %389 = vector.broadcast %cst_117 : f32 to vector<1x1xf32>
    %390 = arith.divf %388, %389 : vector<1x1xf32>
    %391 = vector.broadcast %390 : vector<1x1xf32> to vector<16x256xf32>
    %392 = arith.subf %383, %391 : vector<16x256xf32>
    %393 = vector.broadcast %390 : vector<1x1xf32> to vector<16x256xf32>
    %394 = arith.subf %383, %393 : vector<16x256xf32>
    %395 = arith.mulf %392, %394 : vector<16x256xf32>
    %396 = vector.shape_cast %395 : vector<16x256xf32> to vector<1x16x256xf32>
    %cst_118 = arith.constant dense<0.000000e+00> : vector<1xf32>
    %397 = vector.multi_reduction <add>, %396, %cst_118 [1, 2] : vector<1x16x256xf32> to vector<1xf32>
    %398 = vector.shape_cast %397 : vector<1xf32> to vector<1x1x1xf32>
    %399 = vector.extract %398[0, 0, 0] : f32 from vector<1x1x1xf32>
    %400 = vector.broadcast %399 : f32 to vector<1x1xf32>
    %cst_119 = arith.constant 4.096000e+03 : f32
    %401 = vector.broadcast %cst_119 : f32 to vector<1x1xf32>
    %402 = arith.divf %400, %401 : vector<1x1xf32>
    %403 = vector.broadcast %390 : vector<1x1xf32> to vector<16x256xf32>
    %404 = arith.subf %383, %403 : vector<16x256xf32>
    %cst_120 = arith.constant 9.99999974E-6 : f32
    %405 = vector.broadcast %cst_120 : f32 to vector<1x1xf32>
    %406 = arith.addf %402, %405 : vector<1x1xf32>
    %407 = math.rsqrt %406 : vector<1x1xf32>
    %408 = vector.broadcast %407 : vector<1x1xf32> to vector<16x256xf32>
    %409 = arith.mulf %404, %408 : vector<16x256xf32>
    %410 = vector.extract_strided_slice %380 {offsets = [16, 0], sizes = [16, 256], strides = [1, 1]} : vector<32x256xf32> to vector<16x256xf32>
    %411 = vector.shape_cast %410 : vector<16x256xf32> to vector<1x16x256xf32>
    %cst_121 = arith.constant dense<0.000000e+00> : vector<1xf32>
    %412 = vector.multi_reduction <add>, %411, %cst_121 [1, 2] : vector<1x16x256xf32> to vector<1xf32>
    %413 = vector.shape_cast %412 : vector<1xf32> to vector<1x1x1xf32>
    %414 = vector.extract %413[0, 0, 0] : f32 from vector<1x1x1xf32>
    %415 = vector.broadcast %414 : f32 to vector<1x1xf32>
    %cst_122 = arith.constant 4.096000e+03 : f32
    %416 = vector.broadcast %cst_122 : f32 to vector<1x1xf32>
    %417 = arith.divf %415, %416 : vector<1x1xf32>
    %418 = vector.broadcast %417 : vector<1x1xf32> to vector<16x256xf32>
    %419 = arith.subf %410, %418 : vector<16x256xf32>
    %420 = vector.broadcast %417 : vector<1x1xf32> to vector<16x256xf32>
    %421 = arith.subf %410, %420 : vector<16x256xf32>
    %422 = arith.mulf %419, %421 : vector<16x256xf32>
    %423 = vector.shape_cast %422 : vector<16x256xf32> to vector<1x16x256xf32>
    %cst_123 = arith.constant dense<0.000000e+00> : vector<1xf32>
    %424 = vector.multi_reduction <add>, %423, %cst_123 [1, 2] : vector<1x16x256xf32> to vector<1xf32>
    %425 = vector.shape_cast %424 : vector<1xf32> to vector<1x1x1xf32>
    %426 = vector.extract %425[0, 0, 0] : f32 from vector<1x1x1xf32>
    %427 = vector.broadcast %426 : f32 to vector<1x1xf32>
    %cst_124 = arith.constant 4.096000e+03 : f32
    %428 = vector.broadcast %cst_124 : f32 to vector<1x1xf32>
    %429 = arith.divf %427, %428 : vector<1x1xf32>
    %430 = vector.broadcast %417 : vector<1x1xf32> to vector<16x256xf32>
    %431 = arith.subf %410, %430 : vector<16x256xf32>
    %cst_125 = arith.constant 9.99999974E-6 : f32
    %432 = vector.broadcast %cst_125 : f32 to vector<1x1xf32>
    %433 = arith.addf %429, %432 : vector<1x1xf32>
    %434 = math.rsqrt %433 : vector<1x1xf32>
    %435 = vector.broadcast %434 : vector<1x1xf32> to vector<16x256xf32>
    %436 = arith.mulf %431, %435 : vector<16x256xf32>
    %437 = tpu.concatenate %409, %436 in 0 : vector<16x256xf32>, vector<16x256xf32> -> vector<32x256xf32>
    %438 = vector.broadcast %381 : vector<32x1xf32> to vector<32x256xf32>
    %439 = arith.mulf %437, %438 : vector<32x256xf32>
    %440 = vector.broadcast %382 : vector<32x1xf32> to vector<32x256xf32>
    %441 = arith.addf %439, %440 : vector<32x256xf32>
    %cst_126 = arith.constant 2.000000e-01 : f32
    %442 = vector.broadcast %cst_126 : f32 to vector<32x256xf32>
    %443 = arith.mulf %442, %441 : vector<32x256xf32>
    %444 = arith.maximumf %441, %443 : vector<32x256xf32>
    %c0_127 = arith.constant 0 : index
    %c0_128 = arith.constant 0 : index
    %445 = vector.load %arg9[%c0_127, %c0_128] : memref<4x33xf32, #tpu.memory_space<vmem>>, vector<4x32xf32>
    %cst_129 = arith.constant dense<0.000000e+00> : vector<4x256xf32>
    %446 = tpu.matmul %445, %444, %cst_129 {dimension_numbers = #tpu.dot_dimension_numbers<[1], [0], [0], [1], [0, 0, 1, 1], [], []>} : vector<4x32xf32>, vector<32x256xf32>, vector<4x256xf32> -> vector<4x256xf32>
    %c0_130 = arith.constant 0 : index
    %c32_131 = arith.constant 32 : index
    %447 = vector.load %arg9[%c0_130, %c32_131] : memref<4x33xf32, #tpu.memory_space<vmem>>, vector<4x1xf32>
    %448 = vector.broadcast %447 : vector<4x1xf32> to vector<4x256xf32>
    %449 = arith.addf %446, %448 : vector<4x256xf32>
    %450 = vector.shape_cast %449 : vector<4x256xf32> to vector<1x4x256xf32>
    %c0_132 = arith.constant 0 : index
    %c0_133 = arith.constant 0 : index
    %c0_134 = arith.constant 0 : index
    %451 = vector.load %arg10[%c0_132, %c0_133, %c0_134] : memref<1x4x256xf32, #tpu.memory_space<vmem>>, vector<1x4x256xf32>
    tpu.vector_store %arg10[%c0_132, %c0_133, %c0_134], %450 {strides = array<i32>} : memref<1x4x256xf32, #tpu.memory_space<vmem>>, vector<1x4x256xf32>,
    return
  }
  func.func @transform_0(%arg0: i32) -> (i32, i32, i32) {
    %c0_i32 = arith.constant 0 : i32
    %c0_i32_0 = arith.constant 0 : i32
    %c0_i32_1 = arith.constant 0 : i32
    return %arg0, %c0_i32, %c0_i32_0 : i32, i32, i32
  }
  func.func @transform_1(%arg0: i32) -> (i32, i32, i32) {
    %c0_i32 = arith.constant 0 : i32
    %c0_i32_0 = arith.constant 0 : i32
    %c0_i32_1 = arith.constant 0 : i32
    return %arg0, %c0_i32, %c0_i32_0 : i32, i32, i32
  }
  func.func @transform_2(%arg0: i32) -> (i32, i32) {
    %c0_i32 = arith.constant 0 : i32
    %c0_i32_0 = arith.constant 0 : i32
    %c0_i32_1 = arith.constant 0 : i32
    return %c0_i32, %c0_i32_0 : i32, i32
  }
  func.func @transform_3(%arg0: i32) -> (i32, i32) {
    %c0_i32 = arith.constant 0 : i32
    %c0_i32_0 = arith.constant 0 : i32
    %c0_i32_1 = arith.constant 0 : i32
    return %c0_i32, %c0_i32_0 : i32, i32
  }
  func.func @transform_4(%arg0: i32) -> (i32, i32) {
    %c0_i32 = arith.constant 0 : i32
    %c0_i32_0 = arith.constant 0 : i32
    %c0_i32_1 = arith.constant 0 : i32
    return %c0_i32, %c0_i32_0 : i32, i32
  }
  func.func @transform_5(%arg0: i32) -> (i32, i32) {
    %c0_i32 = arith.constant 0 : i32
    %c0_i32_0 = arith.constant 0 : i32
    %c0_i32_1 = arith.constant 0 : i32
    return %c0_i32, %c0_i32_0 : i32, i32
  }
  func.func @transform_6(%arg0: i32) -> (i32, i32) {
    %c0_i32 = arith.constant 0 : i32
    %c0_i32_0 = arith.constant 0 : i32
    %c0_i32_1 = arith.constant 0 : i32
    return %c0_i32, %c0_i32_0 : i32, i32
  }
  func.func @transform_7(%arg0: i32) -> (i32, i32) {
    %c0_i32 = arith.constant 0 : i32
    %c0_i32_0 = arith.constant 0 : i32
    %c0_i32_1 = arith.constant 0 : i32
    return %c0_i32, %c0_i32_0 : i32, i32
  }
  func.func @transform_8(%arg0: i32) -> (i32, i32) {
    %c0_i32 = arith.constant 0 : i32
    %c0_i32_0 = arith.constant 0 : i32
    %c0_i32_1 = arith.constant 0 : i32
    return %c0_i32, %c0_i32_0 : i32, i32
  }
  func.func @transform_9(%arg0: i32) -> (i32, i32, i32) {
    %c0_i32 = arith.constant 0 : i32
    %c0_i32_0 = arith.constant 0 : i32
    %c0_i32_1 = arith.constant 0 : i32
    return %arg0, %c0_i32, %c0_i32_0 : i32, i32, i32
  }
}

</mosaic_0001>

<bundles_post_ra>
// kernel: _lambda_.1
= control target key start
LH: loop header
LB: loop body
LE: loop exit
PB: predicated region body
PF: predicated region fallthrough
CT: control target
= control target key end

     0   :  { %14 = vsyncpa [#allocation3], 0  ;;  %s8666_s0 = inlined_call_operand.vmem [shape: f32[2,32,16], index: 0, kind: input, shape index: {}]   ;;  %s8667_s1 = inlined_call_operand.vmem [shape: f32[2,32,256], index: 1, kind: input, shape index: {}]   ;;  %s8668_s2 = inlined_call_operand.hbm [shape: f32[16,82], index: 2, kind: input, shape index: {}]   ;;  %s8669_s3 = inlined_call_operand.vmem [shape: f32[64,82], index: 3, kind: input, shape index: {}]   ;;  %s8670_s4 = inlined_call_operand.vmem [shape: f32[64,290], index: 4, kind: input, shape index: {}]   ;;  %s8671_s5 = inlined_call_operand.hbm [shape: f32[256,290], index: 5, kind: input, shape index: {}]   ;;  %s8672_s6 = inlined_call_operand.vmem [shape: f32[160,288], index: 6, kind: input, shape index: {}]   ;;  %s8673_s7 = inlined_call_operand.hbm [shape: f32[32,12], index: 7, kind: input, shape index: {}]   ;;  %s8674_s8 = inlined_call_operand.vmem [shape: f32[4,33], index: 8, kind: input, shape index: {}]   ;;  %s8675_s9 = inlined_call_operand.vmem [shape: f32[2,4,256], index: 9, kind: output, shape index: {}]  }
   0x1   :  { %15 = vsyncpa [#allocation5], 0  ;;  %s5401_s30 = smov 0  }
   0x2 LB: > { %s5319_s10 = smov [#allocation4]   ;;  %s5407_s12 = sadd.s32 4294967295, %s5317_s30   ;;  %s5317_s30 = sphi %s5401_s30, %s21_s30  }
   0x3   : > { %s282_s11 = sshll.u32 %s5319_s10, 4  ;;  %p4507_p0 = scmp.ge.s32.totalorder %s5317_s30, 1  ;;  %s283_s11 = int_to_ptr.vmem [resolvable:$true] %s282_s11 }
   0x4   : > { %p251_p1 = scmp.lt.s32.totalorder %s5317_s30, 3  ;;  %p5114_p2 = scmp.eq.s32.totalorder %s5407_s12, 0 }
   0x5   : > { %s5320_s14 = smov [#allocation2]   ;;  %s5321_s17 = smov [#allocation6]  }
   0x6   : > { %p5412_p3 = pnand %p4507_p0, %p251_p1  ;;  %s263_s15 = sshll.u32 %s5320_s14, 4  ;;  %s5418_s15 = int_to_ptr.vmem [resolvable:$true] %s263_s15 }
   0x7   : > { %s5426_s18 = sshll.u32 %s5321_s17, 4  ;;  %s5236_s19 = scalar_lea.vmem %s283_s11, 12288  ;;  %s299_s18 = int_to_ptr.vmem [resolvable:$true] %s5426_s18 }
   0x8   : > { %p5104_p4 = pneg %p5412_p3  ;;  %p5237_p7 = scmp.ne.s32.totalorder %s283_s11, %s5236_s19 }
   0x9   : > { %p5244_p10 = scmp.lt.s32.totalorder %s283_s11, %s283_s11  ;;  %p5245_p11 = scmp.lt.s32.totalorder %s5236_s19, %s5236_s19 }
   0xa   : > { %p5422_p5 = pnand %p5114_p2, %p5104_p4 }
   0xb   : > { %p5246_p12 = por %p5245_p11, %p5244_p10 }
   0xc   : > { %p5227_p6 = pneg %p5422_p5 }
   0xe   : > { %p5239_p8 = pnand %p5237_p7, %p5227_p6 }
  0x10   : > { %p5240_p9 = pneg %p5239_p8 }
  0x12   : > { %p5247_p13 = pnand %p5246_p12, %p5240_p9 }
  0x14   : > { %5250 = shalt.err (!%p5247_p13)
}
  0x15   : > { %s5322_s20 = smov 384   ;;  %s5323_s21 = smov 24  }
  0x16   : > { %5110 = dma.hbm_to_vmem [thread:$0]  (!%p5422_p5), %s8671_s5, 12288, %s283_s11, [#allocation5], %s5322_s20, %s5322_s20, %s5323_s21  }
  0x17   : > { %s5262_s24 = scalar_lea.vmem %s5418_s15, 256  ;;  %p5270_p7 = scmp.lt.s32.totalorder %s5418_s15, %s5418_s15 }
  0x18   : > { %p5263_p0 = scmp.ne.s32.totalorder %s5418_s15, %s5262_s24  ;;  %p5271_p8 = scmp.lt.s32.totalorder %s5262_s24, %s5262_s24 }
  0x1a   : > { %p5265_p1 = pnand %p5263_p0, %p5227_p6  ;;  %p5272_p9 = por %p5271_p8, %p5270_p7 }
  0x1c   : > { %p5266_p4 = pneg %p5265_p1 }
  0x1e   : > { %p5273_p10 = pnand %p5272_p9, %p5266_p4 }
  0x20   : > { %5276 = shalt.err (!%p5273_p10)
}
  0x21   : > { %s5324_s25 = smov 128   ;;  %s5325_s26 = smov 8  }
  0x22   : > { %5107 = dma.hbm_to_vmem [thread:$0]  (!%p5422_p5), %s8668_s2, 256, %s5418_s15, [#allocation3], %s5324_s25, %s5324_s25, %s5325_s26  }
  0x23   : > { %s5288_s29 = scalar_lea.vmem %s299_s18, 512  ;;  %p5296_p0 = scmp.lt.s32.totalorder %s299_s18, %s299_s18 }
  0x24   : > { %p5289_p11 = scmp.ne.s32.totalorder %s299_s18, %s5288_s29  ;;  %p5297_p1 = scmp.lt.s32.totalorder %s5288_s29, %s5288_s29 }
  0x26   : > { %p5291_p12 = pnand %p5289_p11, %p5227_p6  ;;  %p5298_p4 = por %p5297_p1, %p5296_p0 }
  0x28   : > { %p5292_p13 = pneg %p5291_p12 }
  0x2a   : > { %p5299_p7 = pnand %p5298_p4, %p5292_p13 }
  0x2c   : > { %5302 = shalt.err (!%p5299_p7)
}
  0x2d   : > { %5113 = dma.hbm_to_vmem [thread:$0]  (!%p5422_p5), %s8673_s7, 512, %s299_s18, [#allocation5], %s5324_s25, %s5324_s25, %s5325_s26  }
  0x2e   : > { %333 = sbr.rel (%p5412_p3) target bundleno = 5505 (0x1581), region = 56 }
  0x33   : > { %5308 = dma.done.wait (%p5114_p2), [#allocation3], 256  }
  0x34   : > { %5310 = vsyncadd (%p5114_p2), [#allocation3], 4294967040 }
  0x35   : > { %5312 = dma.done.wait (%p5114_p2), [#allocation5], 12800  }
  0x36   : > { %5314 = vsyncadd (%p5114_p2), [#allocation5], 4294954496  ;;  %p382_p6 = scmp.lt.s32.totalorder %s5407_s12, 1  ;;  %vm419_vm0 = vcmask 130048   ;;  %v418_v0 = vld [vmem:[#allocation2 + $0x8] sm:$0xff]  ;;  %v417_v1 = vld [vmem:[#allocation2] sm:$0xff]  ;;  %v401_v20 = vlaneseq }
  0x37   : > { %4978 = vmatprep.subr.mxu0 %v418_v0  ;;  %s5326_s17 = smov 120   ;;  %s5327_s18 = smov 111   ;;  %v518_v10 = vld [vmem:[%s8672_s6 + $0x8] sm:$0xff]  ;;  %v5553_v11 = vld [vmem:[#allocation6] sm:$0xff]  ;;  %v5555_v12 = vld [vmem:[#allocation6 + $0x8] sm:$0xff]  ;;  %v5334_v13 = vmov 0  }
  0x38   : > { %s9212_s12 = smov (!%p382_p6, %s5407_s12), 1  ;;  %4979 = vmatpush3.msra.mxu0 %v418_v0  ;;  %s5328_s19 = smov 126   ;;  %754 = vmatprep.mubr.f32.mxu1 %v518_v10  ;;  %v5559_v14 = vld [vmem:[#allocation6 + $0x10] sm:$0xff]  ;;  %v5562_v15 = vld [vmem:[#allocation6 + $0x18] sm:$0xff]  ;;  %v5565_v23 = vand.u32 127, %v401_v20  ;;  %v520_v53 = vld [vmem:[%s8672_s6 + $0x18] sm:$0xff] }
  0x39   : > { %s4753_s13 = sshll.u32 %s9212_s12, 5  ;;  %4980 = vmatprep.subr.mxu0 %v417_v1  ;;  %s5329_s20 = smov 112   ;;  %5160 = vset.pattern.permute.xlu0 %v5334_v13  ;;  %v517_v49 = vld [vmem:[%s8672_s6] sm:$0xff]  ;;  %v524_v54 = vld [vmem:[%s8672_s6 + $0x38] sm:$0xff]  ;;  %v523_v57 = vld [vmem:[%s8672_s6 + $0x30] sm:$0xff]  ;;  %vm677_vm3 = vcmask 261120  }
  0x3a   : > { %s386_s16 = scalar_lea.vmem %s8666_s0, %s4753_s13  ;;  %4981 = vmatpush3.msra.mxu0 %v417_v1  ;;  %s5330_s21 = smov 118   ;;  %5161 = vset.pattern.permute.xlu1 %v5334_v13  ;;  %v407_v26 = vand.u32 7, %v5565_v23  ;;  %v521_v50 = vld [vmem:[%s8672_s6 + $0x20] sm:$0xff]  ;;  %v527_v58 = vld [vmem:[%s8672_s6 + $0x50] sm:$0xff]  ;;  %v526_v59 = vld [vmem:[%s8672_s6 + $0x48] sm:$0xff]  ;;  %vm860_vm4 = vcmask 523264  }
  0x3b   : > { %v397_v2 = vld [vmem:[%s386_s16] sm:$0xff]  ;;  %v398_v3 = vld [vmem:[%s386_s16 + $0x8] sm:$0xff]  ;;  %v399_v4 = vld [vmem:[%s386_s16 + $0x10] sm:$0xff]  ;;  %s5331_s22 = smov 127   ;;  %s5332_s25 = smov 119   ;;  %vm1885_vm7 = vcmask 916480  }
  0x3c   : > { %4982 = vmatprep.mubr.msk.f32.mxu0 %vm419_vm0, %v397_v2  ;;  %v400_v5 = vld [vmem:[%s386_s16 + $0x18] sm:$0xff]  ;;  %s5333_s26 = smov 110   ;;  %vm5568_vm1 = vcmp.ge.s32.totalorder %v407_v26, 1  ;;  %vm5578_vm2 = vcmp.le.s32.totalorder %v407_v26, 6  ;;  %v519_v60 = vld [vmem:[%s8672_s6 + $0x10] sm:$0xff]  ;;  %v522_v61 = vld [vmem:[%s8672_s6 + $0x28] sm:$0xff] }
  0x3d   : > { %4983 = vmatmul.mubr.msk.f32.vlgmr.msra.gmra.mxu0 %vm419_vm0, %v398_v3  ;;  %v525_v62 = vld [vmem:[%s8672_s6 + $0x40] sm:$0xff]  ;;  %v528_v63 = vld [vmem:[%s8672_s6 + $0x58] sm:$0xff]  ;;  %s5341_s11 = smov 95   ;;  %s5342_s13 = smov 96   ;;  %vm1836_vm10 = vcmask 1031168   ;;  %vm2081_vm11 = vcmask 1039360  }
  0x3e   : > { %4985 = vmatprep.mubr.msk.f32.mxu0 %vm419_vm0, %v399_v4  ;;  %v1094_v29 = vld [vmem:[%s8672_s6 + $0x98] sm:$0xff]  ;;  %vm2163_vm12 = vcmask 777216   ;;  %vm1983_vm13 = vcmask 785408   ;;  %vm1934_vm14 = vcmask 900096   ;;  %vm2032_vm15 = vcmask 769024  }
  0x41   : > { %4986 = vmatmul.mubr.msk.f32.gmra.mxu0 %vm419_vm0, %v400_v5  ;;  %vm2122_vm0 = vcmask 908288  }
  0xfd   : > { %v5478_v6 = vpop.f32.mrf.mxu0 }
  0xfe   : > { %555 = vrot.lane.b32.xlu1 %v5478_v6, %s5326_s17  ;;  %643 = vrot.lane.b32.xlu0 %v5478_v6, %s5327_s18 }
  0xff   : > { %v5488_v7 = vpop.f32.mrf.mxu0 }
 0x101   : > { %v5498_v8 = vpop.f32.mrf.mxu0 }
 0x102   : > { %539 = vrot.lane.b32.xlu1 %v5478_v6, %s5328_s19  ;;  %587 = vrot.lane.b32.xlu0 %v5478_v6, %s5329_s20 }
 0x103   : > { %v5504_v9 = vpop.f32.mrf.mxu0 }
 0x106   : > { %553 = vrot.lane.b32.xlu1 %v5488_v7, %s5326_s17  ;;  %641 = vrot.lane.b32.xlu0 %v5488_v7, %s5327_s18 }
 0x10a   : > { %537 = vrot.lane.b32.xlu1 %v5488_v7, %s5328_s19  ;;  %585 = vrot.lane.b32.xlu0 %v5488_v7, %s5329_s20 }
 0x10e   : > { %543 = vrot.lane.b32.xlu1 %v5498_v8, %s5328_s19  ;;  %647 = vrot.lane.b32.xlu0 %v5498_v8, %s5327_s18 }
 0x112   : > { %559 = vrot.lane.b32.xlu0 %v5498_v8, %s5326_s17  ;;  %645 = vrot.lane.b32.xlu1 %v5504_v9, %s5327_s18 }
 0x116   : > { %591 = vrot.lane.b32.xlu0 %v5498_v8, %s5329_s20  ;;  %557 = vrot.lane.b32.xlu1 %v5504_v9, %s5326_s17 }
 0x11a   : > { %575 = vrot.lane.b32.xlu0 %v5498_v8, %s5330_s21  ;;  %623 = vrot.lane.b32.xlu1 %v5498_v8, %s5331_s22 }
 0x11e   : > { %589 = vrot.lane.b32.xlu0 %v5504_v9, %s5329_s20  ;;  %541 = vrot.lane.b32.xlu1 %v5504_v9, %s5328_s19 }
 0x122   : > { %571 = vrot.lane.b32.xlu0 %v5478_v6, %s5330_s21  ;;  %619 = vrot.lane.b32.xlu1 %v5478_v6, %s5331_s22 }
 0x126   : > { %573 = vrot.lane.b32.xlu0 %v5504_v9, %s5330_s21  ;;  %621 = vrot.lane.b32.xlu1 %v5504_v9, %s5331_s22 }
 0x12a   : > { %569 = vrot.lane.b32.xlu0 %v5488_v7, %s5330_s21  ;;  %617 = vrot.lane.b32.xlu1 %v5488_v7, %s5331_s22 }
 0x12e   : > { %635 = vrot.lane.b32.xlu0 %v5498_v8, %s5332_s25  ;;  %633 = vrot.lane.b32.xlu1 %v5504_v9, %s5332_s25 }
 0x132   : > { %631 = vrot.lane.b32.xlu0 %v5478_v6, %s5332_s25  ;;  %629 = vrot.lane.b32.xlu1 %v5488_v7, %s5332_s25 }
 0x136   : > { %607 = vrot.lane.b32.xlu0 %v5498_v8, %s5333_s26  ;;  %605 = vrot.lane.b32.xlu1 %v5504_v9, %s5333_s26 }
 0x13a   : > { %603 = vrot.lane.b32.xlu0 %v5478_v6, %s5333_s26  ;;  %601 = vrot.lane.b32.xlu1 %v5488_v7, %s5333_s26 }
 0x13e   : > { %659 = vperm.xlu0 %5160, %v5553_v11   ;;  %664 = vperm.xlu1 %5161, %v5555_v12  }
 0x142   : > { %669 = vperm.xlu0 %5160, %v5559_v14  }
 0x146   : > { %674 = vperm.xlu0 %5160, %v5562_v15  }
 0x170   : > { %v556_v16 = vpop.permute.xlu1 %555  ;;  %v644_v17 = vpop.permute.xlu0 %643 }
 0x174   : > { %v540_v18 = vpop.permute.xlu1 %539  ;;  %v588_v19 = vpop.permute.xlu0 %587 }
 0x178   : > { %v554_v21 = vpop.permute.xlu1 %553  ;;  %v642_v22 = vpop.permute.xlu0 %641 }
 0x17c   : > { %v538_v24 = vpop.permute.xlu1 %537  ;;  %v586_v25 = vpop.permute.xlu0 %585 }
 0x180   : > { %v544_v27 = vpop.permute.xlu1 %543  ;;  %v648_v28 = vpop.permute.xlu0 %647 }
 0x181   : > { %4762 = vmatprep.subr.mxu1 %v648_v28 }
 0x184   : > { %v560_v30 = vpop.permute.xlu0 %559  ;;  %v646_v31 = vpop.permute.xlu1 %645 }
 0x185   : > { %4763 = vmatpush3.msk.msra.mxu1 %vm5568_vm1, %v560_v30 }
 0x186   : > { %4764 = vmatprep.subr.mxu1 %v646_v31 }
 0x188   : > { %v592_v32 = vpop.permute.xlu0 %591  ;;  %v558_v33 = vpop.permute.xlu1 %557 }
 0x189   : > { %4765 = vmatpush3.msk.msra.mxu1 %vm5568_vm1, %v558_v33 }
 0x18a   : > { %4766 = vmatprep.subr.mxu1 %v644_v17 }
 0x18b   : > { %4767 = vmatpush3.msk.msra.mxu1 %vm5568_vm1, %v556_v16 }
 0x18c   : > { %v576_v35 = vpop.permute.xlu0 %575  ;;  %4768 = vmatprep.subr.mxu1 %v642_v22  ;;  %v624_v36 = vpop.permute.xlu1 %623 }
 0x18d   : > { %4769 = vmatpush3.msk.msra.mxu1 %vm5568_vm1, %v554_v21 }
 0x18e   : > { %4770 = vmatprep.subr.msk.mxu1 %vm5568_vm1, %v592_v32 }
 0x18f   : > { %4771 = vmatpush3.msk.msra.mxu1 %vm5578_vm2, %v544_v27 }
 0x190   : > { %v590_v37 = vpop.permute.xlu0 %589  ;;  %v542_v38 = vpop.permute.xlu1 %541 }
 0x191   : > { %4772 = vmatprep.subr.msk.mxu1 %vm5568_vm1, %v590_v37 }
 0x192   : > { %4773 = vmatpush3.msk.msra.mxu1 %vm5578_vm2, %v542_v38 }
 0x193   : > { %4774 = vmatprep.subr.msk.mxu1 %vm5568_vm1, %v588_v19 }
 0x194   : > { %v572_v39 = vpop.permute.xlu0 %571  ;;  %4775 = vmatpush3.msk.msra.mxu1 %vm5578_vm2, %v540_v18  ;;  %v620_v40 = vpop.permute.xlu1 %619 }
 0x195   : > { %4776 = vmatprep.subr.msk.mxu1 %vm5568_vm1, %v586_v25 }
 0x196   : > { %4777 = vmatpush3.msk.msra.mxu1 %vm5578_vm2, %v538_v24 }
 0x197   : > { %4778 = vmatprep.subr.msk.mxu1 %vm5578_vm2, %v576_v35 }
 0x198   : > { %v574_v41 = vpop.permute.xlu0 %573  ;;  %4779 = vmatpush3.msra.mxu1 %v624_v36  ;;  %v622_v42 = vpop.permute.xlu1 %621 }
 0x199   : > { %4780 = vmatprep.subr.msk.mxu1 %vm5578_vm2, %v574_v41  ;;  %v5335_v41 = vmov 1  }
 0x19a   : > { %4781 = vmatpush3.msra.mxu1 %v622_v42  ;;  %5162 = vset.pattern.permute.xlu0 %v5335_v41 }
 0x19b   : > { %4782 = vmatprep.subr.msk.mxu1 %vm5578_vm2, %v572_v39  ;;  %5163 = vset.pattern.permute.xlu1 %v5335_v41 }
 0x19c   : > { %v570_v43 = vpop.permute.xlu0 %569  ;;  %4783 = vmatpush3.msra.mxu1 %v620_v40  ;;  %v618_v44 = vpop.permute.xlu1 %617 }
 0x19d   : > { %4784 = vmatprep.subr.msk.mxu1 %vm5578_vm2, %v570_v43 }
 0x19e   : > { %4785 = vmatpush3.msra.mxu1 %v618_v44 }
 0x1a0   : > { %v636_v45 = vpop.permute.xlu0 %635  ;;  %v634_v46 = vpop.permute.xlu1 %633 }
 0x1a1   : > { %4786 = vmatprep.subr.mxu1 %v636_v45 }
 0x1a2   : > { %4787 = vmatpush3.msk.msra.mxu1 %vm5568_vm1, %v5498_v8 }
 0x1a3   : > { %4788 = vmatprep.subr.mxu1 %v634_v46 }
 0x1a4   : > { %v632_v47 = vpop.permute.xlu0 %631  ;;  %4789 = vmatpush3.msk.msra.mxu1 %vm5568_vm1, %v5504_v9  ;;  %v630_v48 = vpop.permute.xlu1 %629 }
 0x1a5   : > { %4790 = vmatprep.subr.mxu1 %v632_v47 }
 0x1a6   : > { %4791 = vmatpush3.msk.msra.mxu1 %vm5568_vm1, %v5478_v6 }
 0x1a7   : > { %4792 = vmatprep.subr.mxu1 %v630_v48 }
 0x1a8   : > { %v608_v51 = vpop.permute.xlu0 %607  ;;  %4793 = vmatpush3.msk.msra.mxu1 %vm5568_vm1, %v5488_v7  ;;  %v606_v52 = vpop.permute.xlu1 %605 }
 0x1a9   : > { %755 = vmatmul.mubr.f32.vlgmr.msra.gmra.mxu1 %v517_v49  ;;  %4988 = vmatprep.subr.msk.mxu1 %vm5578_vm2, %v608_v51 }
 0x1aa   : > { %4989 = vmatpush3.msk.msra.mxu1 %vm5578_vm2, %v608_v51  ;;  %759 = vmatprep.mubr.f32.mxu1 %v521_v50 }
 0x1ab   : > { %4990 = vmatprep.subr.msk.mxu1 %vm5578_vm2, %v606_v52 }
 0x1ac   : > { %v604_v55 = vpop.permute.xlu0 %603  ;;  %4991 = vmatpush3.msk.msra.mxu1 %vm5578_vm2, %v606_v52  ;;  %v602_v56 = vpop.permute.xlu1 %601 }
 0x1ad   : > { %760 = vmatmul.mubr.f32.gmra.mxu1 %v520_v53  ;;  %4992 = vmatprep.subr.msk.mxu1 %vm5578_vm2, %v604_v55 }
 0x1ae   : > { %4993 = vmatpush3.msk.msra.mxu1 %vm5578_vm2, %v604_v55  ;;  %764 = vmatprep.mubr.f32.mxu1 %v524_v54 }
 0x1af   : > { %4994 = vmatprep.subr.msk.mxu1 %vm5578_vm2, %v602_v56 }
 0x1b0   : > { %4995 = vmatpush3.msk.msra.mxu1 %vm5578_vm2, %v602_v56 }
 0x1b1   : > { %765 = vmatmul.mubr.f32.gmra.mxu1 %v523_v57 }
 0x1b2   : > { %769 = vmatprep.mubr.f32.mxu1 %v527_v58 }
 0x1b5   : > { %770 = vmatmul.mubr.f32.gmra.mxu1 %v526_v59 }
 0x1b6   : > { %4996 = vmatprep.mubr.msk.f32.mxu1 %vm677_vm3, %v519_v60 }
 0x1b9   : > { %4997 = vmatmul.mubr.msk.f32.vlgmr.msra.gmra.mxu1 %vm677_vm3, %v522_v61  ;;  %v660_v3 = vpop.permute.xlu0 %659  ;;  %v665_v9 = vpop.permute.xlu1 %664 }
 0x1ba   : > { %4999 = vmatprep.mubr.msk.f32.mxu1 %vm677_vm3, %v525_v62 }
 0x1bd   : > { %5000 = vmatmul.mubr.msk.f32.gmra.mxu1 %vm677_vm3, %v528_v63  ;;  %v670_v7 = vpop.permute.xlu0 %669 }
 0x1c1   : > { %v675_v19 = vpop.permute.xlu0 %674 }
 0x269   : > { %v4794_v0 = vpop.f32.mrf.mxu1 }
 0x26b   : > { %v4795_v1 = vpop.f32.mrf.mxu1 }
 0x26c   : > { %v4796_v13 = vadd.f32 %v4795_v1, %v4794_v0 }
 0x26d   : > { %v4797_v2 = vpop.f32.mrf.mxu1 }
 0x26e   : > { %v757_v21 = vadd.f32 %v4796_v13, %v660_v3 }
 0x26f   : > { %v4798_v4 = vpop.f32.mrf.mxu1 }
 0x270   : > { %v4799_v8 = vadd.f32 %v4798_v4, %v4797_v2 }
 0x271   : > { %v4800_v5 = vpop.f32.mrf.mxu1 }
 0x272   : > { %v762_v17 = vadd.f32 %v4799_v8, %v665_v9 }
 0x273   : > { %v4801_v6 = vpop.f32.mrf.mxu1 }
 0x274   : > { %v4802_v22 = vadd.f32 %v4801_v6, %v4800_v5 }
 0x275   : > { %v4803_v10 = vpop.f32.mrf.mxu1 }
 0x276   : > { %v767_v30 = vadd.f32 %v4802_v22, %v670_v7  ;;  %v988_v22 = vld [vmem:[%s8669_s3 + $0x30] sm:$0xff] }
 0x277   : > { %v4804_v16 = vpop.f32.mrf.mxu1 }
 0x278   : > { %v4805_v18 = vadd.f32 %v4804_v16, %v4803_v10 }
 0x279   : > { %v4998_v20 = vpop.f32.mrf.mxu1 }
 0x27a   : > { %v847_v24 = vadd.f32 %v4998_v20, %v762_v17  ;;  %v772_v26 = vadd.f32 %v4805_v18, %v675_v19 }
 0x27b   : > { %v841_v25 = vpop.f32.mrf.mxu1 }
 0x27c   : > { %v842_v27 = vadd.f32 %v841_v25, %v757_v21  ;;  %v862_v33 = vsel %vm860_vm4, %v847_v24, 0.0  ;;  %v989_v21 = vld [vmem:[%s8669_s3 + $0x38] sm:$0xff]  ;;  %v986_v25 = vld [vmem:[%s8669_s3 + $0x20] sm:$0xff] }
 0x27d   : > { %v5001_v28 = vpop.f32.mrf.mxu1  ;;  %5002 = vmatprep.subr.mxu0 %v989_v21 }
 0x27e   : > { %v857_v31 = vadd.f32 %v5001_v28, %v772_v26  ;;  %v861_v32 = vsel %vm860_vm4, %v842_v27, 0.0  ;;  %5003 = vmatpush3.msra.mxu0 %v989_v21  ;;  %v985_v26 = vld [vmem:[%s8669_s3 + $0x18] sm:$0xff]  ;;  %v984_v28 = vld [vmem:[%s8669_s3 + $0x10] sm:$0xff] }
 0x27f   : > { %v851_v35 = vpop.f32.mrf.mxu1  ;;  %v863_v36 = vadd.f32 %v862_v33, %v861_v32  ;;  %5004 = vmatprep.subr.mxu0 %v988_v22  ;;  %v1089_v21 = vld [vmem:[%s8672_s6 + $0x70] sm:$0xff] }
 0x280   : > { %v852_v37 = vadd.f32 %v851_v35, %v767_v30  ;;  %v899_v39 = vsel %vm860_vm4, %v857_v31, 0.0  ;;  %5005 = vmatpush3.msra.mxu0 %v988_v22  ;;  %v983_v30 = vld [vmem:[%s8669_s3 + $0x8] sm:$0xff]  ;;  %5032 = vmatprep.mubr.msk.f32.mxu1 %vm677_vm3, %v1089_v21  ;;  %v5337_v22 = vmov 3  }
 0x281   : > { %864 = vadd.xlane.f32.xlu1 %v863_v36 }
 0x282   : > { %v898_v38 = vsel %vm860_vm4, %v852_v37, 0.0 }
 0x283   : > { %v900_v40 = vadd.f32 %v899_v39, %v898_v38 }
 0x285   : > { %901 = vadd.xlane.f32.xlu1 %v900_v40 }
 0x30a   : > { %v865_v42 = vpop.xlane.xlu1 %864 }
 0x30b   : > { %v866_v43 = vrot.slane %v865_v42, 4 }
 0x30d   : > { %v867_v44 = vadd.f32 %v866_v43, %v865_v42 }
 0x30e   : > { %v902_v58 = vpop.xlane.xlu1 %901 }
 0x30f   : > { %v868_v45 = vrot.slane %v867_v44, 2  ;;  %v903_v59 = vrot.slane %v902_v58, 4 }
 0x311   : > { %v869_v46 = vadd.f32 %v868_v45, %v867_v44  ;;  %v904_v60 = vadd.f32 %v903_v59, %v902_v58 }
 0x313   : > { %v870_v47 = vrot.slane %v869_v46, 1  ;;  %v905_v62 = vrot.slane %v904_v60, 2 }
 0x315   : > { %v871_v48 = vadd.f32 %v870_v47, %v869_v46  ;;  %v906_v1 = vadd.f32 %v905_v62, %v904_v60 }
 0x317   : > { %5060 = vpush %v871_v48  ;;  %v907_v4 = vrot.slane %v906_v1, 1 }
 0x319   : > { %v908_v7 = vadd.f32 %v907_v4, %v906_v1 }
 0x348   : > { %s5061_s27 = spop %5060 }
 0x349   : > { %v873_v49 = vstv %s5061_s27  ;;  %s4754_s27 = sshll.u32 %s9212_s12, 6 }
 0x34a   : > { %v875_v50 = vmul.f32 0.0009765625, %v873_v49  ;;  %s7184_s10 = scalar_lea.vmem %s8667_s1, %s4754_s27 }
 0x34c   : > { %v5679_v51 = vsub.f32 %v842_v27, %v875_v50  ;;  %v5681_v52 = vsub.f32 %v847_v24, %v875_v50  ;;  %v987_v24 = vld [vmem:[%s8669_s3 + $0x28] sm:$0xff]  ;;  %v5336_v27 = vmov 2  }
 0x34d   : > { %5006 = vmatprep.subr.mxu0 %v987_v24 }
 0x34e   : > { %v878_v53 = vmul.f32 %v5679_v51, %v5679_v51  ;;  %v879_v54 = vmul.f32 %v5681_v52, %v5681_v52  ;;  %5007 = vmatpush3.msra.mxu0 %v987_v24 }
 0x34f   : > { %5008 = vmatprep.subr.mxu0 %v986_v25 }
 0x350   : > { %v880_v55 = vsel %vm860_vm4, %v878_v53, 0.0  ;;  %v881_v56 = vsel %vm860_vm4, %v879_v54, 0.0  ;;  %5009 = vmatpush3.msra.mxu0 %v986_v25 }
 0x351   : > { %v882_v57 = vadd.f32 %v881_v56, %v880_v55  ;;  %5010 = vmatprep.subr.mxu0 %v985_v26 }
 0x352   : > { %5011 = vmatpush3.msra.mxu0 %v985_v26 }
 0x353   : > { %883 = vadd.xlane.f32.xlu0 %v882_v57  ;;  %5012 = vmatprep.subr.mxu0 %v984_v28 }
 0x354   : > { %5013 = vmatpush3.msra.mxu0 %v984_v28 }
 0x355   : > { %5014 = vmatprep.subr.mxu0 %v983_v30 }
 0x356   : > { %5015 = vmatpush3.msra.mxu0 %v983_v30 }
 0x369   : > { %935 = vperm.xlu0 %5162, %v5553_v11  }
 0x36d   : > { %5168 = vset.pattern.permute.xlu0 %v5337_v22 }
 0x3dc   : > { %v884_v61 = vpop.xlane.xlu0 %883 }
 0x3dd   : > { %v885_v63 = vrot.slane %v884_v61, 4 }
 0x3df   : > { %v886_v0 = vadd.f32 %v885_v63, %v884_v61 }
 0x3e1   : > { %v887_v2 = vrot.slane %v886_v0, 2 }
 0x3e3   : > { %v888_v3 = vadd.f32 %v887_v2, %v886_v0 }
 0x3e5   : > { %v889_v5 = vrot.slane %v888_v3, 1 }
 0x3e7   : > { %v890_v6 = vadd.f32 %v889_v5, %v888_v3 }
 0x3e9   : > { %5062 = vpush %v890_v6 }
 0x3ea   : > { %5064 = vpush %v908_v7 }
 0x41a   : > { %s5690_s28 = spop %5062 }
 0x41b   : > { %s5065_s29 = spop %5064  ;;  %v892_v32 = vstv %s5690_s28 }
 0x41c   : > { %v910_v8 = vstv %s5065_s29  ;;  %v893_v33 = vmul.f32 0.0009765625, %v892_v32 }
 0x41d   : > { %v911_v9 = vmul.f32 0.0009765625, %v910_v8 }
 0x41e   : > { %v894_v35 = vadd.f32 1e-05, %v893_v33 }
 0x41f   : > { %v5692_v10 = vsub.f32 %v852_v37, %v911_v9  ;;  %v5694_v13 = vsub.f32 %v857_v31, %v911_v9  ;;  %v982_v31 = vld [vmem:[%s8669_s3] sm:$0xff] }
 0x420   : > { %5016 = vmatprep.subr.mxu0 %v982_v31  ;;  %5195 = vrsqrt.f32 %v894_v35 }
 0x421   : > { %v914_v16 = vmul.f32 %v5692_v10, %v5692_v10  ;;  %v915_v17 = vmul.f32 %v5694_v13, %v5694_v13  ;;  %5017 = vmatpush3.msra.mxu0 %v982_v31 }
 0x423   : > { %v916_v18 = vsel %vm860_vm4, %v914_v16, 0.0  ;;  %v917_v19 = vsel %vm860_vm4, %v915_v17, 0.0 }
 0x424   : > { %v918_v20 = vadd.f32 %v917_v19, %v916_v18 }
 0x426   : > { %919 = vadd.xlane.f32.xlu1 %v918_v20  ;;  %v1088_v20 = vld [vmem:[%s8672_s6 + $0x68] sm:$0xff] }
 0x42d   : > { %v5196_v36 = vpop.eup %5195 }
 0x42e   : > { %v896_v39 = vmul.f32 %v5196_v36, %v5679_v51  ;;  %v897_v47 = vmul.f32 %v5196_v36, %v5681_v52 }
 0x437   : > { %939 = vperm.xlu1 %5163, %v5555_v12  }
 0x43b   : > { %5164 = vset.pattern.permute.xlu1 %v5336_v27 }
 0x43c   : > { %955 = vperm.xlu1 %5164, %v5553_v11  }
 0x440   : > { %959 = vperm.xlu1 %5164, %v5555_v12  }
 0x444   : > { %5165 = vset.pattern.permute.xlu1 %v5335_v41  ;;  %v936_v41 = vpop.permute.xlu0 %935 }
 0x445   : > { %943 = vperm.xlu1 %5165, %v5559_v14   ;;  %v950_v44 = vmul.f32 %v936_v41, %v896_v39 }
 0x449   : > { %947 = vperm.xlu1 %5165, %v5562_v15  }
 0x44d   : > { %5166 = vset.pattern.permute.xlu1 %v5336_v27 }
 0x44e   : > { %963 = vperm.xlu1 %5166, %v5559_v14  }
 0x452   : > { %967 = vperm.xlu1 %5166, %v5562_v15  }
 0x456   : > { %5167 = vset.pattern.permute.xlu1 %v5337_v22 }
 0x4af   : > { %v920_v37 = vpop.xlane.xlu1 %919 }
 0x4b0   : > { %v921_v38 = vrot.slane %v920_v37, 4 }
 0x4b2   : > { %v922_v40 = vadd.f32 %v921_v38, %v920_v37 }
 0x4b3   : > { %v940_v42 = vpop.permute.xlu1 %939 }
 0x4b4   : > { %v923_v43 = vrot.slane %v922_v40, 2  ;;  %v951_v50 = vmul.f32 %v940_v42, %v897_v47 }
 0x4b6   : > { %v924_v45 = vadd.f32 %v923_v43, %v922_v40 }
 0x4b7   : > { %v956_v46 = vpop.permute.xlu1 %955 }
 0x4b8   : > { %v970_v48 = vadd.f32 %v956_v46, %v950_v44  ;;  %v925_v49 = vrot.slane %v924_v45, 1 }
 0x4ba   : > { %v974_v53 = vmul.f32 0.2, %v970_v48  ;;  %v926_v54 = vadd.f32 %v925_v49, %v924_v45 }
 0x4bb   : > { %v960_v55 = vpop.permute.xlu1 %959 }
 0x4bc   : > { %v978_v56 = vmax.f32 %v970_v48, %v974_v53  ;;  %v971_v57 = vadd.f32 %v960_v55, %v951_v50  ;;  %5066 = vpush %v926_v54  ;;  %v1087_v53 = vld [vmem:[%s8672_s6 + $0x60] sm:$0xff] }
 0x4bd   : > { %v1091_v54 = vld [vmem:[%s8672_s6 + $0x80] sm:$0xff] }
 0x4be   : > { %v975_v58 = vmul.f32 0.2, %v971_v57  ;;  %5018 = vmatprep.mubr.msk.f32.mxu0 %vm860_vm4, %v978_v56 }
 0x4c0   : > { %v979_v51 = vmax.f32 %v971_v57, %v975_v58  ;;  %v944_v52 = vpop.permute.xlu1 %943  ;;  %v1090_v57 = vld [vmem:[%s8672_s6 + $0x78] sm:$0xff] }
 0x4c2   : > { %5019 = vmatmul.mubr.msk.f32.vlgmr.msra.gmra.mxu0 %vm860_vm4, %v979_v51 }
 0x4c4   : > { %v948_v62 = vpop.permute.xlu1 %947 }
 0x4c9   : > { %v964_v63 = vpop.permute.xlu1 %963 }
 0x4cd   : > { %v968_v5 = vpop.permute.xlu1 %967 }
 0x4ed   : > { %s5067_s28 = spop %5066 }
 0x4ee   : > { %v928_v59 = vstv %s5067_s28 }
 0x4ef   : > { %v929_v60 = vmul.f32 0.0009765625, %v928_v59  ;;  %v1093_v59 = vld [vmem:[%s8672_s6 + $0x90] sm:$0xff] }
 0x4f1   : > { %v930_v61 = vadd.f32 1e-05, %v929_v60  ;;  %v1092_v60 = vld [vmem:[%s8672_s6 + $0x88] sm:$0xff] }
 0x4f3   : > { %5197 = vrsqrt.f32 %v930_v61  ;;  %v1097_v61 = vld [vmem:[%s8672_s6 + $0xb0] sm:$0xff] }
 0x500   : > { %v5198_v0 = vpop.eup %5197 }
 0x501   : > { %v932_v1 = vmul.f32 %v5198_v0, %v5692_v10  ;;  %v933_v2 = vmul.f32 %v5198_v0, %v5694_v13 }
 0x503   : > { %v952_v3 = vmul.f32 %v944_v52, %v932_v1  ;;  %v953_v4 = vmul.f32 %v948_v62, %v933_v2  ;;  %v1095_v52 = vld [vmem:[%s8672_s6 + $0xa0] sm:$0xff]  ;;  %v1096_v62 = vld [vmem:[%s8672_s6 + $0xa8] sm:$0xff] }
 0x505   : > { %v972_v6 = vadd.f32 %v964_v63, %v952_v3  ;;  %v973_v7 = vadd.f32 %v968_v5, %v953_v4  ;;  %v1098_v63 = vld [vmem:[%s8672_s6 + $0xb8] sm:$0xff] }
 0x507   : > { %v976_v8 = vmul.f32 0.2, %v972_v6  ;;  %v977_v9 = vmul.f32 0.2, %v973_v7 }
 0x509   : > { %v980_v16 = vmax.f32 %v972_v6, %v976_v8  ;;  %v981_v17 = vmax.f32 %v973_v7, %v977_v9 }
 0x50b   : > { %5021 = vmatprep.mubr.msk.f32.mxu0 %vm860_vm4, %v980_v16 }
 0x50c   : > { %5022 = vmatmul.mubr.msk.f32.gmra.mxu0 %vm860_vm4, %v981_v17 }
 0x50d   : > { %1315 = vmatprep.mubr.f32.mxu0 %v1088_v20 }
 0x582   : > { %v5743_v18 = vpop.f32.mrf.mxu0 }
 0x583   : > { %1125 = vrot.lane.b32.xlu0 %v5743_v18, %s5326_s17  ;;  %1213 = vrot.lane.b32.xlu1 %v5743_v18, %s5327_s18 }
 0x584   : > { %v5753_v10 = vpop.f32.mrf.mxu0 }
 0x587   : > { %1109 = vrot.lane.b32.xlu0 %v5743_v18, %s5328_s19  ;;  %1157 = vrot.lane.b32.xlu1 %v5743_v18, %s5329_s20 }
 0x58b   : > { %1123 = vrot.lane.b32.xlu0 %v5753_v10, %s5326_s17  ;;  %1211 = vrot.lane.b32.xlu1 %v5753_v10, %s5327_s18 }
 0x58f   : > { %1107 = vrot.lane.b32.xlu0 %v5753_v10, %s5328_s19  ;;  %1155 = vrot.lane.b32.xlu1 %v5753_v10, %s5329_s20 }
 0x5cc   : > { %v5763_v13 = vpop.f32.mrf.mxu0 }
 0x5cd   : > { %1129 = vrot.lane.b32.xlu0 %v5763_v13, %s5326_s17  ;;  %1217 = vrot.lane.b32.xlu1 %v5763_v13, %s5327_s18 }
 0x5ce   : > { %v5773_v19 = vpop.f32.mrf.mxu0 }
 0x5d1   : > { %1113 = vrot.lane.b32.xlu0 %v5763_v13, %s5328_s19  ;;  %1161 = vrot.lane.b32.xlu1 %v5763_v13, %s5329_s20 }
 0x5d5   : > { %1127 = vrot.lane.b32.xlu0 %v5773_v19, %s5326_s17  ;;  %1215 = vrot.lane.b32.xlu1 %v5773_v19, %s5327_s18 }
 0x5d9   : > { %1193 = vrot.lane.b32.xlu0 %v5763_v13, %s5331_s22  ;;  %1145 = vrot.lane.b32.xlu1 %v5763_v13, %s5330_s21 }
 0x5dd   : > { %1111 = vrot.lane.b32.xlu0 %v5773_v19, %s5328_s19  ;;  %1159 = vrot.lane.b32.xlu1 %v5773_v19, %s5329_s20 }
 0x5e1   : > { %1189 = vrot.lane.b32.xlu0 %v5743_v18, %s5331_s22  ;;  %1141 = vrot.lane.b32.xlu1 %v5743_v18, %s5330_s21 }
 0x5e5   : > { %1191 = vrot.lane.b32.xlu0 %v5773_v19, %s5331_s22  ;;  %1143 = vrot.lane.b32.xlu1 %v5773_v19, %s5330_s21 }
 0x5e9   : > { %1187 = vrot.lane.b32.xlu0 %v5753_v10, %s5331_s22  ;;  %1139 = vrot.lane.b32.xlu1 %v5753_v10, %s5330_s21  ;;  %s4755_s21 = sshll.u32 %s9212_s12, 3 }
 0x5ed   : > { %1203 = vrot.lane.b32.xlu0 %v5773_v19, %s5332_s25  ;;  %1205 = vrot.lane.b32.xlu1 %v5763_v13, %s5332_s25 }
 0x5f1   : > { %1199 = vrot.lane.b32.xlu0 %v5753_v10, %s5332_s25  ;;  %1201 = vrot.lane.b32.xlu1 %v5743_v18, %s5332_s25 }
 0x5f5   : > { %1175 = vrot.lane.b32.xlu0 %v5773_v19, %s5333_s26  ;;  %1177 = vrot.lane.b32.xlu1 %v5763_v13, %s5333_s26  ;;  %v1126_v24 = vpop.permute.xlu0 %1125  ;;  %v1214_v25 = vpop.permute.xlu1 %1213 }
 0x5f9   : > { %1171 = vrot.lane.b32.xlu0 %v5753_v10, %s5333_s26  ;;  %1173 = vrot.lane.b32.xlu1 %v5743_v18, %s5333_s26  ;;  %v1110_v26 = vpop.permute.xlu0 %1109  ;;  %v1158_v27 = vpop.permute.xlu1 %1157 }
 0x5fd   : > { %1228 = vperm.xlu0 %5168, %v5555_v12   ;;  %1224 = vperm.xlu1 %5167, %v5553_v11   ;;  %v1124_v28 = vpop.permute.xlu0 %1123  ;;  %v1212_v30 = vpop.permute.xlu1 %1211 }
 0x601   : > { %1232 = vperm.xlu0 %5168, %v5559_v14   ;;  %v1108_v31 = vpop.permute.xlu0 %1107  ;;  %v1156_v32 = vpop.permute.xlu1 %1155 }
 0x605   : > { %1236 = vperm.xlu0 %5168, %v5562_v15  }
 0x63f   : > { %v1130_v33 = vpop.permute.xlu0 %1129  ;;  %v1218_v35 = vpop.permute.xlu1 %1217 }
 0x640   : > { %4826 = vmatprep.subr.mxu0 %v1218_v35 }
 0x641   : > { %4827 = vmatpush3.msk.msra.mxu0 %vm5568_vm1, %v1130_v33 }
 0x643   : > { %v1114_v12 = vpop.permute.xlu0 %1113  ;;  %v1162_v36 = vpop.permute.xlu1 %1161 }
 0x647   : > { %v1128_v37 = vpop.permute.xlu0 %1127  ;;  %v1216_v14 = vpop.permute.xlu1 %1215 }
 0x648   : > { %4828 = vmatprep.subr.mxu0 %v1216_v14 }
 0x649   : > { %4829 = vmatpush3.msk.msra.mxu0 %vm5568_vm1, %v1128_v37 }
 0x64a   : > { %4830 = vmatprep.subr.mxu0 %v1214_v25 }
 0x64b   : > { %v1194_v15 = vpop.permute.xlu0 %1193  ;;  %4831 = vmatpush3.msk.msra.mxu0 %vm5568_vm1, %v1126_v24  ;;  %v1146_v38 = vpop.permute.xlu1 %1145 }
 0x64c   : > { %4832 = vmatprep.subr.mxu0 %v1212_v30 }
 0x64d   : > { %4833 = vmatpush3.msk.msra.mxu0 %vm5568_vm1, %v1124_v28 }
 0x64e   : > { %4834 = vmatprep.subr.msk.mxu0 %vm5568_vm1, %v1162_v36 }
 0x64f   : > { %v1112_v39 = vpop.permute.xlu0 %1111  ;;  %4835 = vmatpush3.msk.msra.mxu0 %vm5578_vm2, %v1114_v12  ;;  %v1160_v40 = vpop.permute.xlu1 %1159 }
 0x650   : > { %4836 = vmatprep.subr.msk.mxu0 %vm5568_vm1, %v1160_v40 }
 0x651   : > { %4837 = vmatpush3.msk.msra.mxu0 %vm5578_vm2, %v1112_v39 }
 0x652   : > { %4838 = vmatprep.subr.msk.mxu0 %vm5568_vm1, %v1158_v27 }
 0x653   : > { %v1190_v41 = vpop.permute.xlu0 %1189  ;;  %4839 = vmatpush3.msk.msra.mxu0 %vm5578_vm2, %v1110_v26  ;;  %v1142_v42 = vpop.permute.xlu1 %1141 }
 0x654   : > { %4840 = vmatprep.subr.msk.mxu0 %vm5568_vm1, %v1156_v32 }
 0x655   : > { %4841 = vmatpush3.msk.msra.mxu0 %vm5578_vm2, %v1108_v31 }
 0x656   : > { %4842 = vmatprep.subr.msk.mxu0 %vm5578_vm2, %v1146_v38 }
 0x657   : > { %v1192_v43 = vpop.permute.xlu0 %1191  ;;  %4843 = vmatpush3.msra.mxu0 %v1194_v15  ;;  %v1144_v44 = vpop.permute.xlu1 %1143 }
 0x658   : > { %4844 = vmatprep.subr.msk.mxu0 %vm5578_vm2, %v1144_v44 }
 0x659   : > { %4845 = vmatpush3.msra.mxu0 %v1192_v43 }
 0x65a   : > { %4846 = vmatprep.subr.msk.mxu0 %vm5578_vm2, %v1142_v42 }
 0x65b   : > { %v1188_v45 = vpop.permute.xlu0 %1187  ;;  %4847 = vmatpush3.msra.mxu0 %v1190_v41  ;;  %v1140_v46 = vpop.permute.xlu1 %1139 }
 0x65c   : > { %4848 = vmatprep.subr.msk.mxu0 %vm5578_vm2, %v1140_v46 }
 0x65d   : > { %4849 = vmatpush3.msra.mxu0 %v1188_v45 }
 0x65f   : > { %v1204_v47 = vpop.permute.xlu0 %1203  ;;  %v1206_v48 = vpop.permute.xlu1 %1205 }
 0x660   : > { %4850 = vmatprep.subr.mxu0 %v1206_v48 }
 0x661   : > { %4851 = vmatpush3.msk.msra.mxu0 %vm5568_vm1, %v5763_v13 }
 0x662   : > { %4852 = vmatprep.subr.mxu0 %v1204_v47 }
 0x663   : > { %v1200_v49 = vpop.permute.xlu0 %1199  ;;  %4853 = vmatpush3.msk.msra.mxu0 %vm5568_vm1, %v5773_v19  ;;  %v1202_v50 = vpop.permute.xlu1 %1201 }
 0x664   : > { %4854 = vmatprep.subr.mxu0 %v1202_v50 }
 0x665   : > { %4855 = vmatpush3.msk.msra.mxu0 %vm5568_vm1, %v5743_v18 }
 0x666   : > { %4856 = vmatprep.subr.mxu0 %v1200_v49 }
 0x667   : > { %v1176_v55 = vpop.permute.xlu0 %1175  ;;  %4857 = vmatpush3.msk.msra.mxu0 %vm5568_vm1, %v5753_v10  ;;  %v1178_v56 = vpop.permute.xlu1 %1177 }
 0x668   : > { %1316 = vmatmul.mubr.f32.vlgmr.msra.gmra.mxu0 %v1087_v53  ;;  %5024 = vmatprep.subr.msk.mxu1 %vm5578_vm2, %v1178_v56 }
 0x669   : > { %5025 = vmatpush3.msk.msra.mxu1 %vm5578_vm2, %v1178_v56  ;;  %1320 = vmatprep.mubr.f32.mxu0 %v1091_v54  ;;  %v5339_v56 = vmov 5  }
 0x66a   : > { %5026 = vmatprep.subr.msk.mxu1 %vm5578_vm2, %v1176_v55  ;;  %5170 = vset.pattern.permute.xlu0 %v5339_v56 }
 0x66b   : > { %5027 = vmatpush3.msk.msra.mxu1 %vm5578_vm2, %v1176_v55  ;;  %v1174_v58 = vpop.permute.xlu1 %1173  ;;  %v1172_v51 = vpop.permute.xlu0 %1171  ;;  %v5338_v55 = vmov 4  }
 0x66c   : > { %1321 = vmatmul.mubr.f32.gmra.mxu0 %v1090_v57  ;;  %5028 = vmatprep.subr.msk.mxu1 %vm5578_vm2, %v1174_v58 }
 0x66d   : > { %5029 = vmatpush3.msk.msra.mxu1 %vm5578_vm2, %v1174_v58  ;;  %1325 = vmatprep.mubr.f32.mxu0 %v1094_v29  ;;  %v1592_v58 = vld [vmem:[%s8670_s4 + $0xb0] sm:$0xff] }
 0x66e   : > { %5030 = vmatprep.subr.msk.mxu1 %vm5578_vm2, %v1172_v51  ;;  %5169 = vset.pattern.permute.xlu1 %v5338_v55 }
 0x66f   : > { %5031 = vmatpush3.msk.msra.mxu1 %vm5578_vm2, %v1172_v51  ;;  %v1591_v51 = vld [vmem:[%s8670_s4 + $0xa8] sm:$0xff] }
 0x670   : > { %1326 = vmatmul.mubr.f32.gmra.mxu0 %v1093_v59  ;;  %5033 = vmatmul.mubr.msk.f32.vlgmr.msra.gmra.mxu1 %vm677_vm3, %v1092_v60  ;;  %v1589_v59 = vld [vmem:[%s8670_s4 + $0x98] sm:$0xff]  ;;  %v1588_v60 = vld [vmem:[%s8670_s4 + $0x90] sm:$0xff] }
 0x671   : > { %1330 = vmatprep.mubr.f32.mxu0 %v1097_v61  ;;  %5035 = vmatprep.mubr.msk.f32.mxu1 %vm677_vm3, %v1095_v52 }
 0x672   : > { %1622 = vmatprep.subr.mxu1 %v1592_v58 }
 0x673   : > { %1623 = vmatpush1.msra.mxu1 %v1591_v51 }
 0x674   : > { %1331 = vmatmul.mubr.f32.gmra.mxu0 %v1096_v62  ;;  %5036 = vmatmul.mubr.msk.f32.gmra.mxu1 %vm677_vm3, %v1098_v63 }
 0x675   : > { %1624 = vmatprep.subr.mxu1 %v1589_v59 }
 0x676   : > { %1625 = vmatpush1.msra.mxu1 %v1588_v60 }
 0x678   : > { %v1229_v1 = vpop.permute.xlu0 %1228  ;;  %v1225_v4 = vpop.permute.xlu1 %1224 }
 0x67c   : > { %v1233_v9 = vpop.permute.xlu0 %1232 }
 0x680   : > { %v1237_v32 = vpop.permute.xlu0 %1236 }
 0x728   : > { %v4858_v0 = vpop.f32.mrf.mxu0 }
 0x72a   : > { %v4859_v34 = vpop.f32.mrf.mxu0 }
 0x72b   : > { %v4860_v3 = vadd.f32 %v4859_v34, %v4858_v0 }
 0x72c   : > { %v4861_v2 = vpop.f32.mrf.mxu0 }
 0x72d   : > { %v1318_v16 = vadd.f32 %v4860_v3, %v1225_v4 }
 0x72e   : > { %v4862_v5 = vpop.f32.mrf.mxu0 }
 0x72f   : > { %v4863_v6 = vadd.f32 %v4862_v5, %v4861_v2 }
 0x730   : > { %v4864_v7 = vpop.f32.mrf.mxu0  ;;  %v5034_v8 = vpop.f32.mrf.mxu1 }
 0x731   : > { %v1323_v17 = vadd.f32 %v4863_v6, %v1229_v1 }
 0x732   : > { %v4865_v18 = vpop.f32.mrf.mxu0  ;;  %v1402_v10 = vpop.f32.mrf.mxu1 }
 0x733   : > { %v1408_v13 = vadd.f32 %v5034_v8, %v1323_v17  ;;  %v4866_v19 = vadd.f32 %v4865_v18, %v4864_v7  ;;  %v1403_v20 = vadd.f32 %v1402_v10, %v1318_v16 }
 0x734   : > { %v4867_v21 = vpop.f32.mrf.mxu0  ;;  %v5037_v22 = vpop.f32.mrf.mxu1 }
 0x735   : > { %v1328_v24 = vadd.f32 %v4866_v19, %v1233_v9  ;;  %v1421_v25 = vsel %vm860_vm4, %v1403_v20, 0.0  ;;  %v1422_v26 = vsel %vm860_vm4, %v1408_v13, 0.0  ;;  %v1586_v19 = vld [vmem:[%s8670_s4 + $0x80] sm:$0xff] }
 0x736   : > { %v4868_v27 = vpop.f32.mrf.mxu0  ;;  %v1412_v28 = vpop.f32.mrf.mxu1  ;;  %v1423_v30 = vadd.f32 %v1422_v26, %v1421_v25  ;;  %1626 = vmatprep.subr.mxu1 %v1586_v19  ;;  %v1580_v25 = vld [vmem:[%s8670_s4 + $0x50] sm:$0xff]  ;;  %v1590_v26 = vld [vmem:[%s8670_s4 + $0xa0] sm:$0xff] }
 0x737   : > { %v4869_v31 = vadd.f32 %v4868_v27, %v4867_v21  ;;  %v1413_v35 = vadd.f32 %v1412_v28, %v1328_v24  ;;  %v1583_v21 = vld [vmem:[%s8670_s4 + $0x68] sm:$0xff]  ;;  %v1582_v24 = vld [vmem:[%s8670_s4 + $0x60] sm:$0xff]  ;;  %v1577_v28 = vld [vmem:[%s8670_s4 + $0x38] sm:$0xff] }
 0x738   : > { %1424 = vadd.xlane.f32.xlu1 %v1423_v30  ;;  %v1579_v27 = vld [vmem:[%s8670_s4 + $0x48] sm:$0xff] }
 0x739   : > { %v1333_v33 = vadd.f32 %v4869_v31, %v1237_v32  ;;  %v1457_v36 = vsel %vm860_vm4, %v1413_v35, 0.0  ;;  %v1587_v30 = vld [vmem:[%s8670_s4 + $0x88] sm:$0xff]  ;;  %v1576_v31 = vld [vmem:[%s8670_s4 + $0x30] sm:$0xff] }
 0x73a   : > { %v5993_v32 = vld [vmem:[#allocation6] sm:$0xff] }
 0x73b   : > { %v1418_v12 = vadd.f32 %v5037_v22, %v1333_v33  ;;  %v1593_v22 = vld [vmem:[%s8670_s4 + $0xb8] sm:$0xff]  ;;  %v1574_v33 = vld [vmem:[%s8670_s4 + $0x20] sm:$0xff] }
 0x73c   : > { %5038 = vmatprep.subr.mxu0 %v1593_v22 }
 0x73d   : > { %v1458_v37 = vsel %vm860_vm4, %v1418_v12, 0.0  ;;  %5039 = vmatpush3.msra.mxu0 %v1593_v22 }
 0x73e   : > { %v1459_v14 = vadd.f32 %v1458_v37, %v1457_v36  ;;  %5040 = vmatprep.subr.mxu0 %v1590_v26  ;;  %v1571_v36 = vld [vmem:[%s8670_s4 + $0x8] sm:$0xff]  ;;  %v1581_v37 = vld [vmem:[%s8670_s4 + $0x58] sm:$0xff] }
 0x73f   : > { %5041 = vmatpush3.msra.mxu0 %v1590_v26 }
 0x740   : > { %1460 = vadd.xlane.f32.xlu1 %v1459_v14  ;;  %5042 = vmatprep.subr.mxu0 %v1587_v30  ;;  %v1570_v14 = vld [vmem:[%s8670_s4] sm:$0xff] }
 0x741   : > { %5043 = vmatpush3.msra.mxu0 %v1587_v30 }
 0x7c1   : > { %v1425_v15 = vpop.xlane.xlu1 %1424 }
 0x7c2   : > { %v1426_v38 = vrot.slane %v1425_v15, 4 }
 0x7c4   : > { %v1427_v39 = vadd.f32 %v1426_v38, %v1425_v15  ;;  %v6014_v15 = vld [vmem:[#allocation6 + $0x8] sm:$0xff]  ;;  %v1578_v38 = vld [vmem:[%s8670_s4 + $0x40] sm:$0xff] }
 0x7c6   : > { %v1428_v40 = vrot.slane %v1427_v39, 2 }
 0x7c8   : > { %v1429_v41 = vadd.f32 %v1428_v40, %v1427_v39  ;;  %v8676_v39 = vmov 0.0   ;;  %v1575_v40 = vld [vmem:[%s8670_s4 + $0x28] sm:$0xff] }
 0x7c9   : > { %v1461_v57 = vpop.xlane.xlu1 %1460  ;;  %1670 = vmatprep.mubr.f32.mxu1 %v8676_v39 }
 0x7ca   : > { %v1430_v42 = vrot.slane %v1429_v41, 1  ;;  %v1462_v29 = vrot.slane %v1461_v57, 4 }
 0x7cc   : > { %v1431_v43 = vadd.f32 %v1430_v42, %v1429_v41  ;;  %v1572_v41 = vld [vmem:[%s8670_s4 + $0x10] sm:$0xff]  ;;  %v6030_v42 = vld [vmem:[#allocation6 + $0x10] sm:$0xff] }
 0x7ce   : > { %5068 = vpush %v1431_v43  ;;  %v6036_v43 = vld [vmem:[#allocation6 + $0x18] sm:$0xff] }
 0x7ff   : > { %s5069_s14 = spop %5068 }
 0x800   : > { %v1433_v44 = vstv %s5069_s14  ;;  %s5343_s14 = smov 94  }
 0x801   : > { %v1434_v45 = vmul.f32 0.0009765625, %v1433_v44 }
 0x803   : > { %v5923_v46 = vsub.f32 %v1403_v20, %v1434_v45  ;;  %v5925_v47 = vsub.f32 %v1408_v13, %v1434_v45  ;;  %v1585_v20 = vld [vmem:[%s8670_s4 + $0x78] sm:$0xff] }
 0x804   : > { %1627 = vmatpush1.msra.mxu1 %v1585_v20 }
 0x805   : > { %v1437_v48 = vmul.f32 %v5923_v46, %v5923_v46  ;;  %v1438_v49 = vmul.f32 %v5925_v47, %v5925_v47  ;;  %1628 = vmatprep.subr.mxu1 %v1583_v21 }
 0x806   : > { %1629 = vmatpush1.msra.mxu1 %v1582_v24 }
 0x807   : > { %v1439_v50 = vsel %vm860_vm4, %v1437_v48, 0.0  ;;  %v1440_v53 = vsel %vm860_vm4, %v1438_v49, 0.0  ;;  %1630 = vmatprep.subr.mxu1 %v1580_v25 }
 0x808   : > { %v1441_v54 = vadd.f32 %v1440_v53, %v1439_v50  ;;  %1631 = vmatpush1.msra.mxu1 %v1579_v27 }
 0x809   : > { %1632 = vmatprep.subr.mxu1 %v1577_v28 }
 0x80a   : > { %1442 = vadd.xlane.f32.xlu0 %v1441_v54  ;;  %1633 = vmatpush1.msra.mxu1 %v1576_v31 }
 0x80b   : > { %1634 = vmatprep.subr.mxu1 %v1574_v33 }
 0x820   : > { %1514 = vperm.xlu0 %5170, %v5553_v11   ;;  %v1463_v11 = vadd.f32 %v1462_v29, %v1461_v57 }
 0x822   : > { %v1464_v52 = vrot.slane %v1463_v11, 2 }
 0x824   : > { %v1465_v0 = vadd.f32 %v1464_v52, %v1463_v11 }
 0x826   : > { %v1466_v2 = vrot.slane %v1465_v0, 1 }
 0x828   : > { %v1467_v5 = vadd.f32 %v1466_v2, %v1465_v0 }
 0x893   : > { %v1443_v61 = vpop.xlane.xlu0 %1442 }
 0x894   : > { %v1444_v62 = vrot.slane %v1443_v61, 4 }
 0x896   : > { %v1445_v63 = vadd.f32 %v1444_v62, %v1443_v61 }
 0x898   : > { %v1446_v34 = vrot.slane %v1445_v63, 2 }
 0x89a   : > { %v1447_v1 = vadd.f32 %v1446_v34, %v1445_v63 }
 0x89c   : > { %v1448_v3 = vrot.slane %v1447_v1, 1 }
 0x89e   : > { %v1449_v4 = vadd.f32 %v1448_v3, %v1447_v1 }
 0x8a0   : > { %5070 = vpush %v1449_v4 }
 0x8a1   : > { %5072 = vpush %v1467_v5 }
 0x8d1   : > { %s5948_s25 = spop %5070 }
 0x8d2   : > { %s5073_s29 = spop %5072  ;;  %v1451_v44 = vstv %s5948_s25 }
 0x8d3   : > { %v1469_v6 = vstv %s5073_s29  ;;  %v1452_v45 = vmul.f32 0.0009765625, %v1451_v44 }
 0x8d4   : > { %v1470_v7 = vmul.f32 0.0009765625, %v1469_v6 }
 0x8d5   : > { %v1453_v48 = vadd.f32 1e-05, %v1452_v45 }
 0x8d6   : > { %v5950_v8 = vsub.f32 %v1413_v35, %v1470_v7  ;;  %v5952_v9 = vsub.f32 %v1418_v12, %v1470_v7  ;;  %v1584_v35 = vld [vmem:[%s8670_s4 + $0x70] sm:$0xff]  ;;  %v1573_v12 = vld [vmem:[%s8670_s4 + $0x18] sm:$0xff] }
 0x8d7   : > { %5044 = vmatprep.subr.mxu0 %v1584_v35  ;;  %1635 = vmatpush1.msra.mxu1 %v1573_v12  ;;  %5199 = vrsqrt.f32 %v1453_v48 }
 0x8d8   : > { %v1473_v16 = vmul.f32 %v5950_v8, %v5950_v8  ;;  %v1474_v17 = vmul.f32 %v5952_v9, %v5952_v9  ;;  %5045 = vmatpush3.msra.mxu0 %v1584_v35  ;;  %1636 = vmatprep.subr.mxu1 %v1571_v36 }
 0x8d9   : > { %5046 = vmatprep.subr.mxu0 %v1581_v37  ;;  %1637 = vmatpush1.msra.mxu1 %v1570_v14 }
 0x8da   : > { %v1475_v18 = vsel %vm860_vm4, %v1473_v16, 0.0  ;;  %v1476_v10 = vsel %vm860_vm4, %v1474_v17, 0.0  ;;  %5047 = vmatpush3.msra.mxu0 %v1581_v37 }
 0x8db   : > { %v1477_v13 = vadd.f32 %v1476_v10, %v1475_v18  ;;  %5048 = vmatprep.subr.mxu0 %v1578_v38 }
 0x8dc   : > { %5049 = vmatpush3.msra.mxu0 %v1578_v38 }
 0x8dd   : > { %1478 = vadd.xlane.f32.xlu1 %v1477_v13  ;;  %5050 = vmatprep.subr.mxu0 %v1575_v40 }
 0x8de   : > { %5051 = vmatpush3.msra.mxu0 %v1575_v40 }
 0x8df   : > { %5052 = vmatprep.subr.mxu0 %v1572_v41 }
 0x8e0   : > { %5053 = vmatpush3.msra.mxu0 %v1572_v41 }
 0x8e4   : > { %v5200_v49 = vpop.eup %5199 }
 0x8e5   : > { %v1455_v57 = vmul.f32 %v5200_v49, %v5923_v46  ;;  %v1456_v61 = vmul.f32 %v5200_v49, %v5925_v47 }
 0x8ee   : > { %1494 = vperm.xlu1 %5169, %v5993_v32  }
 0x8f2   : > { %1498 = vperm.xlu1 %5169, %v6014_v15  }
 0x8f6   : > { %5171 = vset.pattern.permute.xlu1 %v5339_v56 }
 0x8f7   : > { %1518 = vperm.xlu1 %5171, %v6014_v15  }
 0x8fb   : > { %5172 = vset.pattern.permute.xlu1 %v5338_v55 }
 0x8fc   : > { %1502 = vperm.xlu1 %5172, %v6030_v42  }
 0x900   : > { %5173 = vset.pattern.permute.xlu1 %v5339_v56 }
 0x901   : > { %1522 = vperm.xlu1 %5173, %v6030_v42  }
 0x905   : > { %5174 = vset.pattern.permute.xlu1 %v5338_v55  ;;  %v1515_v55 = vpop.permute.xlu0 %1514 }
 0x906   : > { %1506 = vperm.xlu1 %5174, %v6036_v43  }
 0x90a   : > { %5175 = vset.pattern.permute.xlu1 %v5339_v56 }
 0x90b   : > { %1526 = vperm.xlu1 %5175, %v6036_v43  }
 0x966   : > { %v1479_v50 = vpop.xlane.xlu1 %1478 }
 0x967   : > { %v1480_v53 = vrot.slane %v1479_v50, 4 }
 0x969   : > { %v1481_v54 = vadd.f32 %v1480_v53, %v1479_v50 }
 0x96a   : > { %v1495_v29 = vpop.permute.xlu1 %1494 }
 0x96b   : > { %v1509_v58 = vmul.f32 %v1495_v29, %v1455_v57  ;;  %v1482_v51 = vrot.slane %v1481_v54, 2 }
 0x96d   : > { %v1529_v59 = vadd.f32 %v1515_v55, %v1509_v58  ;;  %v1483_v60 = vadd.f32 %v1482_v51, %v1481_v54 }
 0x96e   : > { %v1499_v11 = vpop.permute.xlu1 %1498 }
 0x96f   : > { %v1533_v56 = vmul.f32 0.2, %v1529_v59  ;;  %v1484_v52 = vrot.slane %v1483_v60, 1  ;;  %v1510_v63 = vmul.f32 %v1499_v11, %v1456_v61 }
 0x971   : > { %v1537_v62 = vmax.f32 %v1529_v59, %v1533_v56  ;;  %v1485_v0 = vadd.f32 %v1484_v52, %v1483_v60 }
 0x972   : > { %v1519_v34 = vpop.permute.xlu1 %1518 }
 0x973   : > { %v1530_v1 = vadd.f32 %v1519_v34, %v1510_v63  ;;  %5074 = vpush %v1485_v0  ;;  %4586 = vmatmul.mubr.msk.f32.vlgmr.msra.gmra.mxu1 %vm860_vm4, %v1537_v62  ;;  %5054 = vmatprep.mubr.msk.f32.mxu0 %vm860_vm4, %v1537_v62 }
 0x974   : > { %1676 = vmatprep.mubr.f32.mxu1 %v8676_v39 }
 0x975   : > { %v1534_v46 = vmul.f32 0.2, %v1530_v1 }
 0x977   : > { %v1538_v2 = vmax.f32 %v1530_v1, %v1534_v46  ;;  %v1503_v4 = vpop.permute.xlu1 %1502 }
 0x979   : > { %4587 = vmatmul.mubr.msk.f32.gmra.mxu1 %vm860_vm4, %v1538_v2  ;;  %5055 = vmatmul.mubr.msk.f32.vlgmr.msra.gmra.mxu0 %vm860_vm4, %v1538_v2 }
 0x97a   : > { %1682 = vmatprep.mubr.f32.mxu1 %v8676_v39 }
 0x97c   : > { %v1523_v6 = vpop.permute.xlu1 %1522 }
 0x981   : > { %v1507_v7 = vpop.permute.xlu1 %1506 }
 0x986   : > { %v1527_v10 = vpop.permute.xlu1 %1526 }
 0x9a4   : > { %s5075_s25 = spop %5074 }
 0x9a5   : > { %v1487_v47 = vstv %s5075_s25 }
 0x9a6   : > { %v1488_v3 = vmul.f32 0.0009765625, %v1487_v47 }
 0x9a8   : > { %v1489_v5 = vadd.f32 1e-05, %v1488_v3 }
 0x9aa   : > { %5201 = vrsqrt.f32 %v1489_v5 }
 0x9b7   : > { %v5202_v16 = vpop.eup %5201 }
 0x9b8   : > { %v1491_v17 = vmul.f32 %v5202_v16, %v5950_v8  ;;  %v1492_v18 = vmul.f32 %v5202_v16, %v5952_v9 }
 0x9ba   : > { %v1511_v13 = vmul.f32 %v1503_v4, %v1491_v17  ;;  %v1512_v19 = vmul.f32 %v1507_v7, %v1492_v18  ;;  %v1781_v7 = vld [vmem:[%s8672_s6 + $0xc8] sm:$0xff] }
 0x9bc   : > { %v1531_v20 = vadd.f32 %v1523_v6, %v1511_v13  ;;  %v1532_v21 = vadd.f32 %v1527_v10, %v1512_v19 }
 0x9be   : > { %v1535_v22 = vmul.f32 0.2, %v1531_v20  ;;  %v1536_v24 = vmul.f32 0.2, %v1532_v21 }
 0x9c0   : > { %v1539_v25 = vmax.f32 %v1531_v20, %v1535_v22  ;;  %v1540_v26 = vmax.f32 %v1532_v21, %v1536_v24  ;;  %v5344_v22 = vmov 6  }
 0x9c1   : > { %5177 = vset.pattern.permute.xlu0 %v5344_v22  ;;  %5176 = vset.pattern.permute.xlu1 %v5344_v22 }
 0x9c2   : > { %4588 = vmatmul.mubr.msk.f32.gmra.mxu1 %vm860_vm4, %v1539_v25  ;;  %5057 = vmatprep.mubr.msk.f32.mxu0 %vm860_vm4, %v1539_v25 }
 0x9c3   : > { %5058 = vmatmul.mubr.msk.f32.gmra.mxu0 %vm860_vm4, %v1540_v26  ;;  %1688 = vmatprep.mubr.f32.mxu1 %v8676_v39 }
 0x9c4   : > { %2361 = vmatprep.mubr.f32.mxu0 %v8676_v39 }
 0x9c6   : > { %4589 = vmatmul.mubr.msk.f32.gmra.mxu1 %vm860_vm4, %v1540_v26 }
 0x9c7   : > { %2272 = vmatprep.mubr.f32.mxu1 %v1781_v7 }
 0xa33   : > { %v6058_v8 = vpop.f32.mrf.mxu1 }
 0xa34   : > { %1861 = vrot.lane.b32.xlu0 %v6058_v8, %s5329_s20 }
 0xa35   : > { %v6092_v28 = vpop.f32.mrf.mxu1 }
 0xa38   : > { %1812 = vrot.lane.b32.xlu0 %v6058_v8, %s5328_s19 }
 0xa39   : > { %v6064_v9 = vpop.f32.mrf.mxu0  ;;  %v6094_v30 = vpop.f32.mrf.mxu1 }
 0xa3b   : > { %v6066_v27 = vpop.f32.mrf.mxu0  ;;  %v6120_v31 = vpop.f32.mrf.mxu1 }
 0xa3c   : > { %2057 = vrot.lane.b32.xlu0 %v6058_v8, %s5331_s22  ;;  %1865 = vrot.lane.b32.xlu1 %v6066_v27, %s5329_s20 }
 0xa40   : > { %2139 = vrot.lane.b32.xlu0 %v6058_v8, %s5341_s11  ;;  %1816 = vrot.lane.b32.xlu1 %v6066_v27, %s5328_s19 }
 0xa44   : > { %1959 = vrot.lane.b32.xlu0 %v6058_v8, %s5342_s13  ;;  %2061 = vrot.lane.b32.xlu1 %v6066_v27, %s5331_s22 }
 0xa48   : > { %1910 = vrot.lane.b32.xlu0 %v6058_v8, %s5333_s26  ;;  %2143 = vrot.lane.b32.xlu1 %v6066_v27, %s5341_s11 }
 0xa4c   : > { %1871 = vrot.lane.b32.xlu0 %v6064_v9, %s5329_s20  ;;  %1963 = vrot.lane.b32.xlu1 %v6066_v27, %s5342_s13 }
 0xa50   : > { %1822 = vrot.lane.b32.xlu0 %v6064_v9, %s5328_s19  ;;  %1914 = vrot.lane.b32.xlu1 %v6066_v27, %s5333_s26 }
 0xa54   : > { %2067 = vrot.lane.b32.xlu0 %v6064_v9, %s5331_s22  ;;  %1867 = vrot.lane.b32.xlu1 %v6094_v30, %s5329_s20 }
 0xa58   : > { %2149 = vrot.lane.b32.xlu0 %v6064_v9, %s5341_s11  ;;  %1818 = vrot.lane.b32.xlu1 %v6094_v30, %s5328_s19 }
 0xa5c   : > { %1969 = vrot.lane.b32.xlu0 %v6064_v9, %s5342_s13  ;;  %2063 = vrot.lane.b32.xlu1 %v6094_v30, %s5331_s22 }
 0xa60   : > { %1920 = vrot.lane.b32.xlu0 %v6064_v9, %s5333_s26  ;;  %2145 = vrot.lane.b32.xlu1 %v6094_v30, %s5341_s11 }
 0xa64   : > { %1863 = vrot.lane.b32.xlu0 %v6092_v28, %s5329_s20  ;;  %1965 = vrot.lane.b32.xlu1 %v6094_v30, %s5342_s13 }
 0xa68   : > { %1814 = vrot.lane.b32.xlu0 %v6092_v28, %s5328_s19  ;;  %1916 = vrot.lane.b32.xlu1 %v6094_v30, %s5333_s26 }
 0xa6c   : > { %2059 = vrot.lane.b32.xlu0 %v6092_v28, %s5331_s22  ;;  %1869 = vrot.lane.b32.xlu1 %v6120_v31, %s5329_s20 }
 0xa70   : > { %2141 = vrot.lane.b32.xlu0 %v6092_v28, %s5341_s11  ;;  %1820 = vrot.lane.b32.xlu1 %v6120_v31, %s5328_s19 }
 0xa74   : > { %1961 = vrot.lane.b32.xlu0 %v6092_v28, %s5342_s13  ;;  %2065 = vrot.lane.b32.xlu1 %v6120_v31, %s5331_s22 }
 0xa78   : > { %1912 = vrot.lane.b32.xlu0 %v6092_v28, %s5333_s26  ;;  %2147 = vrot.lane.b32.xlu1 %v6120_v31, %s5341_s11 }
 0xa7c   : > { %1967 = vrot.lane.b32.xlu1 %v6120_v31, %s5342_s13 }
 0xa80   : > { %1918 = vrot.lane.b32.xlu1 %v6120_v31, %s5333_s26 }
 0xa82   : > { %v6142_v33 = vpop.f32.mrf.mxu1 }
 0xa83   : > { %1873 = vrot.lane.b32.xlu0 %v6142_v33, %s5329_s20  ;;  %v5059_v35 = vpop.f32.mrf.mxu0 }
 0xa84   : > { %v6168_v36 = vpop.f32.mrf.mxu1 }
 0xa85   : > { %v6146_v12 = vpop.f32.mrf.mxu0 }
 0xa86   : > { %1877 = vrot.lane.b32.xlu1 %v6146_v12, %s5329_s20  ;;  %v6173_v37 = vpop.f32.mrf.mxu1 }
 0xa87   : > { %1824 = vrot.lane.b32.xlu0 %v6142_v33, %s5328_s19 }
 0xa88   : > { %v6213_v50 = vpop.f32.mrf.mxu1 }
 0xa8a   : > { %1828 = vrot.lane.b32.xlu1 %v6146_v12, %s5328_s19 }
 0xa8b   : > { %2069 = vrot.lane.b32.xlu0 %v6142_v33, %s5331_s22 }
 0xa8e   : > { %2073 = vrot.lane.b32.xlu1 %v6146_v12, %s5331_s22 }
 0xa8f   : > { %2151 = vrot.lane.b32.xlu0 %v6142_v33, %s5341_s11 }
 0xa92   : > { %2155 = vrot.lane.b32.xlu1 %v6146_v12, %s5341_s11 }
 0xa93   : > { %1971 = vrot.lane.b32.xlu0 %v6142_v33, %s5342_s13 }
 0xa96   : > { %1975 = vrot.lane.b32.xlu1 %v6146_v12, %s5342_s13 }
 0xa97   : > { %1922 = vrot.lane.b32.xlu0 %v6142_v33, %s5333_s26 }
 0xa9a   : > { %1926 = vrot.lane.b32.xlu1 %v6146_v12, %s5333_s26 }
 0xa9b   : > { %1883 = vrot.lane.b32.xlu0 %v5059_v35, %s5329_s20 }
 0xa9e   : > { %1879 = vrot.lane.b32.xlu1 %v6173_v37, %s5329_s20 }
 0xa9f   : > { %1834 = vrot.lane.b32.xlu0 %v5059_v35, %s5328_s19 }
 0xaa2   : > { %1830 = vrot.lane.b32.xlu1 %v6173_v37, %s5328_s19 }
 0xaa3   : > { %2079 = vrot.lane.b32.xlu0 %v5059_v35, %s5331_s22 }
 0xaa6   : > { %v6181_v14 = vpop.permute.xlu0 %1861  ;;  %2075 = vrot.lane.b32.xlu1 %v6173_v37, %s5331_s22 }
 0xaa7   : > { %2161 = vrot.lane.b32.xlu0 %v5059_v35, %s5341_s11 }
 0xaaa   : > { %v6186_v38 = vpop.permute.xlu0 %1812  ;;  %2157 = vrot.lane.b32.xlu1 %v6173_v37, %s5341_s11 }
 0xaab   : > { %1981 = vrot.lane.b32.xlu0 %v5059_v35, %s5342_s13 }
 0xaae   : > { %v6191_v40 = vpop.permute.xlu0 %2057  ;;  %1977 = vrot.lane.b32.xlu1 %v6173_v37, %s5342_s13  ;;  %v6195_v41 = vpop.permute.xlu1 %1865 }
 0xaaf   : > { %1932 = vrot.lane.b32.xlu0 %v5059_v35, %s5333_s26 }
 0xab2   : > { %v6198_v44 = vpop.permute.xlu0 %2139  ;;  %1928 = vrot.lane.b32.xlu1 %v6173_v37, %s5333_s26  ;;  %v6202_v45 = vpop.permute.xlu1 %1816 }
 0xab3   : > { %2120 = vrot.lane.b32.xlu0 %v5059_v35, %s5327_s18 }
 0xab6   : > { %v6205_v48 = vpop.permute.xlu0 %1959  ;;  %2116 = vrot.lane.b32.xlu1 %v6173_v37, %s5327_s18  ;;  %v6209_v49 = vpop.permute.xlu1 %2061 }
 0xab7   : > { %8812 = vst [vmem:[#allocation9_spill] sm:$0xff] %v6205_v48  ;;  %1875 = vrot.lane.b32.xlu0 %v6168_v36, %s5329_s20  ;;  %v1546_v48 = vand.u32 15, %v5565_v23 }
 0xab9   : > { %vm6389_vm6 = vcmp.ge.s32.totalorder %v1546_v48, 1  ;;  %vm6424_vm9 = vcmp.le.s32.totalorder %v1546_v48, 14 }
 0xaba   : > { %v6215_v53 = vpop.permute.xlu0 %1910  ;;  %1881 = vrot.lane.b32.xlu1 %v6213_v50, %s5329_s20  ;;  %v6219_v54 = vpop.permute.xlu1 %2143 }
 0xabb   : > { %8813 = vst [vmem:[#allocation10_spill] sm:$0xff] %v6215_v53  ;;  %1826 = vrot.lane.b32.xlu0 %v6168_v36, %s5328_s19 }
 0xabe   : > { %v6223_v57 = vpop.permute.xlu0 %1871  ;;  %2030 = vrot.lane.b32.xlu1 %v5059_v35, %s5343_s14  ;;  %v6226_v29 = vpop.permute.xlu1 %1963 }
 0xabf   : > { %8814 = vst [vmem:[#allocation11_spill] sm:$0xff] %v6226_v29  ;;  %2071 = vrot.lane.b32.xlu0 %v6168_v36, %s5331_s22 }
 0xac2   : > { %v6230_v55 = vpop.permute.xlu0 %1822  ;;  %1832 = vrot.lane.b32.xlu1 %v6213_v50, %s5328_s19  ;;  %v6234_v58 = vpop.permute.xlu1 %1914 }
 0xac3   : > { %8815 = vst [vmem:[#allocation12_spill] sm:$0xff] %v6234_v58  ;;  %2153 = vrot.lane.b32.xlu0 %v6168_v36, %s5341_s11 }
 0xac6   : > { %v6238_v51 = vpop.permute.xlu0 %2067  ;;  %2114 = vrot.lane.b32.xlu1 %v6146_v12, %s5327_s18  ;;  %v6242_v59 = vpop.permute.xlu1 %1867 }
 0xac7   : > { %1973 = vrot.lane.b32.xlu0 %v6168_v36, %s5342_s13 }
 0xaca   : > { %v6246_v60 = vpop.permute.xlu0 %2149  ;;  %2077 = vrot.lane.b32.xlu1 %v6213_v50, %s5331_s22  ;;  %v6250_v11 = vpop.permute.xlu1 %1818 }
 0xacb   : > { %1924 = vrot.lane.b32.xlu0 %v6168_v36, %s5333_s26 }
 0xace   : > { %v6254_v56 = vpop.permute.xlu0 %1969  ;;  %2110 = vrot.lane.b32.xlu1 %v6142_v33, %s5327_s18  ;;  %v6258_v61 = vpop.permute.xlu1 %2063 }
 0xacf   : > { %8816 = vst [vmem:[#allocation13_spill] sm:$0xff] %v6254_v56  ;;  %2112 = vrot.lane.b32.xlu0 %v6168_v36, %s5327_s18 }
 0xad2   : > { %v6262_v52 = vpop.permute.xlu0 %1920  ;;  %2024 = vrot.lane.b32.xlu1 %v6146_v12, %s5343_s14  ;;  %v6266_v62 = vpop.permute.xlu1 %2145 }
 0xad3   : > { %8817 = vst [vmem:[#allocation14_spill] sm:$0xff] %v6262_v52  ;;  %2026 = vrot.lane.b32.xlu0 %v6173_v37, %s5343_s14 }
 0xad6   : > { %v6270_v63 = vpop.permute.xlu0 %1863  ;;  %2108 = vrot.lane.b32.xlu1 %v6064_v9, %s5327_s18  ;;  %v6274_v0 = vpop.permute.xlu1 %1965 }
 0xad7   : > { %8818 = vst [vmem:[#allocation15_spill] sm:$0xff] %v6274_v0  ;;  %2022 = vrot.lane.b32.xlu0 %v6168_v36, %s5343_s14  ;;  %v8831_v0 = vmov 0 }
 0xada   : > { %v6278_v34 = vpop.permute.xlu0 %1814  ;;  %2159 = vrot.lane.b32.xlu1 %v6213_v50, %s5341_s11  ;;  %v6282_v1 = vpop.permute.xlu1 %1916 }
 0xadb   : > { %8819 = vst [vmem:[#allocation16_spill] sm:$0xff] %v6282_v1  ;;  %2106 = vrot.lane.b32.xlu0 %v6120_v31, %s5327_s18 }
 0xade   : > { %2104 = vrot.lane.b32.xlu1 %v6094_v30, %s5327_s18  ;;  %v6288_v46 = vpop.permute.xlu1 %1869  ;;  %v6290_v2 = vpop.permute.xlu0 %2059 }
 0xadf   : > { %2020 = vrot.lane.b32.xlu0 %v6142_v33, %s5343_s14 }
 0xae2   : > { %1979 = vrot.lane.b32.xlu1 %v6213_v50, %s5342_s13  ;;  %v6296_v47 = vpop.permute.xlu1 %1820  ;;  %v6300_v3 = vpop.permute.xlu0 %2141 }
 0xae3   : > { %2016 = vrot.lane.b32.xlu0 %v6120_v31, %s5343_s14 }
 0xae6   : > { %2018 = vrot.lane.b32.xlu1 %v6064_v9, %s5343_s14  ;;  %v6304_v4 = vpop.permute.xlu1 %2065  ;;  %v6312_v6 = vpop.permute.xlu0 %1961 }
 0xae7   : > { %2100 = vrot.lane.b32.xlu0 %v6092_v28, %s5327_s18  ;;  %8820 = vst [vmem:[#allocation17_spill] sm:$0xff] %v6312_v6 }
 0xaea   : > { %1930 = vrot.lane.b32.xlu1 %v6213_v50, %s5333_s26  ;;  %v6310_v5 = vpop.permute.xlu1 %2147  ;;  %v6325_v17 = vpop.permute.xlu0 %1912 }
 0xaeb   : > { %2014 = vrot.lane.b32.xlu0 %v6094_v30, %s5343_s14  ;;  %8822 = vst [vmem:[#allocation19_spill] sm:$0xff] %v6325_v17 }
 0xaee   : > { %2102 = vrot.lane.b32.xlu1 %v6066_v27, %s5327_s18  ;;  %v6321_v16 = vpop.permute.xlu1 %1967 }
 0xaef   : > { %8821 = vst [vmem:[#allocation18_spill] sm:$0xff] %v6321_v16  ;;  %2028 = vrot.lane.b32.xlu0 %v6213_v50, %s5343_s14  ;;  %v8834_v16 = vmov 0 }
 0xaf0   : > { %v8835_v16 = vsel %vm6389_vm6, 4294967295, %v8834_v16 }
 0xaf1   : > { %8836 = vst [vmem:[#allocation29_spill] sm:$0xff] %v8835_v16  ;;  %v6892_v16 = vld [vmem:[#allocation4 + $0xe8] sm:$0xff] }
 0xaf2   : > { %2118 = vrot.lane.b32.xlu1 %v6213_v50, %s5327_s18  ;;  %v6331_v18 = vpop.permute.xlu1 %1918 }
 0xaf3   : > { %2010 = vrot.lane.b32.xlu0 %v6092_v28, %s5343_s14  ;;  %8823 = vst [vmem:[#allocation20_spill] sm:$0xff] %v6331_v18  ;;  %v1541_v18 = vadd.s32 128, %v5565_v23 }
 0xaf5   : > { %v1874_v10 = vpop.permute.xlu0 %1873 }
 0xaf6   : > { %2098 = vrot.lane.b32.xlu1 %v6058_v8, %s5327_s18 }
 0xaf7   : > { %2008 = vrot.lane.b32.xlu0 %v6058_v8, %s5343_s14 }
 0xaf8   : > { %v1878_v13 = vpop.permute.xlu1 %1877 }
 0xaf9   : > { %v6337_v19 = vpop.permute.xlu0 %1824 }
 0xafa   : > { %2012 = vrot.lane.b32.xlu1 %v6066_v27, %s5343_s14 }
 0xafb   : > { %2185 = vperm.xlu0 %5177, %v6014_v15  }
 0xafc   : > { %v6341_v20 = vpop.permute.xlu1 %1828 }
 0xafd   : > { %v6343_v21 = vpop.permute.xlu0 %2069 }
 0xafe   : > { %2181 = vperm.xlu1 %5176, %v5993_v32  }
 0xaff   : > { %2189 = vperm.xlu0 %5177, %v6030_v42  }
 0xb00   : > { %v6347_v24 = vpop.permute.xlu1 %2073 }
 0xb01   : > { %v6349_v25 = vpop.permute.xlu0 %2151 }
 0xb03   : > { %2193 = vperm.xlu0 %5177, %v6036_v43  }
 0xb04   : > { %v6352_v26 = vpop.permute.xlu1 %2155 }
 0xb05   : > { %v6354_v9 = vpop.permute.xlu0 %1971 }
 0xb06   : > { %8824 = vst [vmem:[#allocation21_spill] sm:$0xff] %v6354_v9 }
 0xb08   : > { %v6357_v27 = vpop.permute.xlu1 %1975 }
 0xb09   : > { %v6359_v35 = vpop.permute.xlu0 %1922 }
 0xb0a   : > { %8825 = vst [vmem:[#allocation22_spill] sm:$0xff] %v6359_v35 }
 0xb0c   : > { %v6361_v12 = vpop.permute.xlu1 %1926 }
 0xb0d   : > { %8826 = vst [vmem:[#allocation23_spill] sm:$0xff] %v6361_v12  ;;  %v1884_v15 = vpop.permute.xlu0 %1883  ;;  %v1553_v12 = vand.u32 15, %v1541_v18 }
 0xb0f   : > { %vm6385_vm5 = vcmp.ge.s32.totalorder %v1553_v12, 1  ;;  %vm6415_vm8 = vcmp.le.s32.totalorder %v1553_v12, 14 }
 0xb10   : > { %v1880_v32 = vpop.permute.xlu1 %1879  ;;  %v8832_v0 = vsel %vm6385_vm5, 4294967295, %v8831_v0 }
 0xb11   : > { %v1835_v7 = vpop.permute.xlu0 %1834  ;;  %8833 = vst [vmem:[#allocation28_spill] sm:$0xff] %v8832_v0  ;;  %v6910_v0 = vld [vmem:[#allocation4 + $0x238] sm:$0xff] }
 0xb14   : > { %v1831_v22 = vpop.permute.xlu1 %1830 }
 0xb15   : > { %v6363_v39 = vpop.permute.xlu0 %2079 }
 0xb18   : > { %v6365_v53 = vpop.permute.xlu1 %2075 }
 0xb19   : > { %v6367_v42 = vpop.permute.xlu0 %2161 }
 0xb1c   : > { %v6369_v17 = vpop.permute.xlu1 %2157 }
 0xb1d   : > { %v6371_v58 = vpop.permute.xlu0 %1981 }
 0xb20   : > { %v6373_v43 = vpop.permute.xlu1 %1977 }
 0xb21   : > { %v6375_v1 = vpop.permute.xlu0 %1932 }
 0xb22   : > { %8827 = vst [vmem:[#allocation24_spill] sm:$0xff] %v6375_v1 }
 0xb24   : > { %v6378_v52 = vpop.permute.xlu1 %1928 }
 0xb25   : > { %8828 = vst [vmem:[#allocation25_spill] sm:$0xff] %v6378_v52  ;;  %v6380_v35 = vpop.permute.xlu0 %2120 }
 0xb26   : > { %8829 = vst [vmem:[#allocation26_spill] sm:$0xff] %v6380_v35 }
 0xb28   : > { %v6383_v6 = vpop.permute.xlu1 %2116 }
 0xb29   : > { %8830 = vst [vmem:[#allocation27_spill] sm:$0xff] %v6383_v6  ;;  %v1876_v29 = vpop.permute.xlu0 %1875 }
 0xb2a   : > { %v1891_v23 = vsel %vm1885_vm7, %v1876_v29, %v1878_v13  ;;  %v1890_v6 = vsel %vm1885_vm7, %v1874_v10, %v1876_v29  ;;  %v8837_v29 = vmov 0 }
 0xb2b   : > { %v8838_v29 = vsel %vm6415_vm8, 4294967295, %v8837_v29 }
 0xb2c   : > { %v1882_v1 = vpop.permute.xlu1 %1881  ;;  %8839 = vst [vmem:[#allocation30_spill] sm:$0xff] %v8838_v29  ;;  %v6889_v29 = vld [vmem:[#allocation4 + $0x2f0] sm:$0xff] }
 0xb2d   : > { %v1892_v52 = vsel %vm1885_vm7, %v1880_v32, %v1882_v1  ;;  %v1827_v56 = vpop.permute.xlu0 %1826  ;;  %v1893_v18 = vsel %vm1885_vm7, %v1882_v1, %v1884_v15  ;;  %v1889_v1 = vsel %vm1885_vm7, %v6288_v46, %v6223_v57  ;;  %v8840_v57 = vmov 0 }
 0xb2e   : > { %4594 = vmatprep.subr.msk.mxu1 %vm6385_vm5, %v1893_v18  ;;  %v8841_v57 = vsel %vm6424_vm9, 4294967295, %v8840_v57  ;;  %v1841_v48 = vsel %vm1836_vm10, %v6337_v19, %v1827_v56  ;;  %v1840_v15 = vsel %vm1836_vm10, %v6296_v47, %v6230_v55  ;;  %v1837_v19 = vsel %vm1836_vm10, %v6186_v38, %v6278_v34  ;;  %v8846_v18 = vld [vmem:[#allocation15_spill] sm:$0xff] }
 0xb2f   : > { %4595 = vmatpush1.msk.msra.mxu1 %vm6389_vm6, %v1892_v52  ;;  %v1888_v52 = vsel %vm1885_vm7, %v6242_v59, %v6288_v46  ;;  %8842 = vst [vmem:[#allocation31_spill] sm:$0xff] %v8841_v57  ;;  %v1886_v59 = vsel %vm1885_vm7, %v6181_v14, %v6270_v63  ;;  %v1842_v14 = vsel %vm1836_vm10, %v1827_v56, %v6341_v20 }
 0xb30   : > { %4596 = vmatprep.subr.msk.mxu1 %vm6385_vm5, %v1891_v23  ;;  %v6403_v35 = vpop.permute.xlu1 %2030  ;;  %v1839_v20 = vsel %vm1836_vm10, %v6250_v11, %v6296_v47  ;;  %v1838_v56 = vsel %vm1836_vm10, %v6278_v34, %v6202_v45  ;;  %v8847_v23 = vld [vmem:[#allocation11_spill] sm:$0xff] }
 0xb31   : > { %v2072_v9 = vpop.permute.xlu0 %2071  ;;  %4597 = vmatpush1.msk.msra.mxu1 %vm6389_vm6, %v1890_v6  ;;  %v1887_v6 = vsel %vm1885_vm7, %v6270_v63, %v6195_v41 }
 0xb32   : > { %4598 = vmatprep.subr.msk.mxu1 %vm6385_vm5, %v1889_v1  ;;  %v2087_v38 = vsel %vm2081_vm11, %v2072_v9, %v6347_v24  ;;  %v2086_v32 = vsel %vm2081_vm11, %v6343_v21, %v2072_v9  ;;  %v2083_v24 = vsel %vm2081_vm11, %v6290_v2, %v6209_v49  ;;  %v2082_v21 = vsel %vm2081_vm11, %v6191_v40, %v6290_v2  ;;  %v8848_v1 = vld [vmem:[#allocation17_spill] sm:$0xff] }
 0xb33   : > { %4599 = vmatpush1.msk.msra.mxu1 %vm6389_vm6, %v1888_v52  ;;  %v2165_v2 = vsel %vm2163_vm12, %v6300_v3, %v6219_v54  ;;  %v1985_v52 = vsel %vm1983_vm13, %v8848_v1, %v8847_v23  ;;  %v1789_v23 = vld [vmem:[%s8672_s6 + $0x108] sm:$0xff] }
 0xb34   : > { %4600 = vmatprep.subr.msk.mxu1 %vm6385_vm5, %v1887_v6  ;;  %v1833_v46 = vpop.permute.xlu1 %1832  ;;  %v8849_v6 = vld [vmem:[#allocation9_spill] sm:$0xff] }
 0xb35   : > { %v1843_v10 = vsel %vm1836_vm10, %v1831_v22, %v1833_v46  ;;  %v6434_v13 = vpop.permute.xlu0 %2153  ;;  %4601 = vmatpush1.msk.msra.mxu1 %vm6389_vm6, %v1886_v59  ;;  %v1844_v41 = vsel %vm1836_vm10, %v1833_v46, %v1835_v7  ;;  %v1984_v59 = vsel %vm1983_vm13, %v8849_v6, %v8848_v1  ;;  %v1791_v1 = vld [vmem:[%s8672_s6 + $0x118] sm:$0xff] }
 0xb36   : > { %4602 = vmatprep.subr.msk.mxu1 %vm6415_vm8, %v1844_v41  ;;  %v2168_v40 = vsel %vm2163_vm12, %v6349_v25, %v6434_v13 }
 0xb37   : > { %4603 = vmatpush1.msk.msra.mxu1 %vm6424_vm9, %v1843_v10  ;;  %v8850_v10 = vld [vmem:[#allocation25_spill] sm:$0xff] }
 0xb38   : > { %4604 = vmatprep.subr.msk.mxu1 %vm6415_vm8, %v1842_v14  ;;  %v6449_v63 = vpop.permute.xlu1 %2114  ;;  %v8851_v14 = vld [vmem:[#allocation24_spill] sm:$0xff] }
 0xb39   : > { %v6451_v12 = vpop.permute.xlu0 %1973  ;;  %4605 = vmatpush1.msk.msra.mxu1 %vm6424_vm9, %v1841_v48 }
 0xb3a   : > { %4606 = vmatprep.subr.msk.mxu1 %vm6415_vm8, %v1840_v15  ;;  %v1989_v54 = vsel %vm1983_vm13, %v6451_v12, %v6357_v27 }
 0xb3b   : > { %4607 = vmatpush1.msk.msra.mxu1 %vm6424_vm9, %v1839_v20  ;;  %v8853_v20 = vld [vmem:[#allocation22_spill] sm:$0xff] }
 0xb3c   : > { %4608 = vmatprep.subr.msk.mxu1 %vm6415_vm8, %v1838_v56  ;;  %v2078_v55 = vpop.permute.xlu1 %2077 }
 0xb3d   : > { %v6473_v11 = vpop.permute.xlu0 %1924  ;;  %4609 = vmatpush1.msk.msra.mxu1 %vm6424_vm9, %v1837_v19  ;;  %v2089_v47 = vsel %vm2081_vm11, %v2078_v55, %v6363_v39  ;;  %v2088_v45 = vsel %vm2081_vm11, %v6365_v53, %v2078_v55  ;;  %v2085_v39 = vsel %vm2081_vm11, %v6304_v4, %v6238_v51  ;;  %v2084_v53 = vsel %vm2081_vm11, %v6258_v61, %v6304_v4 }
 0xb3e   : > { %2224 = vmatprep.subr.mxu1 %v2089_v47  ;;  %v2166_v61 = vsel %vm2163_vm12, %v6266_v62, %v6310_v5  ;;  %v1939_v56 = vsel %vm1934_vm14, %v8853_v20, %v6473_v11  ;;  %v8854_v47 = vld [vmem:[#allocation14_spill] sm:$0xff] }
 0xb3f   : > { %2225 = vmatpush1.msra.mxu1 %v2088_v45  ;;  %v8855_v45 = vld [vmem:[#allocation20_spill] sm:$0xff] }
 0xb40   : > { %2226 = vmatprep.subr.mxu1 %v2087_v38  ;;  %v6483_v34 = vpop.permute.xlu1 %2110  ;;  %v1938_v38 = vsel %vm1934_vm14, %v8855_v45, %v8854_v47  ;;  %8875 = vst [vmem:[#allocation20_spill] sm:$0xff] %v6889_v29 }
 0xb41   : > { %v6487_v7 = vpop.permute.xlu0 %2112  ;;  %2227 = vmatpush1.msra.mxu1 %v2086_v32  ;;  %v8856_v32 = vld [vmem:[#allocation16_spill] sm:$0xff] }
 0xb42   : > { %2228 = vmatprep.subr.mxu1 %v2085_v39  ;;  %v1937_v39 = vsel %vm1934_vm14, %v8856_v32, %v8855_v45 }
 0xb43   : > { %2229 = vmatpush1.msra.mxu1 %v2084_v53 }
 0xb44   : > { %2230 = vmatprep.subr.mxu1 %v2083_v24  ;;  %v6498_v22 = vpop.permute.xlu1 %2024  ;;  %v8857_v24 = vld [vmem:[#allocation12_spill] sm:$0xff] }
 0xb45   : > { %v6503_v9 = vpop.permute.xlu0 %2026  ;;  %2231 = vmatpush1.msra.mxu1 %v2082_v21  ;;  %v8858_v21 = vld [vmem:[#allocation19_spill] sm:$0xff] }
 0xb46   : > { %4610 = vmatprep.subr.msk.mxu1 %vm6385_vm5, %v6213_v50  ;;  %v2167_v50 = vsel %vm2163_vm12, %v6310_v5, %v6246_v60 }
 0xb47   : > { %4611 = vmatpush1.msk.msra.mxu1 %vm6389_vm6, %v6173_v37 }
 0xb48   : > { %4612 = vmatprep.subr.msk.mxu1 %vm6385_vm5, %v6168_v36  ;;  %v6514_v49 = vpop.permute.xlu1 %2108 }
 0xb49   : > { %v6516_v51 = vpop.permute.xlu0 %2022  ;;  %4613 = vmatpush1.msk.msra.mxu1 %vm6389_vm6, %v6142_v33 }
 0xb4a   : > { %4614 = vmatprep.subr.msk.mxu1 %vm6385_vm5, %v6120_v31 }
 0xb4b   : > { %4615 = vmatpush1.msk.msra.mxu1 %vm6389_vm6, %v6094_v30 }
 0xb4c   : > { %4616 = vmatprep.subr.msk.mxu1 %vm6385_vm5, %v6092_v28  ;;  %v2160_v36 = vpop.permute.xlu1 %2159  ;;  %v2169_v28 = vsel %vm2163_vm12, %v6434_v13, %v6352_v26 }
 0xb4d   : > { %v6530_v37 = vpop.permute.xlu0 %2106  ;;  %4617 = vmatpush1.msk.msra.mxu1 %vm6389_vm6, %v6058_v8  ;;  %v2171_v33 = vsel %vm2163_vm12, %v2160_v36, %v6367_v42  ;;  %v2170_v31 = vsel %vm2163_vm12, %v6369_v17, %v2160_v36  ;;  %v2164_v17 = vsel %vm2163_vm12, %v6198_v44, %v6300_v3  ;;  %v8843_v44 = vld [vmem:[#allocation21_spill] sm:$0xff]  ;;  %v8845_v42 = vld [vmem:[#allocation18_spill] sm:$0xff]  ;;  %v1936_v36 = vsel %vm1934_vm14, %v8858_v21, %v8857_v24 }
 0xb4e   : > { %2240 = vmatprep.subr.mxu1 %v2171_v33  ;;  %v1988_v3 = vsel %vm1983_vm13, %v8843_v44, %v6451_v12  ;;  %v1986_v27 = vsel %vm1983_vm13, %v8846_v18, %v8845_v42  ;;  %v8852_v12 = vld [vmem:[#allocation23_spill] sm:$0xff]  ;;  %v8859_v33 = vld [vmem:[#allocation10_spill] sm:$0xff]  ;;  %v1790_v18 = vld [vmem:[%s8672_s6 + $0x110] sm:$0xff] }
 0xb4f   : > { %2241 = vmatpush2.msra.mxu1 %v2170_v31  ;;  %v1940_v15 = vsel %vm1934_vm14, %v6473_v11, %v8852_v12  ;;  %v2038_v31 = vsel %vm2032_vm15, %v6516_v51, %v6498_v22  ;;  %v1780_v44 = vld [vmem:[%s8672_s6 + $0xc0] sm:$0xff] }
 0xb50   : > { %2242 = vmatprep.subr.mxu1 %v2169_v28  ;;  %v6542_v30 = vpop.permute.xlu1 %2104 }
 0xb51   : > { %v2021_v8 = vpop.permute.xlu0 %2020  ;;  %2243 = vmatpush2.msra.mxu1 %v2168_v40 }
 0xb52   : > { %2244 = vmatprep.subr.mxu1 %v2167_v50  ;;  %v2037_v28 = vsel %vm2032_vm15, %v2021_v8, %v6516_v51  ;;  %v8860_v50 = vld [vmem:[#allocation26_spill] sm:$0xff]  ;;  %v2128_v51 = vsel %vm2122_vm0, %v6487_v7, %v6449_v63 }
 0xb53   : > { %2245 = vmatpush2.msra.mxu1 %v2166_v61 }
 0xb54   : > { %2246 = vmatprep.subr.mxu1 %v2165_v2  ;;  %v1980_v4 = vpop.permute.xlu1 %1979  ;;  %v8861_v2 = vld [vmem:[#allocation27_spill] sm:$0xff] }
 0xb55   : > { %v1990_v60 = vsel %vm1983_vm13, %v6373_v43, %v1980_v4  ;;  %v2017_v25 = vpop.permute.xlu0 %2016  ;;  %2247 = vmatpush2.msra.mxu1 %v2164_v17  ;;  %v1991_v62 = vsel %vm1983_vm13, %v1980_v4, %v6371_v58  ;;  %v8844_v58 = vld [vmem:[#allocation13_spill] sm:$0xff] }
 0xb56   : > { %4618 = vmatprep.subr.msk.mxu1 %vm6385_vm5, %v1991_v62  ;;  %v1987_v43 = vsel %vm1983_vm13, %v8845_v42, %v8844_v58  ;;  %v2125_v62 = vsel %vm2122_vm0, %v6542_v30, %v6530_v37  ;;  %v1782_v30 = vld [vmem:[%s8672_s6 + $0xd0] sm:$0xff]  ;;  %v8862_v58 = vmov 0.0   ;;  %v1785_v42 = vld [vmem:[%s8672_s6 + $0xe8] sm:$0xff] }
 0xb57   : > { %4619 = vmatpush2.msk.msra.mxu1 %vm6389_vm6, %v1990_v60  ;;  %v2127_v60 = vsel %vm2122_vm0, %v6483_v34, %v6487_v7 }
 0xb58   : > { %4620 = vmatprep.subr.msk.mxu1 %vm6385_vm5, %v1989_v54  ;;  %v2019_v5 = vpop.permute.xlu1 %2018 }
 0xb59   : > { %v6575_v26 = vpop.permute.xlu0 %2100  ;;  %4621 = vmatpush2.msk.msra.mxu1 %vm6389_vm6, %v1988_v3  ;;  %v2036_v17 = vsel %vm2032_vm15, %v2017_v25, %v2019_v5  ;;  %v1783_v5 = vld [vmem:[%s8672_s6 + $0xd8] sm:$0xff] }
 0xb5a   : > { %4622 = vmatprep.subr.msk.mxu1 %vm6385_vm5, %v1987_v43  ;;  %v1786_v43 = vld [vmem:[%s8672_s6 + $0xf0] sm:$0xff] }
 0xb5b   : > { %4623 = vmatpush2.msk.msra.mxu1 %vm6389_vm6, %v1986_v27  ;;  %v1788_v27 = vld [vmem:[%s8672_s6 + $0x100] sm:$0xff] }
 0xb5c   : > { %4624 = vmatprep.subr.msk.mxu1 %vm6385_vm5, %v1985_v52  ;;  %v1931_v46 = vpop.permute.xlu1 %1930 }
 0xb5d   : > { %v1941_v13 = vsel %vm1934_vm14, %v8850_v10, %v1931_v46  ;;  %v2015_v41 = vpop.permute.xlu0 %2014  ;;  %4625 = vmatpush2.msk.msra.mxu1 %vm6389_vm6, %v1984_v59  ;;  %v1942_v48 = vsel %vm1934_vm14, %v1931_v46, %v8851_v14 }
 0xb5e   : > { %4626 = vmatprep.subr.msk.mxu1 %vm6415_vm8, %v1942_v48  ;;  %v2035_v22 = vsel %vm2032_vm15, %v2015_v41, %v2017_v25  ;;  %v2126_v25 = vsel %vm2122_vm0, %v6530_v37, %v6514_v49  ;;  %v1784_v49 = vld [vmem:[%s8672_s6 + $0xe0] sm:$0xff] }
 0xb5f   : > { %4627 = vmatpush2.msk.msra.mxu1 %vm6424_vm9, %v1941_v13 }
 0xb60   : > { %4628 = vmatprep.subr.msk.mxu1 %vm6415_vm8, %v1940_v15  ;;  %v2103_v19 = vpop.permute.xlu1 %2102 }
 0xb61   : > { %v2029_v55 = vpop.permute.xlu0 %2028  ;;  %4629 = vmatpush2.msk.msra.mxu1 %vm6424_vm9, %v1939_v56  ;;  %v2124_v54 = vsel %vm2122_vm0, %v6575_v26, %v2103_v19 }
 0xb62   : > { %v2039_v11 = vsel %vm2032_vm15, %v6503_v9, %v2029_v55  ;;  %4630 = vmatprep.subr.msk.mxu1 %vm6415_vm8, %v1938_v38  ;;  %v2040_v53 = vsel %vm2032_vm15, %v2029_v55, %v6403_v35  ;;  %v1935_v9 = vsel %vm1934_vm14, %v8859_v33, %v8858_v21 }
 0xb63   : > { %4631 = vmatpush2.msk.msra.mxu1 %vm6424_vm9, %v1937_v39  ;;  %4634 = vmatprep.subr.msk.mxu0 %vm6415_vm8, %v2040_v53 }
 0xb64   : > { %4632 = vmatprep.subr.msk.mxu1 %vm6415_vm8, %v1936_v36  ;;  %4635 = vmatpush1.msk.msra.mxu0 %vm6424_vm9, %v2039_v11  ;;  %v2119_v35 = vpop.permute.xlu1 %2118 }
 0xb65   : > { %v2011_v40 = vpop.permute.xlu0 %2010  ;;  %4633 = vmatpush2.msk.msra.mxu1 %vm6424_vm9, %v1935_v9  ;;  %4636 = vmatprep.subr.msk.mxu0 %vm6415_vm8, %v2038_v31  ;;  %v2130_v61 = vsel %vm2122_vm0, %v2119_v35, %v8860_v50  ;;  %v2129_v4 = vsel %vm2122_vm0, %v8861_v2, %v2119_v35 }
 0xb66   : > { %2264 = vmatprep.subr.mxu1 %v2130_v61  ;;  %4637 = vmatpush1.msk.msra.mxu0 %vm6424_vm9, %v2037_v28 }
 0xb67   : > { %2265 = vmatpush2.msra.mxu1 %v2129_v4  ;;  %4638 = vmatprep.subr.msk.mxu0 %vm6415_vm8, %v2036_v17 }
 0xb68   : > { %2266 = vmatprep.subr.mxu1 %v2128_v51  ;;  %4639 = vmatpush1.msk.msra.mxu0 %vm6424_vm9, %v2035_v22  ;;  %v2099_v8 = vpop.permute.xlu1 %2098 }
 0xb69   : > { %2267 = vmatpush2.msra.mxu1 %v2127_v60  ;;  %v2009_v63 = vpop.permute.xlu0 %2008  ;;  %v2123_v34 = vsel %vm2122_vm0, %v2099_v8, %v6575_v26  ;;  %v1787_v26 = vld [vmem:[%s8672_s6 + $0xf8] sm:$0xff] }
 0xb6a   : > { %2268 = vmatprep.subr.mxu1 %v2126_v25  ;;  %v2033_v3 = vsel %vm2032_vm15, %v2009_v63, %v2011_v40 }
 0xb6b   : > { %2269 = vmatpush2.msra.mxu1 %v2125_v62 }
 0xb6c   : > { %2270 = vmatprep.subr.mxu1 %v2124_v54  ;;  %v2013_v7 = vpop.permute.xlu1 %2012 }
 0xb6d   : > { %v2034_v37 = vsel %vm2032_vm15, %v2011_v40, %v2013_v7  ;;  %2271 = vmatpush2.msra.mxu1 %v2123_v34 }
 0xb6e   : > { %2273 = vmatmul.mubr.f32.vlgmr.msra.gmra.mxu1 %v1780_v44  ;;  %4640 = vmatprep.subr.msk.mxu0 %vm6415_vm8, %v2034_v37 }
 0xb6f   : > { %4641 = vmatpush1.msk.msra.mxu0 %vm6424_vm9, %v2033_v3  ;;  %2278 = vmatprep.mubr.f32.mxu1 %v1784_v49 }
 0xb70   : > { %4642 = vmatmul.mubr.msk.f32.vlgmr.msra.gmra.mxu0 %vm677_vm3, %v1782_v30 }
 0xb71   : > { %2367 = vmatprep.mubr.f32.mxu0 %v8862_v58 }
 0xb72   : > { %2279 = vmatmul.mubr.f32.gmra.mxu1 %v1783_v5 }
 0xb73   : > { %2284 = vmatprep.mubr.f32.mxu1 %v1787_v26 }
 0xb74   : > { %4643 = vmatmul.mubr.msk.f32.gmra.mxu0 %vm677_vm3, %v1785_v42 }
 0xb75   : > { %2373 = vmatprep.mubr.f32.mxu0 %v8862_v58 }
 0xb76   : > { %2285 = vmatmul.mubr.f32.gmra.mxu1 %v1786_v43  ;;  %v2186_v6 = vpop.permute.xlu0 %2185 }
 0xb77   : > { %2290 = vmatprep.mubr.f32.mxu1 %v1790_v18 }
 0xb78   : > { %4644 = vmatmul.mubr.msk.f32.gmra.mxu0 %vm677_vm3, %v1788_v27 }
 0xb79   : > { %2379 = vmatprep.mubr.f32.mxu0 %v8862_v58  ;;  %v2182_v52 = vpop.permute.xlu1 %2181  ;;  %v6913_v58 = vld [vmem:[#allocation4 + $0x2c0] sm:$0xff] }
 0xb7a   : > { %2291 = vmatmul.mubr.f32.gmra.mxu1 %v1789_v23  ;;  %v2190_v12 = vpop.permute.xlu0 %2189  ;;  %8879 = vst [vmem:[#allocation10_spill] sm:$0xff] %v6913_v58 }
 0xb7c   : > { %4645 = vmatmul.mubr.msk.f32.gmra.mxu0 %vm677_vm3, %v1791_v1 }
 0xb7e   : > { %v2194_v33 = vpop.permute.xlu0 %2193 }
 0xc2e   : > { %v2274_v59 = vpop.f32.mrf.mxu1 }
 0xc2f   : > { %v2275_v46 = vadd.f32 %v2274_v59, %v2182_v52 }
 0xc30   : > { %v2276_v10 = vpop.f32.mrf.mxu1  ;;  %v2363_v13 = vpop.f32.mrf.mxu0 }
 0xc31   : > { %v2277_v41 = vadd.f32 %v2276_v10, %v2182_v52  ;;  %v2364_v15 = vadd.f32 %v2363_v13, %v2275_v46  ;;  %v8682_v46 = vmov 7   ;;  %v8684_v10 = vmov 8   ;;  %v6756_v13 = vld [vmem:[#allocation6] sm:$0xff] }
 0xc32   : > { %v2280_v14 = vpop.f32.mrf.mxu1  ;;  %v2365_v48 = vpop.f32.mrf.mxu0  ;;  %5178 = vset.pattern.permute.xlu1 %v8682_v46  ;;  %5179 = vset.pattern.permute.xlu0 %v8684_v10  ;;  %v6883_v46 = vld [vmem:[#allocation4] sm:$0xff]  ;;  %v6886_v10 = vld [vmem:[#allocation4 + $0x268] sm:$0xff] }
 0xc33   : > { %v2281_v20 = vadd.f32 %v2280_v14, %v2186_v6  ;;  %v2366_v56 = vadd.f32 %v2365_v48, %v2277_v41  ;;  %v6759_v41 = vld [vmem:[#allocation4 + $0x170] sm:$0xff]  ;;  %v6761_v14 = vld [vmem:[#allocation4 + $0x168] sm:$0xff]  ;;  %v6765_v48 = vld [vmem:[#allocation4 + $0x158] sm:$0xff]  ;;  %8874 = vst [vmem:[#allocation14_spill] sm:$0xff] %v6883_v46 }
 0xc34   : > { %v2282_v19 = vpop.f32.mrf.mxu1  ;;  %v2369_v55 = vpop.f32.mrf.mxu0  ;;  %2631 = vmatprep.subr.mxu0 %v6759_v41 }
 0xc35   : > { %v2386_v47 = vadd.f32 %v2366_v56, %v2364_v15  ;;  %v2283_v45 = vadd.f32 %v2282_v19, %v2186_v6  ;;  %v2370_v38 = vadd.f32 %v2369_v55, %v2281_v20  ;;  %2632 = vmatpush1.msra.mxu0 %v6761_v14  ;;  %v6772_v20 = vld [vmem:[#allocation4 + $0x138] sm:$0xff]  ;;  %v6780_v55 = vld [vmem:[#allocation4 + $0x120] sm:$0xff] }
 0xc36   : > { %v2286_v32 = vpop.f32.mrf.mxu1  ;;  %v2371_v39 = vpop.f32.mrf.mxu0  ;;  %2633 = vmatprep.subr.mxu0 %v6765_v48 }
 0xc37   : > { %v2387_v11 = vadd.f32 %v2386_v47, %v2370_v38  ;;  %v2287_v53 = vadd.f32 %v2286_v32, %v2190_v12  ;;  %v2372_v24 = vadd.f32 %v2371_v39, %v2283_v45  ;;  %v6783_v47 = vld [vmem:[#allocation4 + $0x110] sm:$0xff]  ;;  %v6785_v45 = vld [vmem:[#allocation4 + $0x108] sm:$0xff] }
 0xc38   : > { %v2288_v21 = vpop.f32.mrf.mxu1  ;;  %v2375_v36 = vpop.f32.mrf.mxu0  ;;  %v6790_v32 = vld [vmem:[#allocation4 + $0xf0] sm:$0xff] }
 0xc39   : > { %v2388_v9 = vadd.f32 %v2387_v11, %v2372_v24  ;;  %v2289_v35 = vadd.f32 %v2288_v21, %v2190_v12  ;;  %v6726_v40 = vadd.f32 %v2375_v36, %v2287_v53  ;;  %v6768_v12 = vld [vmem:[#allocation4 + $0x150] sm:$0xff]  ;;  %v6795_v11 = vld [vmem:[#allocation4 + $0xe0] sm:$0xff]  ;;  %v6798_v53 = vld [vmem:[#allocation4 + $0xd8] sm:$0xff] }
 0xc3a   : > { %v2292_v31 = vpop.f32.mrf.mxu1  ;;  %v2377_v28 = vpop.f32.mrf.mxu0  ;;  %2634 = vmatpush1.msra.mxu0 %v6768_v12  ;;  %v6802_v21 = vld [vmem:[#allocation4 + $0xc0] sm:$0xff] }
 0xc3b   : > { %v2293_v50 = vadd.f32 %v2292_v31, %v2194_v33  ;;  %v6728_v61 = vadd.f32 %v2377_v28, %v2289_v35  ;;  %2389 = vadd.xlane.f32.xlu1 %v2388_v9  ;;  %v6808_v9 = vld [vmem:[#allocation4 + $0xa8] sm:$0xff]  ;;  %v6811_v35 = vld [vmem:[#allocation4 + $0x98] sm:$0xff]  ;;  %v6814_v31 = vld [vmem:[#allocation4 + $0x90] sm:$0xff] }
 0xc3c   : > { %v2294_v2 = vpop.f32.mrf.mxu1  ;;  %v2381_v4 = vpop.f32.mrf.mxu0 }
 0xc3d   : > { %v2429_v17 = vadd.f32 %v6728_v61, %v6726_v40  ;;  %v2295_v22 = vadd.f32 %v2294_v2, %v2194_v33  ;;  %v6732_v51 = vadd.f32 %v2381_v4, %v2293_v50  ;;  %v6805_v33 = vld [vmem:[#allocation4 + $0xb0] sm:$0xff]  ;;  %v6817_v2 = vld [vmem:[#allocation4 + $0x80] sm:$0xff] }
 0xc3e   : > { %v2383_v8 = vpop.f32.mrf.mxu0  ;;  %8863 = vst [vmem:[#allocation21_spill] sm:$0xff] %v6817_v2 }
 0xc3f   : > { %v2430_v60 = vadd.f32 %v2429_v17, %v6732_v51  ;;  %v6735_v25 = vadd.f32 %v2383_v8, %v2295_v22  ;;  %v6820_v17 = vld [vmem:[#allocation4 + $0x78] sm:$0xff]  ;;  %v6825_v8 = vld [vmem:[#allocation4 + $0x68] sm:$0xff] }
 0xc40   : > { %8864 = vst [vmem:[#allocation13_spill] sm:$0xff] %v6820_v17  ;;  %v6822_v22 = vld [vmem:[#allocation4 + $0x2f8] sm:$0xff]  ;;  %8865 = vst [vmem:[#allocation18_spill] sm:$0xff] %v6825_v8 }
 0xc41   : > { %v2431_v62 = vadd.f32 %v2430_v60, %v6735_v25  ;;  %4890 = vmatprep.subr.mxu1 %v6822_v22  ;;  %v6828_v60 = vld [vmem:[#allocation4 + $0x178] sm:$0xff] }
 0xc42   : > { %4891 = vmatpush3.msra.mxu1 %v6828_v60 }
 0xc43   : > { %2432 = vadd.xlane.f32.xlu1 %v2431_v62 }
 0xcc4   : > { %v2390_v63 = vpop.xlane.xlu1 %2389 }
 0xcc5   : > { %v2391_v54 = vrot.slane %v2390_v63, 4 }
 0xcc7   : > { %v2392_v44 = vadd.f32 %v2391_v54, %v2390_v63  ;;  %v6831_v63 = vld [vmem:[#allocation4 + $0x60] sm:$0xff] }
 0xcc8   : > { %8866 = vst [vmem:[#allocation15_spill] sm:$0xff] %v6831_v63  ;;  %v6834_v54 = vld [vmem:[#allocation4 + $0x2e0] sm:$0xff] }
 0xcc9   : > { %v2393_v34 = vrot.slane %v2392_v44, 2  ;;  %4892 = vmatprep.subr.mxu1 %v6834_v54 }
 0xccb   : > { %v2394_v7 = vadd.f32 %v2393_v34, %v2392_v44  ;;  %v6836_v44 = vld [vmem:[#allocation4 + $0x160] sm:$0xff] }
 0xccc   : > { %v2433_v19 = vpop.xlane.xlu1 %2432  ;;  %4893 = vmatpush3.msra.mxu1 %v6836_v44 }
 0xccd   : > { %v2395_v49 = vrot.slane %v2394_v7, 1  ;;  %v2434_v39 = vrot.slane %v2433_v19, 4 }
 0xccf   : > { %v2396_v37 = vadd.f32 %v2395_v49, %v2394_v7  ;;  %v2435_v36 = vadd.f32 %v2434_v39, %v2433_v19  ;;  %v6839_v7 = vld [vmem:[#allocation4 + $0x50] sm:$0xff]  ;;  %v6842_v49 = vld [vmem:[#allocation4 + $0x2c8] sm:$0xff]  ;;  %v6865_v19 = vld [vmem:[#allocation4 + $0x20] sm:$0xff] }
 0xcd0   : > { %8867 = vst [vmem:[#allocation11_spill] sm:$0xff] %v6839_v7  ;;  %4894 = vmatprep.subr.mxu1 %v6842_v49  ;;  %8871 = vst [vmem:[#allocation24_spill] sm:$0xff] %v6865_v19  ;;  %v6868_v39 = vld [vmem:[#allocation4 + $0x118] sm:$0xff] }
 0xcd1   : > { %5076 = vpush %v2396_v37  ;;  %v2436_v50 = vrot.slane %v2435_v36, 2 }
 0xcd3   : > { %v2437_v34 = vadd.f32 %v2436_v50, %v2435_v36  ;;  %v6874_v50 = vld [vmem:[#allocation4 + $0x280] sm:$0xff] }
 0xd02   : > { %s5077_s28 = spop %5076 }
 0xd03   : > { %v2398_v30 = vstv %s5077_s28 }
 0xd04   : > { %v2400_v3 = vmul.f32 0.00024414063, %v2398_v30  ;;  %v6845_v30 = vld [vmem:[#allocation4 + $0x48] sm:$0xff] }
 0xd05   : > { %8868 = vst [vmem:[#allocation17_spill] sm:$0xff] %v6845_v30 }
 0xd06   : > { %v6738_v5 = vsub.f32 %v2364_v15, %v2400_v3  ;;  %v6740_v26 = vsub.f32 %v2366_v56, %v2400_v3  ;;  %v6742_v42 = vsub.f32 %v2370_v38, %v2400_v3  ;;  %v6744_v43 = vsub.f32 %v2372_v24, %v2400_v3  ;;  %v6770_v15 = vld [vmem:[#allocation4 + $0x140] sm:$0xff]  ;;  %v6775_v56 = vld [vmem:[#allocation4 + $0x128] sm:$0xff]  ;;  %v6787_v38 = vld [vmem:[#allocation4 + $0xf8] sm:$0xff] }
 0xd07   : > { %2635 = vmatprep.subr.mxu0 %v6770_v15  ;;  %v6800_v24 = vld [vmem:[#allocation4 + $0xc8] sm:$0xff] }
 0xd08   : > { %v2405_v18 = vmul.f32 %v6738_v5, %v6738_v5  ;;  %v2406_v27 = vmul.f32 %v6740_v26, %v6740_v26  ;;  %v2407_v23 = vmul.f32 %v6742_v42, %v6742_v42  ;;  %v2408_v52 = vmul.f32 %v6744_v43, %v6744_v43  ;;  %2636 = vmatpush1.msra.mxu0 %v6772_v20  ;;  %v6848_v3 = vld [vmem:[#allocation4 + $0x148] sm:$0xff] }
 0xd09   : > { %2637 = vmatprep.subr.mxu0 %v6775_v56  ;;  %4895 = vmatpush3.msra.mxu1 %v6848_v3 }
 0xd0a   : > { %v2409_v1 = vadd.f32 %v2406_v27, %v2405_v18  ;;  %2638 = vmatpush1.msra.mxu0 %v6780_v55  ;;  %v6850_v18 = vld [vmem:[#allocation4 + $0x2b0] sm:$0xff]  ;;  %v6853_v27 = vld [vmem:[#allocation4 + $0x38] sm:$0xff] }
 0xd0b   : > { %2639 = vmatprep.subr.mxu0 %v6783_v47  ;;  %8869 = vst [vmem:[#allocation9_spill] sm:$0xff] %v6853_v27  ;;  %4896 = vmatprep.subr.mxu1 %v6850_v18 }
 0xd0c   : > { %v2410_v6 = vadd.f32 %v2409_v1, %v2407_v23  ;;  %2640 = vmatpush1.msra.mxu0 %v6785_v45  ;;  %v6856_v23 = vld [vmem:[#allocation4 + $0x130] sm:$0xff] }
 0xd0d   : > { %2641 = vmatprep.subr.mxu0 %v6787_v38  ;;  %4897 = vmatpush3.msra.mxu1 %v6856_v23 }
 0xd0e   : > { %v2411_v59 = vadd.f32 %v2410_v6, %v2408_v52  ;;  %2642 = vmatpush1.msra.mxu0 %v6790_v32  ;;  %v6859_v52 = vld [vmem:[#allocation4 + $0x30] sm:$0xff]  ;;  %v6862_v6 = vld [vmem:[#allocation4 + $0x298] sm:$0xff] }
 0xd0f   : > { %2643 = vmatprep.subr.mxu0 %v6795_v11  ;;  %8870 = vst [vmem:[#allocation25_spill] sm:$0xff] %v6859_v52  ;;  %4898 = vmatprep.subr.mxu1 %v6862_v6 }
 0xd10   : > { %2412 = vadd.xlane.f32.xlu0 %v2411_v59  ;;  %2644 = vmatpush1.msra.mxu0 %v6798_v53  ;;  %v2438_v59 = vrot.slane %v2437_v34, 1 }
 0xd11   : > { %2645 = vmatprep.subr.mxu0 %v6800_v24  ;;  %4899 = vmatpush3.msra.mxu1 %v6868_v39 }
 0xd12   : > { %2646 = vmatpush1.msra.mxu0 %v6802_v21  ;;  %v2439_v57 = vadd.f32 %v2438_v59, %v2437_v34  ;;  %4900 = vmatprep.subr.mxu1 %v6874_v50  ;;  %v6901_v34 = vld [vmem:[#allocation4 + $0x2d8] sm:$0xff]  ;;  %v6904_v59 = vld [vmem:[#allocation4 + $0xd0] sm:$0xff] }
 0xd13   : > { %2647 = vmatprep.subr.mxu0 %v6805_v33  ;;  %8877 = vst [vmem:[#allocation12_spill] sm:$0xff] %v6901_v34 }
 0xd14   : > { %2648 = vmatpush1.msra.mxu0 %v6808_v9 }
 0xd15   : > { %2649 = vmatprep.subr.mxu0 %v6811_v35 }
 0xd16   : > { %2650 = vmatpush1.msra.mxu0 %v6814_v31 }
 0xd17   : > { %2651 = vmatprep.subr.mxu0 %v6817_v2 }
 0xd18   : > { %2652 = vmatpush1.msra.mxu0 %v6820_v17 }
 0xd19   : > { %2653 = vmatprep.subr.mxu0 %v6825_v8 }
 0xd1a   : > { %2654 = vmatpush1.msra.mxu0 %v6831_v63 }
 0xd1b   : > { %2655 = vmatprep.subr.mxu0 %v6839_v7 }
 0xd1c   : > { %2656 = vmatpush1.msra.mxu0 %v6845_v30 }
 0xd1d   : > { %2657 = vmatprep.subr.mxu0 %v6853_v27 }
 0xd1e   : > { %2658 = vmatpush1.msra.mxu0 %v6859_v52 }
 0xd1f   : > { %2659 = vmatprep.subr.mxu0 %v6865_v19  ;;  %v6946_v19 = vld [vmem:[#allocation4 + $0x260] sm:$0xff] }
 0xd20   : > { %8887 = vst [vmem:[#allocation37_spill] sm:$0xff] %v6946_v19 }
 0xd26   : > { %2496 = vperm.xlu0 %5179, %v6756_v13  }
 0xd99   : > { %v2413_v28 = vpop.xlane.xlu0 %2412 }
 0xd9a   : > { %v2414_v4 = vrot.slane %v2413_v28, 4 }
 0xd9c   : > { %v2415_v62 = vadd.f32 %v2414_v4, %v2413_v28  ;;  %v6871_v28 = vld [vmem:[#allocation4 + $0x18] sm:$0xff]  ;;  %v6877_v4 = vld [vmem:[#allocation4 + $0x8] sm:$0xff] }
 0xd9d   : > { %8872 = vst [vmem:[#allocation23_spill] sm:$0xff] %v6871_v28  ;;  %8873 = vst [vmem:[#allocation22_spill] sm:$0xff] %v6877_v4  ;;  %2660 = vmatpush1.msra.mxu0 %v6871_v28  ;;  %v6937_v28 = vld [vmem:[#allocation4 + $0x288] sm:$0xff] }
 0xd9e   : > { %v2416_v37 = vrot.slane %v2415_v62, 2  ;;  %2661 = vmatprep.subr.mxu0 %v6877_v4  ;;  %v6925_v4 = vld [vmem:[#allocation4 + $0x2a8] sm:$0xff]  ;;  %8884 = vst [vmem:[#allocation34_spill] sm:$0xff] %v6937_v28 }
 0xd9f   : > { %2662 = vmatpush1.msra.mxu0 %v6883_v46  ;;  %v6919_v46 = vld [vmem:[#allocation4 + $0x2b8] sm:$0xff]  ;;  %8881 = vst [vmem:[#allocation27_spill] sm:$0xff] %v6925_v4 }
 0xda0   : > { %v2417_v1 = vadd.f32 %v2416_v37, %v2415_v62  ;;  %v6880_v62 = vld [vmem:[#allocation4 + $0x100] sm:$0xff]  ;;  %2663 = vmatprep.subr.mxu0 %v6889_v29  ;;  %8880 = vst [vmem:[#allocation26_spill] sm:$0xff] %v6919_v46 }
 0xda1   : > { %4901 = vmatpush3.msra.mxu1 %v6880_v62  ;;  %v6922_v29 = vld [vmem:[#allocation4 + $0x220] sm:$0xff]  ;;  %v2497_v7 = vpop.permute.xlu0 %2496 }
 0xda2   : > { %v2418_v36 = vrot.slane %v2417_v1, 1  ;;  %4902 = vmatprep.subr.mxu1 %v6886_v10 }
 0xda3   : > { %4903 = vmatpush3.msra.mxu1 %v6892_v16 }
 0xda4   : > { %v2419_v37 = vadd.f32 %v2418_v36, %v2417_v1  ;;  %v6895_v1 = vld [vmem:[#allocation4 + $0x2e8] sm:$0xff]  ;;  %v6898_v36 = vld [vmem:[#allocation4 + $0x250] sm:$0xff] }
 0xda5   : > { %8876 = vst [vmem:[#allocation16_spill] sm:$0xff] %v6895_v1  ;;  %2664 = vmatpush2.msra.mxu0 %v6895_v1  ;;  %4904 = vmatprep.subr.mxu1 %v6898_v36  ;;  %v6929_v1 = vld [vmem:[#allocation4 + $0x2a0] sm:$0xff] }
 0xda6   : > { %5078 = vpush %v2419_v37  ;;  %v6907_v37 = vld [vmem:[#allocation4 + $0x2d0] sm:$0xff]  ;;  %2665 = vmatprep.subr.mxu0 %v6901_v34  ;;  %4905 = vmatpush3.msra.mxu1 %v6904_v59  ;;  %8882 = vst [vmem:[#allocation32_spill] sm:$0xff] %v6929_v1 }
 0xda7   : > { %5080 = vpush %v2439_v57  ;;  %8878 = vst [vmem:[#allocation19_spill] sm:$0xff] %v6907_v37  ;;  %v6916_v57 = vld [vmem:[#allocation4 + $0xb8] sm:$0xff]  ;;  %2666 = vmatpush2.msra.mxu0 %v6907_v37  ;;  %4906 = vmatprep.subr.mxu1 %v6910_v0  ;;  %v6933_v34 = vld [vmem:[#allocation4 + $0x290] sm:$0xff] }
 0xda8   : > { %2667 = vmatprep.subr.mxu0 %v6913_v58  ;;  %4907 = vmatpush3.msra.mxu1 %v6916_v57  ;;  %8883 = vst [vmem:[#allocation33_spill] sm:$0xff] %v6933_v34  ;;  %v6940_v37 = vld [vmem:[#allocation4 + $0x278] sm:$0xff]  ;;  %v6943_v58 = vld [vmem:[#allocation4 + $0x270] sm:$0xff] }
 0xda9   : > { %2668 = vmatpush2.msra.mxu0 %v6919_v46  ;;  %4908 = vmatprep.subr.mxu1 %v6922_v29  ;;  %8885 = vst [vmem:[#allocation35_spill] sm:$0xff] %v6940_v37  ;;  %8886 = vst [vmem:[#allocation36_spill] sm:$0xff] %v6943_v58  ;;  %v6949_v46 = vld [vmem:[#allocation4 + $0x258] sm:$0xff] }
 0xdaa   : > { %2669 = vmatprep.subr.mxu0 %v6925_v4  ;;  %8888 = vst [vmem:[#allocation38_spill] sm:$0xff] %v6949_v46  ;;  %v6952_v4 = vld [vmem:[#allocation4 + $0x248] sm:$0xff] }
 0xdab   : > { %2670 = vmatpush2.msra.mxu0 %v6929_v1  ;;  %8889 = vst [vmem:[#allocation39_spill] sm:$0xff] %v6952_v4  ;;  %v6955_v1 = vld [vmem:[#allocation4 + $0x240] sm:$0xff] }
 0xdac   : > { %2671 = vmatprep.subr.mxu0 %v6933_v34  ;;  %8890 = vst [vmem:[#allocation40_spill] sm:$0xff] %v6955_v1  ;;  %v6958_v34 = vld [vmem:[#allocation4 + $0x230] sm:$0xff] }
 0xdad   : > { %2672 = vmatpush2.msra.mxu0 %v6937_v28  ;;  %8891 = vst [vmem:[#allocation41_spill] sm:$0xff] %v6958_v34  ;;  %v6961_v28 = vld [vmem:[#allocation4 + $0x228] sm:$0xff] }
 0xdae   : > { %2673 = vmatprep.subr.mxu0 %v6940_v37  ;;  %8892 = vst [vmem:[#allocation42_spill] sm:$0xff] %v6961_v28  ;;  %v6964_v37 = vld [vmem:[#allocation4 + $0x218] sm:$0xff] }
 0xdaf   : > { %2674 = vmatpush2.msra.mxu0 %v6943_v58  ;;  %8893 = vst [vmem:[#allocation43_spill] sm:$0xff] %v6964_v37 }
 0xdb0   : > { %2675 = vmatprep.subr.mxu0 %v6946_v19 }
 0xdb1   : > { %2676 = vmatpush2.msra.mxu0 %v6949_v46 }
 0xdb2   : > { %2677 = vmatprep.subr.mxu0 %v6952_v4 }
 0xdb3   : > { %2678 = vmatpush2.msra.mxu0 %v6955_v1 }
 0xdb4   : > { %2679 = vmatprep.subr.mxu0 %v6958_v34 }
 0xdb5   : > { %2680 = vmatpush2.msra.mxu0 %v6961_v28 }
 0xdb6   : > { %2681 = vmatprep.subr.mxu0 %v6964_v37 }
 0xdd7   : > { %s6969_s17 = spop %5078 }
 0xdd8   : > { %s5081_s23 = spop %5080 }
 0xdd9   : > { %v2441_v46 = vstv %s5081_s23 }
 0xdda   : > { %v2442_v19 = vmul.f32 0.00024414063, %v2441_v46 }
 0xddc   : > { %v6972_v58 = vsub.f32 %v6726_v40, %v2442_v19  ;;  %v6975_v4 = vsub.f32 %v6728_v61, %v2442_v19  ;;  %v6978_v1 = vsub.f32 %v6732_v51, %v2442_v19  ;;  %v6981_v34 = vsub.f32 %v6735_v25, %v2442_v19  ;;  %v6991_v51 = vld [vmem:[#allocation4 + $0x210] sm:$0xff]  ;;  %v6993_v25 = vld [vmem:[#allocation4 + $0xa0] sm:$0xff] }
 0xddd   : > { %8898 = vst [vmem:[#allocation48_spill] sm:$0xff] %v6991_v51  ;;  %2682 = vmatpush2.msra.mxu0 %v6991_v51  ;;  %4909 = vmatpush3.msra.mxu1 %v6993_v25  ;;  %v6997_v19 = vld [vmem:[#allocation4 + $0x200] sm:$0xff]  ;;  %v7051_v51 = vld [vmem:[#allocation4 + $0x198] sm:$0xff] }
 0xdde   : > { %8894 = vst [vmem:[#allocation44_spill] sm:$0xff] %v6972_v58  ;;  %8895 = vst [vmem:[#allocation45_spill] sm:$0xff] %v6975_v4  ;;  %v2447_v37 = vmul.f32 %v6972_v58, %v6972_v58  ;;  %v2448_v28 = vmul.f32 %v6975_v4, %v6975_v4  ;;  %v2449_v46 = vmul.f32 %v6978_v1, %v6978_v1  ;;  %v6999_v4 = vld [vmem:[#allocation4 + $0x208] sm:$0xff]  ;;  %2683 = vmatprep.subr.mxu0 %v6997_v19  ;;  %v7029_v58 = vld [vmem:[#allocation4 + $0x58] sm:$0xff] }
 0xddf   : > { %8896 = vst [vmem:[#allocation46_spill] sm:$0xff] %v6978_v1  ;;  %8897 = vst [vmem:[#allocation47_spill] sm:$0xff] %v6981_v34  ;;  %v2450_v61 = vmul.f32 %v6981_v34, %v6981_v34  ;;  %4910 = vmatprep.subr.mxu1 %v6999_v4  ;;  %v7023_v34 = vld [vmem:[#allocation4 + $0x1d8] sm:$0xff]  ;;  %v7027_v1 = vld [vmem:[#allocation4 + $0x1c8] sm:$0xff] }
 0xde0   : > { %v2451_v40 = vadd.f32 %v2448_v28, %v2447_v37  ;;  %8899 = vst [vmem:[#allocation49_spill] sm:$0xff] %v6997_v19  ;;  %8900 = vst [vmem:[#allocation50_spill] sm:$0xff] %v6999_v4  ;;  %v7003_v28 = vld [vmem:[#allocation4 + $0x1f8] sm:$0xff]  ;;  %v7011_v37 = vld [vmem:[#allocation4 + $0x1f0] sm:$0xff] }
 0xde1   : > { %8901 = vst [vmem:[#allocation51_spill] sm:$0xff] %v7003_v28  ;;  %2684 = vmatpush2.msra.mxu0 %v7003_v28  ;;  %8904 = vst [vmem:[#allocation54_spill] sm:$0xff] %v7011_v37  ;;  %v7039_v28 = vld [vmem:[#allocation4 + $0x1b0] sm:$0xff]  ;;  %v7045_v19 = vld [vmem:[#allocation4 + $0x1a0] sm:$0xff] }
 0xde2   : > { %v2452_v52 = vadd.f32 %v2451_v40, %v2449_v46  ;;  %v7015_v46 = vld [vmem:[#allocation4 + $0x1e0] sm:$0xff]  ;;  %v7017_v40 = vld [vmem:[#allocation4 + $0x70] sm:$0xff]  ;;  %8908 = vst [vmem:[#allocation58_spill] sm:$0xff] %v7023_v34  ;;  %8909 = vst [vmem:[#allocation59_spill] sm:$0xff] %v7027_v1 }
 0xde3   : > { %8905 = vst [vmem:[#allocation55_spill] sm:$0xff] %v7015_v46  ;;  %8906 = vst [vmem:[#allocation56_spill] sm:$0xff] %v7017_v40 }
 0xde4   : > { %v2453_v27 = vadd.f32 %v2452_v52, %v2450_v61  ;;  %v7005_v52 = vld [vmem:[#allocation4 + $0x88] sm:$0xff]  ;;  %v7021_v61 = vld [vmem:[#allocation4 + $0x1d0] sm:$0xff]  ;;  %8910 = vst [vmem:[#allocation60_spill] sm:$0xff] %v7029_v58  ;;  %8913 = vst [vmem:[#allocation63_spill] sm:$0xff] %v7039_v28 }
 0xde5   : > { %8902 = vst [vmem:[#allocation52_spill] sm:$0xff] %v7005_v52  ;;  %4911 = vmatpush3.msra.mxu1 %v7005_v52  ;;  %8907 = vst [vmem:[#allocation57_spill] sm:$0xff] %v7021_v61 }
 0xde6   : > { %2454 = vadd.xlane.f32.xlu1 %v2453_v27  ;;  %v7009_v27 = vld [vmem:[#allocation4 + $0x1e8] sm:$0xff]  ;;  %4912 = vmatprep.subr.mxu1 %v7011_v37  ;;  %8915 = vst [vmem:[#allocation65_spill] sm:$0xff] %v7045_v19  ;;  %8917 = vst [vmem:[#allocation67_spill] sm:$0xff] %v7051_v51 }
 0xde7   : > { %8903 = vst [vmem:[#allocation53_spill] sm:$0xff] %v7009_v27  ;;  %2685 = vmatprep.subr.mxu0 %v7009_v27  ;;  %4913 = vmatpush3.msra.mxu1 %v7017_v40  ;;  %v7033_v27 = vld [vmem:[#allocation4 + $0x1b8] sm:$0xff] }
 0xde8   : > { %2686 = vmatpush2.msra.mxu0 %v7015_v46  ;;  %4914 = vmatprep.subr.mxu1 %v7023_v34  ;;  %8911 = vst [vmem:[#allocation61_spill] sm:$0xff] %v7033_v27  ;;  %v7035_v46 = vld [vmem:[#allocation4 + $0x1c0] sm:$0xff] }
 0xde9   : > { %2687 = vmatprep.subr.mxu0 %v7021_v61  ;;  %4915 = vmatpush3.msra.mxu1 %v7029_v58  ;;  %8912 = vst [vmem:[#allocation62_spill] sm:$0xff] %v7035_v46  ;;  %v7041_v61 = vld [vmem:[#allocation4 + $0x40] sm:$0xff] }
 0xdea   : > { %2688 = vmatpush2.msra.mxu0 %v7027_v1  ;;  %8914 = vst [vmem:[#allocation64_spill] sm:$0xff] %v7041_v61  ;;  %4916 = vmatprep.subr.mxu1 %v7035_v46  ;;  %v7047_v1 = vld [vmem:[#allocation4 + $0x1a8] sm:$0xff]  ;;  %v7059_v46 = vld [vmem:[#allocation4 + $0x190] sm:$0xff] }
 0xdeb   : > { %2689 = vmatprep.subr.mxu0 %v7033_v27  ;;  %8916 = vst [vmem:[#allocation66_spill] sm:$0xff] %v7047_v1  ;;  %4917 = vmatpush3.msra.mxu1 %v7041_v61  ;;  %v7057_v27 = vld [vmem:[#allocation4 + $0x188] sm:$0xff]  ;;  %8920 = vst [vmem:[#allocation70_spill] sm:$0xff] %v7059_v46  ;;  %v7066_v61 = vld [vmem:[#allocation4 + $0x10] sm:$0xff] }
 0xdec   : > { %2690 = vmatpush2.msra.mxu0 %v7039_v28  ;;  %4918 = vmatprep.subr.mxu1 %v7047_v1  ;;  %8919 = vst [vmem:[#allocation69_spill] sm:$0xff] %v7057_v27  ;;  %v5216_v28 = vld [vmem:[#allocation6 + $0x8] sm:$0xff]  ;;  %8922 = vst [vmem:[#allocation72_spill] sm:$0xff] %v7066_v61 }
 0xded   : > { %2691 = vmatprep.subr.mxu0 %v7045_v19  ;;  %v7064_v19 = vld [vmem:[#allocation4 + $0x180] sm:$0xff] }
 0xdee   : > { %2692 = vmatpush2.msra.mxu0 %v7051_v51  ;;  %8921 = vst [vmem:[#allocation71_spill] sm:$0xff] %v7064_v19  ;;  %v8923_v51 = vmov 8  }
 0xdef   : > { %2693 = vmatprep.subr.mxu0 %v7057_v27  ;;  %v5217_v27 = vld [vmem:[#allocation6 + $0x10] sm:$0xff] }
 0xdf0   : > { %2694 = vmatpush2.msra.mxu0 %v7064_v19  ;;  %v5218_v19 = vld [vmem:[#allocation6 + $0x18] sm:$0xff] }
 0xdf1   : > { %3205 = vmatprep.subr.mxu0 %v6759_v41  ;;  %v2421_v41 = vstv %s6969_s17 }
 0xdf7   : > { %2472 = vperm.xlu1 %5178, %v6756_v13   ;;  %v7053_v13 = vld [vmem:[#allocation4 + $0x28] sm:$0xff] }
 0xdf8   : > { %8918 = vst [vmem:[#allocation68_spill] sm:$0xff] %v7053_v13  ;;  %4919 = vmatpush3.msra.mxu1 %v7053_v13  ;;  %v8924_v13 = vmov 7  }
 0xdf9   : > { %4920 = vmatprep.subr.mxu1 %v7059_v46 }
 0xdfa   : > { %4921 = vmatpush3.msra.mxu1 %v7066_v61  ;;  %v2422_v61 = vmul.f32 0.00024414063, %v2421_v41 }
 0xdfb   : > { %2476 = vperm.xlu1 %5178, %v5216_v28   ;;  %4934 = vmatprep.subr.mxu1 %v6822_v22 }
 0xdfc   : > { %v2423_v22 = vadd.f32 1e-05, %v2422_v61 }
 0xdfe   : > { %5203 = vrsqrt.f32 %v2423_v22 }
 0xdff   : > { %5180 = vset.pattern.permute.xlu1 %v8923_v51 }
 0xe00   : > { %2500 = vperm.xlu1 %5180, %v5216_v28  }
 0xe04   : > { %5181 = vset.pattern.permute.xlu1 %v8924_v13 }
 0xe05   : > { %2480 = vperm.xlu1 %5181, %v5217_v27  }
 0xe09   : > { %5182 = vset.pattern.permute.xlu1 %v8923_v51 }
 0xe0a   : > { %2504 = vperm.xlu1 %5182, %v5217_v27  }
 0xe0b   : > { %v5204_v46 = vpop.eup %5203 }
 0xe0c   : > { %v2425_v30 = vmul.f32 %v5204_v46, %v6738_v5  ;;  %v2426_v34 = vmul.f32 %v5204_v46, %v6740_v26  ;;  %v2427_v22 = vmul.f32 %v5204_v46, %v6742_v42  ;;  %v2428_v52 = vmul.f32 %v5204_v46, %v6744_v43  ;;  %v8967_v46 = vld [vmem:[#allocation43_spill] sm:$0xff] }
 0xe0e   : > { %5183 = vset.pattern.permute.xlu1 %v8924_v13 }
 0xe0f   : > { %2484 = vperm.xlu1 %5183, %v5218_v19  }
 0xe13   : > { %5184 = vset.pattern.permute.xlu1 %v8923_v51 }
 0xe14   : > { %2508 = vperm.xlu1 %5184, %v5218_v19  }
 0xe6f   : > { %v2455_v28 = vpop.xlane.xlu1 %2454 }
 0xe70   : > { %v2456_v1 = vrot.slane %v2455_v28, 4 }
 0xe72   : > { %v2457_v58 = vadd.f32 %v2456_v1, %v2455_v28 }
 0xe73   : > { %v2473_v27 = vpop.permute.xlu1 %2472 }
 0xe74   : > { %v2487_v13 = vmul.f32 %v2473_v27, %v2425_v30  ;;  %v2488_v40 = vmul.f32 %v2473_v27, %v2426_v34  ;;  %v2458_v63 = vrot.slane %v2457_v58, 2  ;;  %v8968_v27 = vld [vmem:[#allocation48_spill] sm:$0xff] }
 0xe76   : > { %v2511_v37 = vadd.f32 %v2497_v7, %v2487_v13  ;;  %v2512_v51 = vadd.f32 %v2497_v7, %v2488_v40  ;;  %v2459_v19 = vadd.f32 %v2458_v63, %v2457_v58  ;;  %v8954_v7 = vld [vmem:[#allocation26_spill] sm:$0xff]  ;;  %v8969_v13 = vld [vmem:[#allocation49_spill] sm:$0xff] }
 0xe77   : > { %v2477_v8 = vpop.permute.xlu1 %2476 }
 0xe78   : > { %v2519_v41 = vmul.f32 0.2, %v2511_v37  ;;  %v2520_v61 = vmul.f32 0.2, %v2512_v51  ;;  %v2460_v1 = vrot.slane %v2459_v19, 1  ;;  %v2489_v5 = vmul.f32 %v2477_v8, %v2427_v22  ;;  %v8973_v22 = vld [vmem:[#allocation57_spill] sm:$0xff] }
 0xe79   : > { %v2490_v17 = vmul.f32 %v2477_v8, %v2428_v52  ;;  %v8950_v8 = vld [vmem:[#allocation16_spill] sm:$0xff]  ;;  %v8966_v52 = vld [vmem:[#allocation42_spill] sm:$0xff] }
 0xe7a   : > { %v2527_v28 = vmax.f32 %v2511_v37, %v2519_v41  ;;  %v2528_v26 = vmax.f32 %v2512_v51, %v2520_v61  ;;  %v2461_v2 = vadd.f32 %v2460_v1, %v2459_v19  ;;  %v8970_v51 = vld [vmem:[#allocation51_spill] sm:$0xff]  ;;  %v8971_v19 = vld [vmem:[#allocation53_spill] sm:$0xff] }
 0xe7b   : > { %v2501_v4 = vpop.permute.xlu1 %2500  ;;  %v8972_v41 = vld [vmem:[#allocation55_spill] sm:$0xff] }
 0xe7c   : > { %v2513_v30 = vadd.f32 %v2501_v4, %v2489_v5  ;;  %v2514_v34 = vadd.f32 %v2501_v4, %v2490_v17  ;;  %2695 = vmatprep.mubr.f32.mxu0 %v2528_v26  ;;  %2784 = vmatprep.mubr.f32.mxu1 %v2528_v26  ;;  %5082 = vpush %v2461_v2  ;;  %v8948_v2 = vld [vmem:[#allocation72_spill] sm:$0xff]  ;;  %v8962_v4 = vld [vmem:[#allocation38_spill] sm:$0xff]  ;;  %v8974_v1 = vld [vmem:[#allocation59_spill] sm:$0xff] }
 0xe7d   : > { %2696 = vmatmul.mubr.f32.vlgmr.msra.gmra.mxu0 %v2527_v28  ;;  %2785 = vmatmul.mubr.f32.vlgmr.msra.gmra.mxu1 %v2527_v28  ;;  %v8949_v17 = vld [vmem:[#allocation20_spill] sm:$0xff]  ;;  %v8975_v28 = vld [vmem:[#allocation61_spill] sm:$0xff]  ;;  %v8976_v5 = vld [vmem:[#allocation63_spill] sm:$0xff] }
 0xe7e   : > { %v2521_v58 = vmul.f32 0.2, %v2513_v30  ;;  %v2522_v63 = vmul.f32 0.2, %v2514_v34  ;;  %3206 = vmatpush1.msra.mxu0 %v6761_v14  ;;  %4935 = vmatpush3.msra.mxu1 %v6828_v60  ;;  %v8927_v14 = vld [vmem:[#allocation13_spill] sm:$0xff]  ;;  %v8951_v60 = vld [vmem:[#allocation12_spill] sm:$0xff] }
 0xe7f   : > { %3207 = vmatprep.subr.mxu0 %v6765_v48  ;;  %4936 = vmatprep.subr.mxu1 %v6834_v54  ;;  %v8928_v48 = vld [vmem:[#allocation52_spill] sm:$0xff]  ;;  %v8952_v54 = vld [vmem:[#allocation19_spill] sm:$0xff]  ;;  %v8977_v26 = vld [vmem:[#allocation65_spill] sm:$0xff] }
 0xe80   : > { %v2530_v42 = vmax.f32 %v2514_v34, %v2522_v63  ;;  %v2529_v43 = vmax.f32 %v2513_v30, %v2521_v58  ;;  %3208 = vmatpush1.msra.mxu0 %v6768_v12  ;;  %4937 = vmatpush3.msra.mxu1 %v6836_v44  ;;  %v8930_v12 = vld [vmem:[#allocation54_spill] sm:$0xff]  ;;  %v2481_v37 = vpop.permute.xlu1 %2480  ;;  %v8978_v30 = vld [vmem:[#allocation67_spill] sm:$0xff]  ;;  %v8979_v58 = vld [vmem:[#allocation69_spill] sm:$0xff] }
 0xe81   : > { %3209 = vmatprep.subr.mxu0 %v6770_v15  ;;  %4938 = vmatprep.subr.mxu1 %v6842_v49  ;;  %v8931_v15 = vld [vmem:[#allocation15_spill] sm:$0xff]  ;;  %v8953_v44 = vld [vmem:[#allocation10_spill] sm:$0xff] }
 0xe82   : > { %2701 = vmatprep.mubr.f32.mxu0 %v2530_v42  ;;  %2789 = vmatprep.mubr.f32.mxu1 %v2530_v42  ;;  %v8955_v49 = vld [vmem:[#allocation27_spill] sm:$0xff] }
 0xe83   : > { %2702 = vmatmul.mubr.f32.gmra.mxu0 %v2529_v43  ;;  %2790 = vmatmul.mubr.f32.gmra.mxu1 %v2529_v43  ;;  %v8980_v63 = vld [vmem:[#allocation71_spill] sm:$0xff]  ;;  %v8981_v43 = vld [vmem:[#allocation44_spill] sm:$0xff] }
 0xe84   : > { %3210 = vmatpush1.msra.mxu0 %v6772_v20  ;;  %4939 = vmatpush3.msra.mxu1 %v6848_v3  ;;  %v8932_v20 = vld [vmem:[#allocation56_spill] sm:$0xff] }
 0xe85   : > { %3211 = vmatprep.subr.mxu0 %v6775_v56  ;;  %4940 = vmatprep.subr.mxu1 %v6850_v18  ;;  %v8934_v56 = vld [vmem:[#allocation58_spill] sm:$0xff]  ;;  %v8956_v3 = vld [vmem:[#allocation32_spill] sm:$0xff]  ;;  %v8957_v18 = vld [vmem:[#allocation33_spill] sm:$0xff]  ;;  %v2505_v61 = vpop.permute.xlu1 %2504 }
 0xe86   : > { %3212 = vmatpush1.msra.mxu0 %v6780_v55  ;;  %4941 = vmatpush3.msra.mxu1 %v6856_v23  ;;  %v8935_v55 = vld [vmem:[#allocation17_spill] sm:$0xff]  ;;  %v8958_v23 = vld [vmem:[#allocation34_spill] sm:$0xff] }
 0xe87   : > { %3213 = vmatprep.subr.mxu0 %v6783_v47  ;;  %4942 = vmatprep.subr.mxu1 %v6862_v6  ;;  %v8936_v47 = vld [vmem:[#allocation60_spill] sm:$0xff]  ;;  %v8959_v6 = vld [vmem:[#allocation35_spill] sm:$0xff] }
 0xe88   : > { %3214 = vmatpush1.msra.mxu0 %v6785_v45  ;;  %4943 = vmatpush3.msra.mxu1 %v6868_v39  ;;  %v8937_v45 = vld [vmem:[#allocation9_spill] sm:$0xff]  ;;  %v8960_v39 = vld [vmem:[#allocation36_spill] sm:$0xff] }
 0xe89   : > { %3215 = vmatprep.subr.mxu0 %v6787_v38  ;;  %4944 = vmatprep.subr.mxu1 %v6874_v50  ;;  %v8938_v38 = vld [vmem:[#allocation62_spill] sm:$0xff]  ;;  %v8961_v50 = vld [vmem:[#allocation37_spill] sm:$0xff] }
 0xe8a   : > { %3216 = vmatpush1.msra.mxu0 %v6790_v32  ;;  %4945 = vmatpush3.msra.mxu1 %v6880_v62  ;;  %v8939_v32 = vld [vmem:[#allocation25_spill] sm:$0xff]  ;;  %v8963_v62 = vld [vmem:[#allocation39_spill] sm:$0xff]  ;;  %v2485_v34 = vpop.permute.xlu1 %2484 }
 0xe8b   : > { %3217 = vmatprep.subr.mxu0 %v6795_v11  ;;  %4946 = vmatprep.subr.mxu1 %v6886_v10  ;;  %v8926_v10 = vld [vmem:[#allocation50_spill] sm:$0xff]  ;;  %v8940_v11 = vld [vmem:[#allocation64_spill] sm:$0xff] }
 0xe8c   : > { %3218 = vmatpush1.msra.mxu0 %v6798_v53  ;;  %4947 = vmatpush3.msra.mxu1 %v6892_v16  ;;  %v8925_v16 = vld [vmem:[#allocation21_spill] sm:$0xff]  ;;  %v8941_v53 = vld [vmem:[#allocation24_spill] sm:$0xff] }
 0xe8d   : > { %3219 = vmatprep.subr.mxu0 %v6800_v24  ;;  %4948 = vmatprep.subr.mxu1 %v6898_v36  ;;  %v8942_v24 = vld [vmem:[#allocation66_spill] sm:$0xff]  ;;  %v8964_v36 = vld [vmem:[#allocation40_spill] sm:$0xff] }
 0xe8e   : > { %3220 = vmatpush1.msra.mxu0 %v6802_v21  ;;  %4949 = vmatpush3.msra.mxu1 %v6904_v59  ;;  %v8943_v21 = vld [vmem:[#allocation23_spill] sm:$0xff] }
 0xe8f   : > { %3221 = vmatprep.subr.mxu0 %v6805_v33  ;;  %4950 = vmatprep.subr.mxu1 %v6910_v0  ;;  %v8929_v0 = vld [vmem:[#allocation18_spill] sm:$0xff]  ;;  %v8944_v33 = vld [vmem:[#allocation68_spill] sm:$0xff] }
 0xe90   : > { %3222 = vmatpush1.msra.mxu0 %v6808_v9  ;;  %4951 = vmatpush3.msra.mxu1 %v6916_v57  ;;  %v8945_v9 = vld [vmem:[#allocation22_spill] sm:$0xff]  ;;  %v8965_v57 = vld [vmem:[#allocation41_spill] sm:$0xff] }
 0xe91   : > { %3223 = vmatprep.subr.mxu0 %v6811_v35  ;;  %4952 = vmatprep.subr.mxu1 %v6922_v29  ;;  %v8933_v29 = vld [vmem:[#allocation11_spill] sm:$0xff]  ;;  %v8946_v35 = vld [vmem:[#allocation70_spill] sm:$0xff] }
 0xe92   : > { %3224 = vmatpush1.msra.mxu0 %v6814_v31  ;;  %4953 = vmatpush3.msra.mxu1 %v6993_v25  ;;  %v8947_v31 = vld [vmem:[#allocation14_spill] sm:$0xff] }
 0xe93   : > { %3225 = vmatprep.subr.mxu0 %v8925_v16  ;;  %4954 = vmatprep.subr.mxu1 %v8926_v10  ;;  %v8982_v10 = vld [vmem:[#allocation45_spill] sm:$0xff] }
 0xe94   : > { %3226 = vmatpush1.msra.mxu0 %v8927_v14  ;;  %4955 = vmatpush3.msra.mxu1 %v8928_v48  ;;  %v8983_v48 = vld [vmem:[#allocation46_spill] sm:$0xff] }
 0xe95   : > { %3227 = vmatprep.subr.mxu0 %v8929_v0  ;;  %4956 = vmatprep.subr.mxu1 %v8930_v12  ;;  %v8984_v12 = vld [vmem:[#allocation47_spill] sm:$0xff] }
 0xe96   : > { %3228 = vmatpush1.msra.mxu0 %v8931_v15  ;;  %4957 = vmatpush3.msra.mxu1 %v8932_v20  ;;  %v2509_v20 = vpop.permute.xlu1 %2508 }
 0xe97   : > { %3229 = vmatprep.subr.mxu0 %v8933_v29  ;;  %4958 = vmatprep.subr.mxu1 %v8934_v56 }
 0xe98   : > { %3230 = vmatpush1.msra.mxu0 %v8935_v55  ;;  %4959 = vmatpush3.msra.mxu1 %v8936_v47 }
 0xe99   : > { %3231 = vmatprep.subr.mxu0 %v8937_v45  ;;  %4960 = vmatprep.subr.mxu1 %v8938_v38 }
 0xe9a   : > { %3232 = vmatpush1.msra.mxu0 %v8939_v32  ;;  %4961 = vmatpush3.msra.mxu1 %v8940_v11 }
 0xe9b   : > { %3233 = vmatprep.subr.mxu0 %v8941_v53  ;;  %4962 = vmatprep.subr.mxu1 %v8942_v24 }
 0xe9c   : > { %3234 = vmatpush1.msra.mxu0 %v8943_v21  ;;  %4963 = vmatpush3.msra.mxu1 %v8944_v33 }
 0xe9d   : > { %3235 = vmatprep.subr.mxu0 %v8945_v9  ;;  %4964 = vmatprep.subr.mxu1 %v8946_v35 }
 0xe9e   : > { %3236 = vmatpush1.msra.mxu0 %v8947_v31  ;;  %4965 = vmatpush3.msra.mxu1 %v8948_v2 }
 0xe9f   : > { %3237 = vmatprep.subr.mxu0 %v8949_v17  ;;  %v3198_v17 = vld [vmem:[%s7184_s10 + $0x8] sm:$0xff] }
 0xea0   : > { %3238 = vmatpush2.msra.mxu0 %v8950_v8  ;;  %v3197_v8 = vld [vmem:[%s7184_s10] sm:$0xff] }
 0xea1   : > { %3239 = vmatprep.subr.mxu0 %v8951_v60  ;;  %v3200_v60 = vld [vmem:[%s7184_s10 + $0x18] sm:$0xff] }
 0xea2   : > { %3240 = vmatpush2.msra.mxu0 %v8952_v54  ;;  %v3199_v54 = vld [vmem:[%s7184_s10 + $0x10] sm:$0xff] }
 0xea3   : > { %3241 = vmatprep.subr.mxu0 %v8953_v44  ;;  %v3202_v44 = vld [vmem:[%s7184_s10 + $0x28] sm:$0xff] }
 0xea4   : > { %3242 = vmatpush2.msra.mxu0 %v8954_v7  ;;  %v3201_v7 = vld [vmem:[%s7184_s10 + $0x20] sm:$0xff] }
 0xea5   : > { %3243 = vmatprep.subr.mxu0 %v8955_v49  ;;  %v3204_v49 = vld [vmem:[%s7184_s10 + $0x38] sm:$0xff] }
 0xea6   : > { %3244 = vmatpush2.msra.mxu0 %v8956_v3  ;;  %v3203_v3 = vld [vmem:[%s7184_s10 + $0x30] sm:$0xff] }
 0xea7   : > { %3245 = vmatprep.subr.mxu0 %v8957_v18  ;;  %v8985_v18 = vmov 0.0  }
 0xea8   : > { %3246 = vmatpush2.msra.mxu0 %v8958_v23 }
 0xea9   : > { %3247 = vmatprep.subr.mxu0 %v8959_v6 }
 0xeaa   : > { %3248 = vmatpush2.msra.mxu0 %v8960_v39 }
 0xeab   : > { %3249 = vmatprep.subr.mxu0 %v8961_v50 }
 0xeac   : > { %3250 = vmatpush2.msra.mxu0 %v8962_v4 }
 0xead   : > { %3251 = vmatprep.subr.mxu0 %v8963_v62  ;;  %s5083_s24 = spop %5082 }
 0xeae   : > { %3252 = vmatpush2.msra.mxu0 %v8964_v36  ;;  %v2463_v59 = vstv %s5083_s24 }
 0xeaf   : > { %3253 = vmatprep.subr.mxu0 %v8965_v57  ;;  %v2464_v25 = vmul.f32 0.00024414063, %v2463_v59 }
 0xeb0   : > { %3254 = vmatpush2.msra.mxu0 %v8966_v52 }
 0xeb1   : > { %3255 = vmatprep.subr.mxu0 %v8967_v46  ;;  %v2465_v40 = vadd.f32 1e-05, %v2464_v25 }
 0xeb2   : > { %3256 = vmatpush2.msra.mxu0 %v8968_v27 }
 0xeb3   : > { %3257 = vmatprep.subr.mxu0 %v8969_v13  ;;  %5205 = vrsqrt.f32 %v2465_v40 }
 0xeb4   : > { %3258 = vmatpush2.msra.mxu0 %v8970_v51 }
 0xeb5   : > { %3259 = vmatprep.subr.mxu0 %v8971_v19 }
 0xeb6   : > { %3260 = vmatpush2.msra.mxu0 %v8972_v41 }
 0xeb7   : > { %3261 = vmatprep.subr.mxu0 %v8973_v22 }
 0xeb8   : > { %3262 = vmatpush2.msra.mxu0 %v8974_v1 }
 0xeb9   : > { %3263 = vmatprep.subr.mxu0 %v8975_v28 }
 0xeba   : > { %3264 = vmatpush2.msra.mxu0 %v8976_v5 }
 0xebb   : > { %3265 = vmatprep.subr.mxu0 %v8977_v26 }
 0xebc   : > { %3266 = vmatpush2.msra.mxu0 %v8978_v30 }
 0xebd   : > { %3267 = vmatprep.subr.mxu0 %v8979_v58 }
 0xebe   : > { %3268 = vmatpush2.msra.mxu0 %v8980_v63 }
 0xec0   : > { %v5206_v42 = vpop.eup %5205 }
 0xec1   : > { %v2467_v16 = vmul.f32 %v5206_v42, %v8981_v43  ;;  %v2468_v14 = vmul.f32 %v5206_v42, %v8982_v10  ;;  %v2469_v0 = vmul.f32 %v5206_v42, %v8983_v48  ;;  %v2470_v15 = vmul.f32 %v5206_v42, %v8984_v12 }
 0xec3   : > { %v2491_v29 = vmul.f32 %v2481_v37, %v2467_v16  ;;  %v2492_v56 = vmul.f32 %v2481_v37, %v2468_v14  ;;  %v2493_v55 = vmul.f32 %v2485_v34, %v2469_v0  ;;  %v2494_v47 = vmul.f32 %v2485_v34, %v2470_v15 }
 0xec5   : > { %v2515_v45 = vadd.f32 %v2505_v61, %v2491_v29  ;;  %v2516_v38 = vadd.f32 %v2505_v61, %v2492_v56  ;;  %v2518_v32 = vadd.f32 %v2509_v20, %v2494_v47  ;;  %v2517_v11 = vadd.f32 %v2509_v20, %v2493_v55 }
 0xec7   : > { %v2523_v53 = vmul.f32 0.2, %v2515_v45  ;;  %v2524_v24 = vmul.f32 0.2, %v2516_v38  ;;  %v2526_v21 = vmul.f32 0.2, %v2518_v32 }
 0xec8   : > { %v2525_v35 = vmul.f32 0.2, %v2517_v11 }
 0xec9   : > { %v2532_v33 = vmax.f32 %v2516_v38, %v2524_v24  ;;  %v2531_v9 = vmax.f32 %v2515_v45, %v2523_v53  ;;  %v2534_v31 = vmax.f32 %v2518_v32, %v2526_v21 }
 0xeca   : > { %v2533_v2 = vmax.f32 %v2517_v11, %v2525_v35 }
 0xecb   : > { %2707 = vmatprep.mubr.f32.mxu0 %v2532_v33  ;;  %2794 = vmatprep.mubr.f32.mxu1 %v2532_v33 }
 0xecc   : > { %2708 = vmatmul.mubr.f32.gmra.mxu0 %v2531_v9  ;;  %2795 = vmatmul.mubr.f32.gmra.mxu1 %v2531_v9 }
 0xecd   : > { %2713 = vmatprep.mubr.f32.mxu0 %v2534_v31  ;;  %2799 = vmatprep.mubr.f32.mxu1 %v2534_v31 }
 0xed0   : > { %2714 = vmatmul.mubr.f32.gmra.mxu0 %v2533_v2  ;;  %2800 = vmatmul.mubr.f32.gmra.mxu1 %v2533_v2 }
 0xed1   : > { %3269 = vmatprep.mubr.f32.mxu0 %v3198_v17  ;;  %3358 = vmatprep.mubr.f32.mxu1 %v3198_v17 }
 0xed4   : > { %3270 = vmatmul.mubr.f32.vlgmr.msra.gmra.mxu0 %v3197_v8  ;;  %3359 = vmatmul.mubr.f32.vlgmr.msra.gmra.mxu1 %v3197_v8 }
 0xed5   : > { %3275 = vmatprep.mubr.f32.mxu0 %v3200_v60  ;;  %3363 = vmatprep.mubr.f32.mxu1 %v3200_v60 }
 0xed8   : > { %3276 = vmatmul.mubr.f32.gmra.mxu0 %v3199_v54  ;;  %3364 = vmatmul.mubr.f32.gmra.mxu1 %v3199_v54 }
 0xed9   : > { %3281 = vmatprep.mubr.f32.mxu0 %v3202_v44  ;;  %3368 = vmatprep.mubr.f32.mxu1 %v3202_v44 }
 0xedc   : > { %3282 = vmatmul.mubr.f32.gmra.mxu0 %v3201_v7  ;;  %3369 = vmatmul.mubr.f32.gmra.mxu1 %v3201_v7 }
 0xedd   : > { %3287 = vmatprep.mubr.f32.mxu0 %v3204_v49  ;;  %3373 = vmatprep.mubr.f32.mxu1 %v3204_v49 }
 0xee0   : > { %3288 = vmatmul.mubr.f32.gmra.mxu0 %v3203_v3  ;;  %3374 = vmatmul.mubr.f32.gmra.mxu1 %v3203_v3 }
 0xee1   : > { %3936 = vmatprep.mubr.f32.mxu0 %v8985_v18 }
 0xf3d   : > { %v7195_v23 = vpop.f32.mrf.mxu0  ;;  %v4922_v6 = vpop.f32.mrf.mxu1 }
 0xf3e   : > { %8986 = vst [vmem:[#allocation21_spill] sm:$0xff] %v7195_v23  ;;  %2885 = vrot.lane.b32.xlu1 %v7195_v23, %s5329_s20 }
 0xf3f   : > { %v4923_v39 = vpop.f32.mrf.mxu1  ;;  %v7205_v4 = vpop.f32.mrf.mxu0 }
 0xf40   : > { %v7199_v50 = vadd.f32 %v4923_v39, %v4922_v6  ;;  %8987 = vst [vmem:[#allocation50_spill] sm:$0xff] %v7205_v4 }
 0xf42   : > { %2889 = vrot.lane.b32.xlu0 %v7199_v50, %s5329_s20  ;;  %2837 = vrot.lane.b32.xlu1 %v7195_v23, %s5328_s19 }
 0xf43   : > { %v7207_v62 = vpop.f32.mrf.mxu0  ;;  %v4925_v36 = vpop.f32.mrf.mxu1 }
 0xf44   : > { %8988 = vst [vmem:[#allocation13_spill] sm:$0xff] %v7207_v62 }
 0xf45   : > { %v7229_v59 = vpop.f32.mrf.mxu0  ;;  %v4926_v57 = vpop.f32.mrf.mxu1 }
 0xf46   : > { %3077 = vrot.lane.b32.xlu1 %v7195_v23, %s5331_s22  ;;  %2843 = vrot.lane.b32.xlu0 %v7207_v62, %s5328_s19  ;;  %8989 = vst [vmem:[#allocation52_spill] sm:$0xff] %v7229_v59  ;;  %v7235_v25 = vadd.f32 %v4926_v57, %v4925_v36 }
 0xf4a   : > { %3157 = vrot.lane.b32.xlu1 %v7195_v23, %s5341_s11  ;;  %2841 = vrot.lane.b32.xlu0 %v7199_v50, %s5328_s19 }
 0xf4e   : > { %2981 = vrot.lane.b32.xlu1 %v7195_v23, %s5342_s13  ;;  %3081 = vrot.lane.b32.xlu0 %v7199_v50, %s5331_s22 }
 0xf52   : > { %2887 = vrot.lane.b32.xlu1 %v7205_v4, %s5329_s20  ;;  %3161 = vrot.lane.b32.xlu0 %v7199_v50, %s5341_s11 }
 0xf56   : > { %2839 = vrot.lane.b32.xlu1 %v7205_v4, %s5328_s19  ;;  %2985 = vrot.lane.b32.xlu0 %v7199_v50, %s5342_s13 }
 0xf5a   : > { %3079 = vrot.lane.b32.xlu1 %v7205_v4, %s5331_s22  ;;  %2845 = vrot.lane.b32.xlu0 %v7229_v59, %s5328_s19 }
 0xf5e   : > { %3159 = vrot.lane.b32.xlu1 %v7205_v4, %s5341_s11  ;;  %2895 = vrot.lane.b32.xlu0 %v7235_v25, %s5329_s20 }
 0xf62   : > { %2983 = vrot.lane.b32.xlu1 %v7205_v4, %s5342_s13  ;;  %3087 = vrot.lane.b32.xlu0 %v7235_v25, %s5331_s22 }
 0xf66   : > { %2891 = vrot.lane.b32.xlu1 %v7207_v62, %s5329_s20  ;;  %3167 = vrot.lane.b32.xlu0 %v7235_v25, %s5341_s11 }
 0xf6a   : > { %3083 = vrot.lane.b32.xlu1 %v7207_v62, %s5331_s22  ;;  %2991 = vrot.lane.b32.xlu0 %v7235_v25, %s5342_s13 }
 0xf6e   : > { %3163 = vrot.lane.b32.xlu1 %v7207_v62, %s5341_s11 }
 0xf72   : > { %2987 = vrot.lane.b32.xlu1 %v7207_v62, %s5342_s13 }
 0xf76   : > { %2893 = vrot.lane.b32.xlu1 %v7229_v59, %s5329_s20 }
 0xf7a   : > { %3085 = vrot.lane.b32.xlu1 %v7229_v59, %s5331_s22 }
 0xf7e   : > { %3165 = vrot.lane.b32.xlu1 %v7229_v59, %s5341_s11 }
 0xf82   : > { %2989 = vrot.lane.b32.xlu1 %v7229_v59, %s5342_s13 }
 0xf86   : > { %2847 = vrot.lane.b32.xlu1 %v7235_v25, %s5328_s19 }
 0xf8c   : > { %v7267_v52 = vpop.f32.mrf.mxu0  ;;  %v4928_v37 = vpop.f32.mrf.mxu1 }
 0xf8d   : > { %8990 = vst [vmem:[#allocation18_spill] sm:$0xff] %v7267_v52  ;;  %2897 = vrot.lane.b32.xlu1 %v7267_v52, %s5329_s20 }
 0xf8e   : > { %v4929_v46 = vpop.f32.mrf.mxu1  ;;  %v7277_v27 = vpop.f32.mrf.mxu0 }
 0xf8f   : > { %v7271_v40 = vadd.f32 %v4929_v46, %v4928_v37  ;;  %8991 = vst [vmem:[#allocation54_spill] sm:$0xff] %v7277_v27 }
 0xf90   : > { %v7283_v13 = vpop.f32.mrf.mxu0  ;;  %v4931_v51 = vpop.f32.mrf.mxu1 }
 0xf91   : > { %2901 = vrot.lane.b32.xlu0 %v7271_v40, %s5329_s20  ;;  %2849 = vrot.lane.b32.xlu1 %v7267_v52, %s5328_s19  ;;  %8992 = vst [vmem:[#allocation15_spill] sm:$0xff] %v7283_v13 }
 0xf92   : > { %v7301_v19 = vpop.f32.mrf.mxu0  ;;  %v4932_v41 = vpop.f32.mrf.mxu1 }
 0xf93   : > { %8993 = vst [vmem:[#allocation56_spill] sm:$0xff] %v7301_v19  ;;  %v7313_v22 = vadd.f32 %v4932_v41, %v4931_v51 }
 0xf94   : > { %v7307_v61 = vpop.f32.mrf.mxu0  ;;  %v4966_v14 = vpop.f32.mrf.mxu1 }
 0xf95   : > { %2853 = vrot.lane.b32.xlu0 %v7271_v40, %s5328_s19  ;;  %3089 = vrot.lane.b32.xlu1 %v7267_v52, %s5331_s22  ;;  %8994 = vst [vmem:[#allocation11_spill] sm:$0xff] %v7307_v61 }
 0xf96   : > { %v7375_v48 = vpop.f32.mrf.mxu0  ;;  %v4967_v15 = vpop.f32.mrf.mxu1 }
 0xf97   : > { %9004 = vst [vmem:[#allocation23_spill] sm:$0xff] %v7375_v48  ;;  %v7387_v29 = vadd.f32 %v4967_v15, %v4966_v14 }
 0xf98   : > { %v7379_v12 = vpop.f32.mrf.mxu0  ;;  %v4969_v57 = vpop.f32.mrf.mxu1 }
 0xf99   : > { %3169 = vrot.lane.b32.xlu1 %v7267_v52, %s5341_s11  ;;  %3095 = vrot.lane.b32.xlu0 %v7283_v13, %s5331_s22  ;;  %9006 = vst [vmem:[#allocation22_spill] sm:$0xff] %v7379_v12 }
 0xf9a   : > { %v7471_v44 = vpop.f32.mrf.mxu0  ;;  %v4970_v41 = vpop.f32.mrf.mxu1 }
 0xf9b   : > { %9022 = vst [vmem:[#allocation37_spill] sm:$0xff] %v7471_v44  ;;  %v4971_v14 = vadd.f32 %v4970_v41, %v4969_v57 }
 0xf9c   : > { %v7505_v51 = vpop.f32.mrf.mxu0 }
 0xf9d   : > { %2993 = vrot.lane.b32.xlu1 %v7267_v52, %s5342_s13  ;;  %3093 = vrot.lane.b32.xlu0 %v7271_v40, %s5331_s22  ;;  %9030 = vst [vmem:[#allocation49_spill] sm:$0xff] %v7505_v51 }
 0xfa1   : > { %2899 = vrot.lane.b32.xlu1 %v7277_v27, %s5329_s20  ;;  %3173 = vrot.lane.b32.xlu0 %v7271_v40, %s5341_s11 }
 0xfa5   : > { %2851 = vrot.lane.b32.xlu1 %v7277_v27, %s5328_s19  ;;  %2997 = vrot.lane.b32.xlu0 %v7271_v40, %s5342_s13 }
 0xfa9   : > { %3091 = vrot.lane.b32.xlu1 %v7277_v27, %s5331_s22  ;;  %3097 = vrot.lane.b32.xlu0 %v7301_v19, %s5331_s22 }
 0xfad   : > { %3171 = vrot.lane.b32.xlu1 %v7277_v27, %s5341_s11  ;;  %3603 = vrot.lane.b32.xlu0 %v7307_v61, %s5343_s14 }
 0xfb0   : > { %v7315_v1 = vpop.permute.xlu1 %2885 }
 0xfb1   : > { %2995 = vrot.lane.b32.xlu1 %v7277_v27, %s5342_s13  ;;  %2907 = vrot.lane.b32.xlu0 %v7313_v22, %s5329_s20 }
 0xfb4   : > { %v7321_v28 = vpop.permute.xlu1 %2837  ;;  %v7345_v34 = vpop.permute.xlu0 %2889 }
 0xfb5   : > { %8995 = vst [vmem:[#allocation58_spill] sm:$0xff] %v7321_v28  ;;  %2903 = vrot.lane.b32.xlu1 %v7283_v13, %s5329_s20  ;;  %3411 = vrot.lane.b32.xlu0 %v7307_v61, %s5328_s19 }
 0xfb8   : > { %v7327_v5 = vpop.permute.xlu1 %3077  ;;  %v7355_v42 = vpop.permute.xlu0 %2843 }
 0xfb9   : > { %8996 = vst [vmem:[#allocation17_spill] sm:$0xff] %v7327_v5  ;;  %2855 = vrot.lane.b32.xlu1 %v7283_v13, %s5328_s19  ;;  %2859 = vrot.lane.b32.xlu0 %v7313_v22, %s5328_s19  ;;  %9000 = vst [vmem:[#allocation25_spill] sm:$0xff] %v7355_v42 }
 0xfbc   : > { %v7333_v26 = vpop.permute.xlu1 %3157  ;;  %v7367_v16 = vpop.permute.xlu0 %2841 }
 0xfbd   : > { %8997 = vst [vmem:[#allocation60_spill] sm:$0xff] %v7333_v26  ;;  %3175 = vrot.lane.b32.xlu1 %v7283_v13, %s5341_s11  ;;  %3651 = vrot.lane.b32.xlu0 %v7307_v61, %s5331_s22  ;;  %9002 = vst [vmem:[#allocation24_spill] sm:$0xff] %v7367_v16 }
 0xfc0   : > { %v7339_v30 = vpop.permute.xlu1 %2981  ;;  %v7381_v20 = vpop.permute.xlu0 %3081 }
 0xfc1   : > { %8998 = vst [vmem:[#allocation9_spill] sm:$0xff] %v7339_v30  ;;  %2999 = vrot.lane.b32.xlu1 %v7283_v13, %s5342_s13  ;;  %3179 = vrot.lane.b32.xlu0 %v7313_v22, %s5341_s11  ;;  %9007 = vst [vmem:[#allocation70_spill] sm:$0xff] %v7381_v20 }
 0xfc4   : > { %v7347_v58 = vpop.permute.xlu1 %2887  ;;  %v7395_v55 = vpop.permute.xlu0 %3161 }
 0xfc5   : > { %2905 = vrot.lane.b32.xlu1 %v7301_v19, %s5329_s20  ;;  %3555 = vrot.lane.b32.xlu0 %v7307_v61, %s5342_s13  ;;  %9008 = vst [vmem:[#allocation14_spill] sm:$0xff] %v7395_v55 }
 0xfc8   : > { %v7353_v63 = vpop.permute.xlu1 %2839  ;;  %v7405_v38 = vpop.permute.xlu0 %2985 }
 0xfc9   : > { %8999 = vst [vmem:[#allocation62_spill] sm:$0xff] %v7353_v63  ;;  %2857 = vrot.lane.b32.xlu1 %v7301_v19, %s5328_s19  ;;  %3003 = vrot.lane.b32.xlu0 %v7313_v22, %s5342_s13  ;;  %9011 = vst [vmem:[#allocation16_spill] sm:$0xff] %v7405_v38 }
 0xfcc   : > { %v7361_v43 = vpop.permute.xlu1 %3079  ;;  %v7417_v11 = vpop.permute.xlu0 %2845 }
 0xfcd   : > { %9001 = vst [vmem:[#allocation64_spill] sm:$0xff] %v7361_v43  ;;  %3177 = vrot.lane.b32.xlu1 %v7301_v19, %s5341_s11  ;;  %3507 = vrot.lane.b32.xlu0 %v7307_v61, %s5333_s26  ;;  %9013 = vst [vmem:[#allocation19_spill] sm:$0xff] %v7417_v11 }
 0xfd0   : > { %v7369_v10 = vpop.permute.xlu1 %3159  ;;  %v7427_v21 = vpop.permute.xlu0 %2895 }
 0xfd1   : > { %9003 = vst [vmem:[#allocation66_spill] sm:$0xff] %v7369_v10  ;;  %3001 = vrot.lane.b32.xlu1 %v7301_v19, %s5342_s13  ;;  %2955 = vrot.lane.b32.xlu0 %v7313_v22, %s5333_s26  ;;  %v7557_v10 = vpop.f32.mrf.mxu0 }
 0xfd2   : > { %9041 = vst [vmem:[#allocation71_spill] sm:$0xff] %v7557_v10 }
 0xfd4   : > { %v7377_v0 = vpop.permute.xlu1 %2983  ;;  %v7439_v9 = vpop.permute.xlu0 %3087 }
 0xfd5   : > { %9005 = vst [vmem:[#allocation68_spill] sm:$0xff] %v7377_v0  ;;  %2953 = vrot.lane.b32.xlu1 %v7301_v19, %s5333_s26  ;;  %3465 = vrot.lane.b32.xlu0 %v7379_v12, %s5329_s20  ;;  %9016 = vst [vmem:[#allocation27_spill] sm:$0xff] %v7439_v9 }
 0xfd8   : > { %v7389_v56 = vpop.permute.xlu1 %2891  ;;  %v7447_v31 = vpop.permute.xlu0 %3167 }
 0xfd9   : > { %3459 = vrot.lane.b32.xlu1 %v7307_v61, %s5329_s20  ;;  %3463 = vrot.lane.b32.xlu0 %v7387_v29, %s5329_s20  ;;  %9018 = vst [vmem:[#allocation33_spill] sm:$0xff] %v7447_v31 }
 0xfdc   : > { %v7397_v47 = vpop.permute.xlu1 %3083  ;;  %v7459_v17 = vpop.permute.xlu0 %2991 }
 0xfdd   : > { %9009 = vst [vmem:[#allocation72_spill] sm:$0xff] %v7397_v47  ;;  %3099 = vrot.lane.b32.xlu1 %v7313_v22, %s5331_s22  ;;  %3609 = vrot.lane.b32.xlu0 %v7379_v12, %s5343_s14  ;;  %9020 = vst [vmem:[#allocation35_spill] sm:$0xff] %v7459_v17 }
 0xfe0   : > { %v7403_v45 = vpop.permute.xlu1 %3163 }
 0xfe1   : > { %9010 = vst [vmem:[#allocation20_spill] sm:$0xff] %v7403_v45  ;;  %3731 = vrot.lane.b32.xlu1 %v7307_v61, %s5341_s11  ;;  %3607 = vrot.lane.b32.xlu0 %v7387_v29, %s5343_s14 }
 0xfe4   : > { %v7411_v32 = vpop.permute.xlu1 %2987 }
 0xfe5   : > { %9012 = vst [vmem:[#allocation12_spill] sm:$0xff] %v7411_v32  ;;  %3461 = vrot.lane.b32.xlu1 %v7375_v48, %s5329_s20  ;;  %3415 = vrot.lane.b32.xlu0 %v7387_v29, %s5328_s19 }
 0xfe8   : > { %v7419_v53 = vpop.permute.xlu1 %2893 }
 0xfe9   : > { %3605 = vrot.lane.b32.xlu1 %v7375_v48, %s5343_s14  ;;  %3657 = vrot.lane.b32.xlu0 %v7379_v12, %s5331_s22 }
 0xfec   : > { %v7425_v24 = vpop.permute.xlu1 %3085 }
 0xfed   : > { %9014 = vst [vmem:[#allocation10_spill] sm:$0xff] %v7425_v24  ;;  %3413 = vrot.lane.b32.xlu1 %v7375_v48, %s5328_s19  ;;  %3655 = vrot.lane.b32.xlu0 %v7387_v29, %s5331_s22 }
 0xff0   : > { %v7433_v33 = vpop.permute.xlu1 %3165 }
 0xff1   : > { %9015 = vst [vmem:[#allocation26_spill] sm:$0xff] %v7433_v33  ;;  %3653 = vrot.lane.b32.xlu1 %v7375_v48, %s5331_s22  ;;  %3737 = vrot.lane.b32.xlu0 %v7379_v12, %s5341_s11 }
 0xff4   : > { %v7441_v35 = vpop.permute.xlu1 %2989 }
 0xff5   : > { %9017 = vst [vmem:[#allocation32_spill] sm:$0xff] %v7441_v35  ;;  %3733 = vrot.lane.b32.xlu1 %v7375_v48, %s5341_s11  ;;  %3735 = vrot.lane.b32.xlu0 %v7387_v29, %s5341_s11 }
 0xff8   : > { %v7453_v2 = vpop.permute.xlu1 %2847 }
 0xff9   : > { %3557 = vrot.lane.b32.xlu1 %v7375_v48, %s5342_s13  ;;  %3561 = vrot.lane.b32.xlu0 %v7379_v12, %s5342_s13  ;;  %9019 = vst [vmem:[#allocation34_spill] sm:$0xff] %v7453_v2 }
 0xffd   : > { %3509 = vrot.lane.b32.xlu1 %v7375_v48, %s5333_s26  ;;  %3559 = vrot.lane.b32.xlu0 %v7387_v29, %s5342_s13 }
 0xfff   : > { %v7461_v8 = vpop.permute.xlu1 %2897 }
0x1001   : > { %3417 = vrot.lane.b32.xlu1 %v7379_v12, %s5328_s19  ;;  %3513 = vrot.lane.b32.xlu0 %v7379_v12, %s5333_s26 }
0x1003   : > { %v7467_v60 = vpop.permute.xlu0 %2901  ;;  %v7469_v54 = vpop.permute.xlu1 %2849 }
0x1004   : > { %9021 = vst [vmem:[#allocation36_spill] sm:$0xff] %v7469_v54 }
0x1005   : > { %3511 = vrot.lane.b32.xlu0 %v7387_v29, %s5333_s26  ;;  %3611 = vrot.lane.b32.xlu1 %v7471_v44, %s5343_s14 }
0x1007   : > { %v7477_v7 = vpop.permute.xlu0 %2853  ;;  %v7479_v49 = vpop.permute.xlu1 %3089 }
0x1008   : > { %9023 = vst [vmem:[#allocation38_spill] sm:$0xff] %v7477_v7  ;;  %9024 = vst [vmem:[#allocation39_spill] sm:$0xff] %v7479_v49 }
0x1009   : > { %3697 = vrot.lane.b32.xlu0 %v7379_v12, %s5327_s18  ;;  %3419 = vrot.lane.b32.xlu1 %v7471_v44, %s5328_s19 }
0x100b   : > { %v7485_v3 = vpop.permute.xlu0 %3095  ;;  %v7487_v6 = vpop.permute.xlu1 %3169 }
0x100c   : > { %9025 = vst [vmem:[#allocation40_spill] sm:$0xff] %v7485_v3  ;;  %9026 = vst [vmem:[#allocation41_spill] sm:$0xff] %v7487_v6 }
0x100d   : > { %3467 = vrot.lane.b32.xlu0 %v7471_v44, %s5329_s20  ;;  %3659 = vrot.lane.b32.xlu1 %v7471_v44, %s5331_s22 }
0x100f   : > { %v7493_v39 = vpop.permute.xlu0 %3093  ;;  %v7495_v36 = vpop.permute.xlu1 %2993 }
0x1010   : > { %9027 = vst [vmem:[#allocation42_spill] sm:$0xff] %v7493_v39  ;;  %9028 = vst [vmem:[#allocation43_spill] sm:$0xff] %v7495_v36 }
0x1011   : > { %3563 = vrot.lane.b32.xlu0 %v7471_v44, %s5342_s13  ;;  %3739 = vrot.lane.b32.xlu1 %v7471_v44, %s5341_s11 }
0x1013   : > { %v7501_v37 = vpop.permute.xlu0 %3173  ;;  %v7503_v46 = vpop.permute.xlu1 %2899 }
0x1014   : > { %9029 = vst [vmem:[#allocation48_spill] sm:$0xff] %v7501_v37 }
0x1015   : > { %3615 = vrot.lane.b32.xlu0 %v7505_v51, %s5343_s14  ;;  %3515 = vrot.lane.b32.xlu1 %v7471_v44, %s5333_s26 }
0x1017   : > { %v7511_v15 = vpop.permute.xlu0 %2997  ;;  %v7513_v18 = vpop.permute.xlu1 %2851 }
0x1018   : > { %9031 = vst [vmem:[#allocation51_spill] sm:$0xff] %v7511_v15  ;;  %9032 = vst [vmem:[#allocation53_spill] sm:$0xff] %v7513_v18 }
0x1019   : > { %3613 = vrot.lane.b32.xlu0 %v4971_v14, %s5343_s14  ;;  %3699 = vrot.lane.b32.xlu1 %v7471_v44, %s5327_s18 }
0x101b   : > { %v7518_v30 = vpop.permute.xlu0 %3097  ;;  %v7520_v0 = vpop.permute.xlu1 %3091 }
0x101c   : > { %9033 = vst [vmem:[#allocation55_spill] sm:$0xff] %v7518_v30  ;;  %9034 = vst [vmem:[#allocation57_spill] sm:$0xff] %v7520_v0 }
0x101d   : > { %3421 = vrot.lane.b32.xlu0 %v4971_v14, %s5328_s19  ;;  %3471 = vrot.lane.b32.xlu1 %v7505_v51, %s5329_s20 }
0x101f   : > { %v7525_v38 = vpop.permute.xlu0 %3603  ;;  %v7527_v57 = vpop.permute.xlu1 %3171 }
0x1020   : > { %9035 = vst [vmem:[#allocation59_spill] sm:$0xff] %v7527_v57 }
0x1021   : > { %3663 = vrot.lane.b32.xlu0 %v7505_v51, %s5331_s22  ;;  %3469 = vrot.lane.b32.xlu1 %v4971_v14, %s5329_s20 }
0x1023   : > { %v7532_v41 = vpop.permute.xlu0 %2907  ;;  %v7534_v32 = vpop.permute.xlu1 %2995 }
0x1024   : > { %9036 = vst [vmem:[#allocation61_spill] sm:$0xff] %v7534_v32 }
0x1025   : > { %3661 = vrot.lane.b32.xlu0 %v4971_v14, %s5331_s22  ;;  %3423 = vrot.lane.b32.xlu1 %v7505_v51, %s5328_s19 }
0x1027   : > { %v7539_v35 = vpop.permute.xlu0 %3411  ;;  %v7541_v17 = vpop.permute.xlu1 %2903 }
0x1029   : > { %3743 = vrot.lane.b32.xlu0 %v7505_v51, %s5341_s11  ;;  %3567 = vrot.lane.b32.xlu1 %v7505_v51, %s5342_s13 }
0x102b   : > { %v7547_v36 = vpop.permute.xlu0 %2859  ;;  %v7549_v15 = vpop.permute.xlu1 %2855 }
0x102c   : > { %9037 = vst [vmem:[#allocation63_spill] sm:$0xff] %v7547_v36  ;;  %9038 = vst [vmem:[#allocation65_spill] sm:$0xff] %v7549_v15 }
0x102d   : > { %3741 = vrot.lane.b32.xlu0 %v4971_v14, %s5341_s11  ;;  %3565 = vrot.lane.b32.xlu1 %v4971_v14, %s5342_s13 }
0x102f   : > { %v7553_v32 = vpop.permute.xlu0 %3651  ;;  %v7555_v26 = vpop.permute.xlu1 %3175 }
0x1030   : > { %9039 = vst [vmem:[#allocation67_spill] sm:$0xff] %v7553_v32  ;;  %9040 = vst [vmem:[#allocation69_spill] sm:$0xff] %v7555_v26  ;;  %v7589_v26 = vpop.f32.mrf.mxu0 }
0x1031   : > { %3519 = vrot.lane.b32.xlu0 %v7505_v51, %s5333_s26  ;;  %3473 = vrot.lane.b32.xlu1 %v7557_v10, %s5329_s20  ;;  %9049 = vst [vmem:[#allocation76_spill] sm:$0xff] %v7589_v26 }
0x1032   : > { %v7628_v20 = vpop.f32.mrf.mxu0 }
0x1033   : > { %v7563_v55 = vpop.permute.xlu0 %3179  ;;  %v7565_v45 = vpop.permute.xlu1 %2999  ;;  %9055 = vst [vmem:[#allocation82_spill] sm:$0xff] %v7628_v20 }
0x1034   : > { %9042 = vst [vmem:[#allocation44_spill] sm:$0xff] %v7563_v55  ;;  %9043 = vst [vmem:[#allocation45_spill] sm:$0xff] %v7565_v45  ;;  %v4972_v45 = vpop.f32.mrf.mxu1 }
0x1035   : > { %3517 = vrot.lane.b32.xlu0 %v4971_v14, %s5333_s26  ;;  %3617 = vrot.lane.b32.xlu1 %v7557_v10, %s5343_s14 }
0x1036   : > { %v4973_v55 = vpop.f32.mrf.mxu1 }
0x1037   : > { %v7570_v33 = vpop.permute.xlu0 %3555  ;;  %v7572_v31 = vpop.permute.xlu1 %2905 }
0x1038   : > { %9044 = vst [vmem:[#allocation46_spill] sm:$0xff] %v7570_v33  ;;  %v4975_v12 = vpop.f32.mrf.mxu1 }
0x1039   : > { %3703 = vrot.lane.b32.xlu0 %v7505_v51, %s5327_s18  ;;  %3425 = vrot.lane.b32.xlu1 %v7557_v10, %s5328_s19 }
0x103a   : > { %v4976_v44 = vpop.f32.mrf.mxu1 }
0x103b   : > { %v7578_v6 = vpop.permute.xlu0 %3003  ;;  %v7580_v57 = vpop.permute.xlu1 %2857  ;;  %v7679_v28 = vadd.f32 %v4976_v44, %v4975_v12 }
0x103c   : > { %9045 = vst [vmem:[#allocation47_spill] sm:$0xff] %v7578_v6  ;;  %9046 = vst [vmem:[#allocation73_spill] sm:$0xff] %v7580_v57  ;;  %v4974_v6 = vadd.f32 %v4973_v55, %v4972_v45 }
0x103d   : > { %3701 = vrot.lane.b32.xlu0 %v4971_v14, %s5327_s18  ;;  %3665 = vrot.lane.b32.xlu1 %v7557_v10, %s5331_s22 }
0x103f   : > { %v7585_v37 = vpop.permute.xlu0 %3507  ;;  %v7587_v33 = vpop.permute.xlu1 %3177 }
0x1040   : > { %9047 = vst [vmem:[#allocation74_spill] sm:$0xff] %v7585_v37  ;;  %9048 = vst [vmem:[#allocation75_spill] sm:$0xff] %v7587_v33 }
0x1041   : > { %3477 = vrot.lane.b32.xlu0 %v7589_v26, %s5329_s20  ;;  %3745 = vrot.lane.b32.xlu1 %v7557_v10, %s5341_s11 }
0x1043   : > { %v7595_v5 = vpop.permute.xlu0 %2955  ;;  %v7597_v14 = vpop.permute.xlu1 %3001 }
0x1044   : > { %9050 = vst [vmem:[#allocation77_spill] sm:$0xff] %v7595_v5  ;;  %9051 = vst [vmem:[#allocation78_spill] sm:$0xff] %v7597_v14 }
0x1045   : > { %3475 = vrot.lane.b32.xlu0 %v4974_v6, %s5329_s20  ;;  %3569 = vrot.lane.b32.xlu1 %v7557_v10, %s5342_s13 }
0x1047   : > { %v7602_v37 = vpop.permute.xlu0 %3465  ;;  %v7604_v33 = vpop.permute.xlu1 %2953 }
0x1048   : > { %9052 = vst [vmem:[#allocation79_spill] sm:$0xff] %v7604_v33 }
0x1049   : > { %3621 = vrot.lane.b32.xlu0 %v7589_v26, %s5343_s14  ;;  %3521 = vrot.lane.b32.xlu1 %v7557_v10, %s5333_s26 }
0x104b   : > { %v7610_v55 = vpop.permute.xlu0 %3463  ;;  %v7612_v45 = vpop.permute.xlu1 %3459 }
0x104d   : > { %3619 = vrot.lane.b32.xlu0 %v4974_v6, %s5343_s14  ;;  %3705 = vrot.lane.b32.xlu1 %v7557_v10, %s5327_s18 }
0x104f   : > { %v7617_v5 = vpop.permute.xlu0 %3609  ;;  %v7619_v14 = vpop.permute.xlu1 %3099 }
0x1050   : > { %9053 = vst [vmem:[#allocation80_spill] sm:$0xff] %v7619_v14 }
0x1051   : > { %3427 = vrot.lane.b32.xlu0 %v4974_v6, %s5328_s19  ;;  %3429 = vrot.lane.b32.xlu1 %v7589_v26, %s5328_s19 }
0x1053   : > { %v7624_v33 = vpop.permute.xlu0 %3607  ;;  %v7626_v43 = vpop.permute.xlu1 %3731 }
0x1054   : > { %9054 = vst [vmem:[#allocation81_spill] sm:$0xff] %v7626_v43 }
0x1055   : > { %3669 = vrot.lane.b32.xlu0 %v7589_v26, %s5331_s22  ;;  %3479 = vrot.lane.b32.xlu1 %v7628_v20, %s5329_s20 }
0x1057   : > { %v7634_v47 = vpop.permute.xlu0 %3415  ;;  %v7636_v24 = vpop.permute.xlu1 %3461 }
0x1059   : > { %3667 = vrot.lane.b32.xlu0 %v4974_v6, %s5331_s22  ;;  %3623 = vrot.lane.b32.xlu1 %v7628_v20, %s5343_s14 }
0x105b   : > { %v7641_v9 = vpop.permute.xlu0 %3657  ;;  %v7643_v43 = vpop.permute.xlu1 %3605 }
0x105c   : > { %9056 = vst [vmem:[#allocation83_spill] sm:$0xff] %v7641_v9 }
0x105d   : > { %3749 = vrot.lane.b32.xlu0 %v7589_v26, %s5341_s11  ;;  %3431 = vrot.lane.b32.xlu1 %v7628_v20, %s5328_s19 }
0x105f   : > { %v7649_v49 = vpop.permute.xlu0 %3655  ;;  %v7651_v0 = vpop.permute.xlu1 %3413 }
0x1060   : > { %9057 = vst [vmem:[#allocation84_spill] sm:$0xff] %v7649_v49 }
0x1061   : > { %3747 = vrot.lane.b32.xlu0 %v4974_v6, %s5341_s11  ;;  %3671 = vrot.lane.b32.xlu1 %v7628_v20, %s5331_s22 }
0x1063   : > { %v7656_v39 = vpop.permute.xlu0 %3737  ;;  %v7658_v3 = vpop.permute.xlu1 %3653 }
0x1064   : > { %9058 = vst [vmem:[#allocation85_spill] sm:$0xff] %v7656_v39  ;;  %9059 = vst [vmem:[#allocation86_spill] sm:$0xff] %v7658_v3  ;;  %v3380_v3 = vld [vmem:[%s8672_s6 + $0x188] sm:$0xff] }
0x1065   : > { %3573 = vrot.lane.b32.xlu0 %v7589_v26, %s5342_s13  ;;  %3751 = vrot.lane.b32.xlu1 %v7628_v20, %s5341_s11 }
0x1066   : > { %3847 = vmatprep.mubr.f32.mxu1 %v3380_v3 }
0x1067   : > { %v7664_v30 = vpop.permute.xlu0 %3735  ;;  %v7666_v14 = vpop.permute.xlu1 %3733 }
0x1068   : > { %9060 = vst [vmem:[#allocation87_spill] sm:$0xff] %v7664_v30  ;;  %9061 = vst [vmem:[#allocation88_spill] sm:$0xff] %v7666_v14 }
0x1069   : > { %3571 = vrot.lane.b32.xlu0 %v4974_v6, %s5342_s13  ;;  %3527 = vrot.lane.b32.xlu1 %v7628_v20, %s5333_s26 }
0x106b   : > { %v7671_v39 = vpop.permute.xlu0 %3561  ;;  %v7673_v51 = vpop.permute.xlu1 %3557 }
0x106c   : > { %9062 = vst [vmem:[#allocation89_spill] sm:$0xff] %v7671_v39  ;;  %9063 = vst [vmem:[#allocation90_spill] sm:$0xff] %v7673_v51 }
0x106d   : > { %3525 = vrot.lane.b32.xlu0 %v7589_v26, %s5333_s26  ;;  %3711 = vrot.lane.b32.xlu1 %v7628_v20, %s5327_s18 }
0x106f   : > { %v7681_v30 = vpop.permute.xlu0 %3559  ;;  %v7683_v14 = vpop.permute.xlu1 %3509 }
0x1070   : > { %9064 = vst [vmem:[#allocation91_spill] sm:$0xff] %v7681_v30  ;;  %9065 = vst [vmem:[#allocation92_spill] sm:$0xff] %v7683_v14 }
0x1071   : > { %3523 = vrot.lane.b32.xlu0 %v4974_v6, %s5333_s26  ;;  %3481 = vrot.lane.b32.xlu1 %v7679_v28, %s5329_s20 }
0x1073   : > { %v7688_v39 = vpop.permute.xlu0 %3513  ;;  %v7690_v51 = vpop.permute.xlu1 %3417 }
0x1074   : > { %9066 = vst [vmem:[#allocation93_spill] sm:$0xff] %v7688_v39 }
0x1075   : > { %3709 = vrot.lane.b32.xlu0 %v7589_v26, %s5327_s18  ;;  %3693 = vrot.lane.b32.xlu1 %v7375_v48, %s5327_s18 }
0x1077   : > { %v7696_v12 = vpop.permute.xlu0 %3511  ;;  %v7698_v44 = vpop.permute.xlu1 %3611 }
0x1078   : > { %9067 = vst [vmem:[#allocation94_spill] sm:$0xff] %v7696_v12 }
0x1079   : > { %3707 = vrot.lane.b32.xlu0 %v4974_v6, %s5327_s18  ;;  %2951 = vrot.lane.b32.xlu1 %v7283_v13, %s5333_s26 }
0x107b   : > { %v7703_v14 = vpop.permute.xlu0 %3697  ;;  %v7705_v39 = vpop.permute.xlu1 %3419 }
0x107c   : > { %9068 = vst [vmem:[#allocation95_spill] sm:$0xff] %v7703_v14 }
0x107d   : > { %3575 = vrot.lane.b32.xlu0 %v7628_v20, %s5342_s13  ;;  %2947 = vrot.lane.b32.xlu1 %v7277_v27, %s5333_s26 }
0x107f   : > { %v7711_v30 = vpop.permute.xlu0 %3467  ;;  %v7713_v12 = vpop.permute.xlu1 %3659 }
0x1080   : > { %9069 = vst [vmem:[#allocation96_spill] sm:$0xff] %v7713_v12 }
0x1081   : > { %3695 = vrot.lane.b32.xlu0 %v7387_v29, %s5327_s18  ;;  %2945 = vrot.lane.b32.xlu1 %v7267_v52, %s5333_s26 }
0x1083   : > { %v7719_v6 = vpop.permute.xlu0 %3563  ;;  %v7721_v14 = vpop.permute.xlu1 %3739 }
0x1084   : > { %9070 = vst [vmem:[#allocation97_spill] sm:$0xff] %v7719_v6  ;;  %9071 = vst [vmem:[#allocation98_spill] sm:$0xff] %v7721_v14 }
0x1085   : > { %3691 = vrot.lane.b32.xlu0 %v7307_v61, %s5327_s18  ;;  %2943 = vrot.lane.b32.xlu1 %v7235_v25, %s5333_s26 }
0x1087   : > { %v7727_v48 = vpop.permute.xlu0 %3615  ;;  %v7729_v63 = vpop.permute.xlu1 %3515 }
0x1088   : > { %9072 = vst [vmem:[#allocation99_spill] sm:$0xff] %v7729_v63 }
0x1089   : > { %2949 = vrot.lane.b32.xlu0 %v7271_v40, %s5333_s26  ;;  %2935 = vrot.lane.b32.xlu1 %v7205_v4, %s5333_s26 }
0x108b   : > { %v7735_v29 = vpop.permute.xlu0 %3613  ;;  %v7737_v6 = vpop.permute.xlu1 %3699 }
0x108c   : > { %9073 = vst [vmem:[#allocation100_spill] sm:$0xff] %v7737_v6 }
0x108d   : > { %2941 = vrot.lane.b32.xlu0 %v7229_v59, %s5333_s26  ;;  %2933 = vrot.lane.b32.xlu1 %v7195_v23, %s5333_s26 }
0x108f   : > { %v7743_v14 = vpop.permute.xlu0 %3421  ;;  %v7745_v61 = vpop.permute.xlu1 %3471 }
0x1091   : > { %3625 = vrot.lane.b32.xlu0 %v7679_v28, %s5343_s14  ;;  %3139 = vrot.lane.b32.xlu1 %v7313_v22, %s5327_s18 }
0x1093   : > { %v7751_v63 = vpop.permute.xlu0 %3663  ;;  %v7753_v16 = vpop.permute.xlu1 %3469 }
0x1095   : > { %3433 = vrot.lane.b32.xlu0 %v7679_v28, %s5328_s19  ;;  %3049 = vrot.lane.b32.xlu1 %v7301_v19, %s5343_s14  ;;  %s396_s19 = scalar_lea.vmem %s8675_s9, %s4755_s21 }
0x1097   : > { %v7759_v6 = vpop.permute.xlu0 %3661  ;;  %v7761_v10 = vpop.permute.xlu1 %3423 }
0x1099   : > { %2939 = vrot.lane.b32.xlu0 %v7207_v62, %s5333_s26  ;;  %3577 = vrot.lane.b32.xlu1 %v7679_v28, %s5342_s13 }
0x109b   : > { %v7767_v26 = vpop.permute.xlu0 %3743  ;;  %v7769_v42 = vpop.permute.xlu1 %3567 }
0x109c   : > { %9074 = vst [vmem:[#allocation101_spill] sm:$0xff] %v7767_v26  ;;  %9075 = vst [vmem:[#allocation102_spill] sm:$0xff] %v7769_v42 }
0x109d   : > { %3673 = vrot.lane.b32.xlu0 %v7679_v28, %s5331_s22  ;;  %3131 = vrot.lane.b32.xlu1 %v7277_v27, %s5327_s18 }
0x109f   : > { %v7775_v20 = vpop.permute.xlu0 %3741  ;;  %v7777_v11 = vpop.permute.xlu1 %3565 }
0x10a0   : > { %9076 = vst [vmem:[#allocation103_spill] sm:$0xff] %v7775_v20  ;;  %9077 = vst [vmem:[#allocation104_spill] sm:$0xff] %v7777_v11 }
0x10a1   : > { %2937 = vrot.lane.b32.xlu0 %v7199_v50, %s5333_s26  ;;  %3047 = vrot.lane.b32.xlu1 %v7283_v13, %s5343_s14 }
0x10a3   : > { %v7783_v2 = vpop.permute.xlu0 %3519  ;;  %v7785_v26 = vpop.permute.xlu1 %3473 }
0x10a4   : > { %9078 = vst [vmem:[#allocation105_spill] sm:$0xff] %v7783_v2 }
0x10a5   : > { %3137 = vrot.lane.b32.xlu0 %v7301_v19, %s5327_s18  ;;  %3043 = vrot.lane.b32.xlu1 %v7277_v27, %s5343_s14 }
0x10a7   : > { %v7791_v42 = vpop.permute.xlu0 %3517  ;;  %v7793_v20 = vpop.permute.xlu1 %3617 }
0x10a8   : > { %9079 = vst [vmem:[#allocation106_spill] sm:$0xff] %v7791_v42 }
0x10a9   : > { %3135 = vrot.lane.b32.xlu0 %v7283_v13, %s5327_s18  ;;  %3125 = vrot.lane.b32.xlu1 %v7229_v59, %s5327_s18 }
0x10ab   : > { %v3704_v11 = vpop.permute.xlu0 %3703  ;;  %v7799_v2 = vpop.permute.xlu1 %3425 }
0x10ad   : > { %3753 = vrot.lane.b32.xlu0 %v7679_v28, %s5341_s11  ;;  %3041 = vrot.lane.b32.xlu1 %v7267_v52, %s5343_s14 }
0x10af   : > { %v7805_v27 = vpop.permute.xlu0 %3701  ;;  %v7807_v42 = vpop.permute.xlu1 %3665 }
0x10b0   : > { %9080 = vst [vmem:[#allocation107_spill] sm:$0xff] %v7805_v27 }
0x10b1   : > { %3051 = vrot.lane.b32.xlu0 %v7313_v22, %s5343_s14  ;;  %3037 = vrot.lane.b32.xlu1 %v7229_v59, %s5343_s14 }
0x10b3   : > { %v3478_v13 = vpop.permute.xlu0 %3477  ;;  %v7813_v19 = vpop.permute.xlu1 %3745 }
0x10b4   : > { %9081 = vst [vmem:[#allocation108_spill] sm:$0xff] %v7813_v19 }
0x10b5   : > { %3133 = vrot.lane.b32.xlu0 %v7271_v40, %s5327_s18  ;;  %3119 = vrot.lane.b32.xlu1 %v7205_v4, %s5327_s18 }
0x10b7   : > { %v3476_v54 = vpop.permute.xlu0 %3475  ;;  %v7819_v32 = vpop.permute.xlu1 %3569 }
0x10b9   : > { %3129 = vrot.lane.b32.xlu0 %v7267_v52, %s5327_s18  ;;  %3035 = vrot.lane.b32.xlu1 %v7207_v62, %s5343_s14 }
0x10bb   : > { %v7825_v22 = vpop.permute.xlu0 %3621  ;;  %v7827_v27 = vpop.permute.xlu1 %3521 }
0x10bd   : > { %3529 = vrot.lane.b32.xlu0 %v7679_v28, %s5333_s26  ;;  %3031 = vrot.lane.b32.xlu1 %v7205_v4, %s5343_s14 }
0x10bf   : > { %v3620_v59 = vpop.permute.xlu0 %3619  ;;  %v7833_v18 = vpop.permute.xlu1 %3705 }
0x10c0   : > { %v7837_v7 = vsel %vm2032_vm15, %v7793_v20, %v3620_v59  ;;  %v7841_v52 = vsel %vm2122_vm0, %v3704_v11, %v7833_v18 }
0x10c1   : > { %9082 = vst [vmem:[#allocation109_spill] sm:$0xff] %v7841_v52  ;;  %3045 = vrot.lane.b32.xlu0 %v7271_v40, %s5343_s14  ;;  %3029 = vrot.lane.b32.xlu1 %v7195_v23, %s5343_s14 }
0x10c3   : > { %v3428_v4 = vpop.permute.xlu0 %3427  ;;  %v7850_v49 = vpop.permute.xlu1 %3429 }
0x10c4   : > { %v7854_v59 = vsel %vm1836_vm10, %v7799_v2, %v3428_v4 }
0x10c5   : > { %3713 = vrot.lane.b32.xlu0 %v7679_v28, %s5327_s18 }
0x10c7   : > { %v7858_v11 = vpop.permute.xlu0 %3669  ;;  %v3480_v52 = vpop.permute.xlu1 %3479 }
0x10c9   : > { %3127 = vrot.lane.b32.xlu0 %v7235_v25, %s5327_s18 }
0x10cb   : > { %v3668_v40 = vpop.permute.xlu0 %3667  ;;  %v7862_v15 = vpop.permute.xlu1 %3623 }
0x10cc   : > { %v7866_v3 = vsel %vm2081_vm11, %v7807_v42, %v3668_v40 }
0x10cd   : > { %3123 = vrot.lane.b32.xlu0 %v7207_v62, %s5327_s18 }
0x10cf   : > { %v7870_v4 = vpop.permute.xlu0 %3749  ;;  %v7872_v9 = vpop.permute.xlu1 %3431 }
0x10d0   : > { %9083 = vst [vmem:[#allocation110_spill] sm:$0xff] %v7870_v4 }
0x10d1   : > { %3039 = vrot.lane.b32.xlu0 %v7235_v25, %s5343_s14 }
0x10d3   : > { %v3748_v28 = vpop.permute.xlu0 %3747  ;;  %v7876_v57 = vpop.permute.xlu1 %3671 }
0x10d4   : > { %v7880_v36 = vsel %vm2163_vm12, %v7813_v19, %v3748_v28  ;;  %v5219_v19 = vld [vmem:[#allocation6] sm:$0xff] }
0x10d5   : > { %9084 = vst [vmem:[#allocation111_spill] sm:$0xff] %v7880_v36  ;;  %3121 = vrot.lane.b32.xlu0 %v7199_v50, %s5327_s18 }
0x10d7   : > { %v7884_v40 = vpop.permute.xlu0 %3573  ;;  %v7886_v62 = vpop.permute.xlu1 %3751 }
0x10d8   : > { %9085 = vst [vmem:[#allocation112_spill] sm:$0xff] %v7884_v40  ;;  %9086 = vst [vmem:[#allocation113_spill] sm:$0xff] %v7886_v62  ;;  %v5347_v40 = vmov 9  }
0x10d9   : > { %3117 = vrot.lane.b32.xlu0 %v7195_v23, %s5327_s18  ;;  %5186 = vset.pattern.permute.xlu1 %v5347_v40  ;;  %v5220_v23 = vld [vmem:[#allocation6 + $0x8] sm:$0xff] }
0x10da   : > { %5185 = vset.pattern.permute.xlu0 %v5347_v40  ;;  %4156 = vperm.xlu1 %5186, %v5220_v23   ;;  %v3488_v40 = vsel %vm1885_vm7, %v7785_v26, %v3476_v54  ;;  %v7914_v23 = vld [vmem:[#allocation6 + $0x10] sm:$0xff]  ;;  %v3485_v54 = vsel %vm1885_vm7, %v7602_v37, %v7711_v30 }
0x10db   : > { %v3572_v4 = vpop.permute.xlu0 %3571  ;;  %v7890_v12 = vpop.permute.xlu1 %3527  ;;  %9093 = vst [vmem:[#allocation28_spill] sm:$0xff] %v7914_v23 }
0x10dc   : > { %9087 = vst [vmem:[#allocation114_spill] sm:$0xff] %v7890_v12  ;;  %v7894_v25 = vsel %vm1983_vm13, %v7819_v32, %v3572_v4 }
0x10dd   : > { %9088 = vst [vmem:[#allocation115_spill] sm:$0xff] %v7894_v25  ;;  %3033 = vrot.lane.b32.xlu0 %v7199_v50, %s5343_s14  ;;  %v3489_v50 = vsel %vm1885_vm7, %v3478_v13, %v3480_v52  ;;  %v3486_v13 = vsel %vm1885_vm7, %v7711_v30, %v7753_v16  ;;  %v3483_v16 = vsel %vm1885_vm7, %v7612_v45, %v7636_v24 }
0x10df   : > { %v7898_v28 = vpop.permute.xlu0 %3525  ;;  %v7900_v36 = vpop.permute.xlu1 %3711 }
0x10e0   : > { %9089 = vst [vmem:[#allocation116_spill] sm:$0xff] %v7898_v28  ;;  %9090 = vst [vmem:[#allocation117_spill] sm:$0xff] %v7900_v36 }
0x10e1   : > { %4152 = vperm.xlu0 %5185, %v5219_v19  }
0x10e3   : > { %v3524_v62 = vpop.permute.xlu0 %3523  ;;  %v3482_v12 = vpop.permute.xlu1 %3481 }
0x10e4   : > { %v7904_v4 = vsel %vm1934_vm14, %v7827_v27, %v3524_v62  ;;  %v3490_v25 = vsel %vm1885_vm7, %v3480_v52, %v3482_v12  ;;  %v3487_v62 = vsel %vm1885_vm7, %v7745_v61, %v7785_v26  ;;  %v3484_v61 = vsel %vm1885_vm7, %v7636_v24, %v7610_v55  ;;  %v7941_v26 = vld [vmem:[#allocation6 + $0x18] sm:$0xff] }
0x10e5   : > { %4646 = vmatprep.subr.msk.mxu1 %vm6385_vm5, %v3490_v25  ;;  %4160 = vperm.xlu0 %5185, %v7914_v23   ;;  %9094 = vst [vmem:[#allocation29_spill] sm:$0xff] %v7941_v26  ;;  %v2812_v23 = vld [vmem:[%s8672_s6 + $0x158] sm:$0xff] }
0x10e6   : > { %4647 = vmatpush1.msk.msra.mxu1 %vm6389_vm6, %v3489_v50 }
0x10e7   : > { %v7920_v19 = vpop.permute.xlu0 %3709  ;;  %4648 = vmatprep.subr.msk.mxu1 %vm6385_vm5, %v3488_v40  ;;  %v7924_v52 = vpop.permute.xlu1 %3693 }
0x10e8   : > { %4649 = vmatpush1.msk.msra.mxu1 %vm6389_vm6, %v3487_v62 }
0x10e9   : > { %4650 = vmatprep.subr.msk.mxu1 %vm6385_vm5, %v3486_v13  ;;  %4164 = vperm.xlu0 %5185, %v7941_v26  }
0x10ea   : > { %4651 = vmatpush1.msk.msra.mxu1 %vm6389_vm6, %v3485_v54 }
0x10eb   : > { %v3708_v12 = vpop.permute.xlu0 %3707  ;;  %4652 = vmatprep.subr.msk.mxu1 %vm6385_vm5, %v3484_v61  ;;  %v7949_v30 = vpop.permute.xlu1 %2951 }
0x10ec   : > { %4653 = vmatpush1.msk.msra.mxu1 %vm6389_vm6, %v3483_v16  ;;  %v7955_v37 = vsel %vm2122_vm0, %v7833_v18, %v3708_v12  ;;  %v3633_v12 = vsel %vm2032_vm15, %v7825_v22, %v7862_v15 }
0x10ef   : > { %v7957_v55 = vpop.permute.xlu0 %3575  ;;  %v7959_v25 = vpop.permute.xlu1 %2947 }
0x10f3   : > { %v7961_v50 = vpop.permute.xlu0 %3695  ;;  %v7963_v24 = vpop.permute.xlu1 %2945 }
0x10f4   : > { %v3716_v36 = vsel %vm2122_vm0, %v7924_v52, %v7961_v50  ;;  %v2961_v50 = vsel %vm1934_vm14, %v7963_v24, %v7959_v25 }
0x10f7   : > { %v7965_v45 = vpop.permute.xlu0 %3691  ;;  %v7967_v40 = vpop.permute.xlu1 %2943 }
0x10f8   : > { %9095 = vst [vmem:[#allocation118_spill] sm:$0xff] %v7967_v40  ;;  %v2810_v40 = vld [vmem:[%s8672_s6 + $0x148] sm:$0xff] }
0x10fb   : > { %v7969_v62 = vpop.permute.xlu0 %2949  ;;  %v7971_v13 = vpop.permute.xlu1 %2935 }
0x10fc   : > { %9096 = vst [vmem:[#allocation119_spill] sm:$0xff] %v7971_v13 }
0x10ff   : > { %v7973_v54 = vpop.permute.xlu0 %2941  ;;  %v7975_v18 = vpop.permute.xlu1 %2933 }
0x1100   : > { %9097 = vst [vmem:[#allocation120_spill] sm:$0xff] %v7975_v18  ;;  %v3631_v18 = vsel %vm2032_vm15, %v7727_v48, %v7793_v20  ;;  %v3441_v48 = vsel %vm1836_vm10, %v7850_v49, %v7872_v9  ;;  %v3627_v20 = vsel %vm2032_vm15, %v7525_v38, %v7643_v43  ;;  %v2915_v49 = vsel %vm1885_vm7, %v7541_v17, %v7572_v31 }
0x1101   : > { %v2913_v17 = vsel %vm1885_vm7, %v7461_v8, %v7503_v46  ;;  %v2911_v8 = vsel %vm1885_vm7, %v7389_v56, %v7419_v53  ;;  %v2910_v56 = vsel %vm1885_vm7, %v7347_v58, %v7345_v34 }
0x1103   : > { %v3626_v61 = vpop.permute.xlu0 %3625  ;;  %v7984_v26 = vpop.permute.xlu1 %3139 }
0x1104   : > { %v3634_v16 = vsel %vm2032_vm15, %v7862_v15, %v3626_v61  ;;  %v3630_v15 = vsel %vm2032_vm15, %v7698_v44, %v7735_v29  ;;  %v3629_v61 = vsel %vm2032_vm15, %v7617_v5, %v7698_v44  ;;  %v3628_v5 = vsel %vm2032_vm15, %v7643_v43, %v7624_v33  ;;  %v3381_v33 = vld [vmem:[%s8672_s6 + $0x190] sm:$0xff]  ;;  %v9103_v44 = vld [vmem:[#allocation83_spill] sm:$0xff] }
0x1105   : > { %4686 = vmatprep.subr.msk.mxu0 %vm6415_vm8, %v3634_v16  ;;  %v3438_v43 = vsel %vm1836_vm10, %v7705_v39, %v7743_v14  ;;  %v9102_v14 = vld [vmem:[#allocation73_spill] sm:$0xff] }
0x1106   : > { %4687 = vmatpush1.msk.msra.mxu0 %vm6424_vm9, %v3633_v12  ;;  %v9109_v12 = vld [vmem:[#allocation67_spill] sm:$0xff] }
0x1107   : > { %v3434_v13 = vpop.permute.xlu0 %3433  ;;  %4688 = vmatprep.subr.msk.mxu0 %vm6415_vm8, %v7837_v7  ;;  %v8037_v38 = vpop.permute.xlu1 %3049 }
0x1108   : > { %v3442_v22 = vsel %vm1836_vm10, %v7872_v9, %v3434_v13  ;;  %4689 = vmatpush1.msk.msra.mxu0 %vm6424_vm9, %v3631_v18  ;;  %v3439_v9 = vsel %vm1836_vm10, %v7761_v10, %v7799_v2  ;;  %v2916_v10 = vsel %vm1885_vm7, %v7572_v31, %v7532_v41  ;;  %v3437_v2 = vsel %vm1836_vm10, %v7690_v51, %v7705_v39  ;;  %v9107_v13 = vld [vmem:[#allocation38_spill] sm:$0xff]  ;;  %v9108_v18 = vld [vmem:[#allocation53_spill] sm:$0xff] }
0x1109   : > { %4654 = vmatprep.subr.msk.mxu1 %vm6415_vm8, %v3442_v22  ;;  %4690 = vmatprep.subr.msk.mxu0 %vm6415_vm8, %v3630_v15  ;;  %v3436_v41 = vsel %vm1836_vm10, %v7651_v0, %v7634_v47  ;;  %v3435_v39 = vsel %vm1836_vm10, %v7539_v35, %v7651_v0  ;;  %v2914_v31 = vsel %vm1885_vm7, %v7503_v46, %v7467_v60  ;;  %v9110_v22 = vld [vmem:[#allocation36_spill] sm:$0xff] }
0x110a   : > { %4655 = vmatpush1.msk.msra.mxu1 %vm6424_vm9, %v3441_v48  ;;  %4691 = vmatpush1.msk.msra.mxu0 %vm6424_vm9, %v3629_v61  ;;  %v3681_v47 = vsel %vm2081_vm11, %v7858_v11, %v7876_v57  ;;  %v2912_v35 = vsel %vm1885_vm7, %v7419_v53, %v7427_v21  ;;  %v3679_v46 = vsel %vm2081_vm11, %v7751_v63, %v7807_v42  ;;  %v9100_v63 = vld [vmem:[#allocation96_spill] sm:$0xff]  ;;  %v9101_v21 = vld [vmem:[#allocation63_spill] sm:$0xff] }
0x110b   : > { %v8024_v7 = vpop.permute.xlu0 %2939  ;;  %4656 = vmatprep.subr.msk.mxu1 %vm6415_vm8, %v7854_v59  ;;  %4692 = vmatprep.subr.msk.mxu0 %vm6415_vm8, %v3628_v5  ;;  %v8092_v60 = vpop.permute.xlu1 %3577  ;;  %v2909_v53 = vsel %vm1885_vm7, %v7315_v1, %v7347_v58  ;;  %v3678_v42 = vsel %vm2081_vm11, %v9100_v63, %v7759_v6  ;;  %v2868_v34 = vsel %vm1836_vm10, %v9102_v14, %v9101_v21  ;;  %v9104_v58 = vld [vmem:[#allocation65_spill] sm:$0xff]  ;;  %v9105_v6 = vld [vmem:[#allocation84_spill] sm:$0xff]  ;;  %v9106_v59 = vld [vmem:[#allocation86_spill] sm:$0xff] }
0x110c   : > { %4657 = vmatpush1.msk.msra.mxu1 %vm6424_vm9, %v3439_v9  ;;  %4693 = vmatpush1.msk.msra.mxu0 %vm6424_vm9, %v3627_v20  ;;  %v3677_v1 = vsel %vm2081_vm11, %v9103_v44, %v9100_v63  ;;  %v2867_v29 = vsel %vm1836_vm10, %v9104_v58, %v9102_v14  ;;  %v3676_v11 = vsel %vm2081_vm11, %v9106_v59, %v9105_v6  ;;  %v9111_v5 = vld [vmem:[#allocation34_spill] sm:$0xff]  ;;  %v9112_v20 = vld [vmem:[#allocation19_spill] sm:$0xff] }
0x110d   : > { %4658 = vmatprep.subr.msk.mxu1 %vm6415_vm8, %v3438_v43  ;;  %4698 = vmatprep.subr.msk.mxu0 %vm6385_vm5, %v2916_v10  ;;  %v2866_v16 = vsel %vm1836_vm10, %v9108_v18, %v9107_v13  ;;  %v3675_v15 = vsel %vm2081_vm11, %v9109_v12, %v9106_v59  ;;  %v2865_v61 = vsel %vm1836_vm10, %v9110_v22, %v9108_v18  ;;  %v9114_v43 = vld [vmem:[#allocation25_spill] sm:$0xff]  ;;  %v9124_v63 = vld [vmem:[#allocation22_spill] sm:$0xff]  ;;  %v9130_v6 = vld [vmem:[#allocation39_spill] sm:$0xff] }
0x110e   : > { %4659 = vmatpush1.msk.msra.mxu1 %vm6424_vm9, %v3437_v2  ;;  %4694 = vmatmul.mubr.msk.f32.vlgmr.msra.gmra.mxu0 %vm677_vm3, %v3381_v33  ;;  %v2864_v9 = vsel %vm1836_vm10, %v9112_v20, %v9111_v5  ;;  %v9113_v33 = vld [vmem:[#allocation82_spill] sm:$0xff]  ;;  %v2863_v10 = vsel %vm1836_vm10, %v9114_v43, %v9112_v20  ;;  %v9115_v2 = vld [vmem:[#allocation76_spill] sm:$0xff]  ;;  %v9133_v12 = vld [vmem:[#allocation27_spill] sm:$0xff] }
0x110f   : > { %4699 = vmatpush1.msk.msra.mxu0 %vm6389_vm6, %v2915_v49  ;;  %v3674_v51 = vpop.permute.xlu0 %3673  ;;  %4660 = vmatprep.subr.msk.mxu1 %vm6415_vm8, %v3436_v41  ;;  %v8144_v48 = vpop.permute.xlu1 %3131  ;;  %v9116_v41 = vld [vmem:[#allocation71_spill] sm:$0xff]  ;;  %v9127_v44 = vld [vmem:[#allocation42_spill] sm:$0xff]  ;;  %v9136_v20 = vld [vmem:[#allocation108_spill] sm:$0xff] }
0x1110   : > { %4700 = vmatprep.subr.msk.mxu0 %vm6385_vm5, %v2914_v31  ;;  %4661 = vmatpush1.msk.msra.mxu1 %vm6424_vm9, %v3435_v39  ;;  %v3682_v0 = vsel %vm2081_vm11, %v7876_v57, %v3674_v51  ;;  %v9117_v39 = vld [vmem:[#allocation24_spill] sm:$0xff]  ;;  %v9118_v51 = vld [vmem:[#allocation62_spill] sm:$0xff] }
0x1111   : > { %4701 = vmatpush1.msk.msra.mxu0 %vm6389_vm6, %v2913_v17  ;;  %3799 = vmatprep.subr.mxu1 %v3682_v0  ;;  %v2862_v31 = vsel %vm1836_vm10, %v9118_v51, %v9117_v39  ;;  %v9119_v17 = vld [vmem:[#allocation58_spill] sm:$0xff] }
0x1112   : > { %4702 = vmatprep.subr.msk.mxu0 %vm6385_vm5, %v2912_v35  ;;  %3800 = vmatpush1.msra.mxu1 %v3681_v47  ;;  %v2861_v0 = vsel %vm1836_vm10, %v9119_v17, %v9118_v51  ;;  %v9120_v47 = vld [vmem:[#allocation49_spill] sm:$0xff]  ;;  %v9132_v18 = vld [vmem:[#allocation110_spill] sm:$0xff] }
0x1113   : > { %4703 = vmatpush1.msk.msra.mxu0 %vm6389_vm6, %v2911_v8  ;;  %v8101_v57 = vpop.permute.xlu0 %2937  ;;  %3801 = vmatprep.subr.mxu1 %v7866_v3  ;;  %v9121_v35 = vld [vmem:[#allocation37_spill] sm:$0xff]  ;;  %v9122_v8 = vld [vmem:[#allocation80_spill] sm:$0xff] }
0x1114   : > { %4704 = vmatprep.subr.msk.mxu0 %vm6385_vm5, %v2910_v56  ;;  %3802 = vmatpush1.msra.mxu1 %v3679_v46  ;;  %v9123_v46 = vld [vmem:[#allocation55_spill] sm:$0xff] }
0x1115   : > { %4705 = vmatpush1.msk.msra.mxu0 %vm6389_vm6, %v2909_v53  ;;  %3803 = vmatprep.subr.mxu1 %v3678_v42  ;;  %v3108_v56 = vsel %vm2081_vm11, %v9123_v46, %v9122_v8  ;;  %v8190_v53 = vpop.permute.xlu1 %3047  ;;  %v9125_v42 = vld [vmem:[#allocation40_spill] sm:$0xff]  ;;  %v9144_v8 = vld [vmem:[#allocation85_spill] sm:$0xff] }
0x1116   : > { %4706 = vmatprep.subr.msk.mxu0 %vm6415_vm8, %v2868_v34  ;;  %3804 = vmatpush1.msra.mxu1 %v3677_v1  ;;  %v3107_v21 = vsel %vm2081_vm11, %v9125_v42, %v9123_v46  ;;  %v9126_v34 = vld [vmem:[#allocation23_spill] sm:$0xff]  ;;  %v9128_v1 = vld [vmem:[#allocation57_spill] sm:$0xff]  ;;  %v9147_v42 = vld [vmem:[#allocation88_spill] sm:$0xff] }
0x1117   : > { %4707 = vmatpush1.msk.msra.mxu0 %vm6424_vm9, %v2867_v29  ;;  %v8133_v3 = vpop.permute.xlu0 %3137  ;;  %3805 = vmatprep.subr.mxu1 %v3676_v11  ;;  %v3106_v58 = vsel %vm2081_vm11, %v9128_v1, %v9127_v44  ;;  %v9129_v29 = vld [vmem:[#allocation11_spill] sm:$0xff]  ;;  %v3105_v59 = vsel %vm2081_vm11, %v9130_v6, %v9128_v1  ;;  %v9131_v11 = vld [vmem:[#allocation113_spill] sm:$0xff]  ;;  %v9151_v6 = vld [vmem:[#allocation112_spill] sm:$0xff] }
0x1118   : > { %4708 = vmatprep.subr.msk.mxu0 %vm6415_vm8, %v2866_v16  ;;  %3806 = vmatpush1.msra.mxu1 %v3675_v15  ;;  %v3761_v16 = vsel %vm2163_vm12, %v9132_v18, %v9131_v11  ;;  %v9134_v15 = vld [vmem:[#allocation10_spill] sm:$0xff]  ;;  %v9149_v44 = vld [vmem:[#allocation81_spill] sm:$0xff]  ;;  %v9153_v18 = vld [vmem:[#allocation52_spill] sm:$0xff] }
0x1119   : > { %4709 = vmatpush1.msk.msra.mxu0 %vm6424_vm9, %v2865_v61  ;;  %4662 = vmatprep.subr.msk.mxu1 %vm6385_vm5, %v9113_v33  ;;  %v3104_v22 = vsel %vm2081_vm11, %v9134_v15, %v9133_v12  ;;  %v9135_v61 = vld [vmem:[#allocation72_spill] sm:$0xff]  ;;  %v8230_v51 = vpop.permute.xlu1 %3043  ;;  %v3755_v1 = vsel %vm2163_vm12, %v9149_v44, %v9147_v42 }
0x111a   : > { %4710 = vmatprep.subr.msk.mxu0 %vm6415_vm8, %v2864_v9  ;;  %4663 = vmatpush1.msk.msra.mxu1 %vm6389_vm6, %v9115_v2  ;;  %v3103_v5 = vsel %vm2081_vm11, %v9135_v61, %v9134_v15  ;;  %v9137_v9 = vld [vmem:[#allocation101_spill] sm:$0xff]  ;;  %v9139_v2 = vld [vmem:[#allocation70_spill] sm:$0xff]  ;;  %v9156_v15 = vld [vmem:[#allocation115_spill] sm:$0xff] }
0x111b   : > { %4711 = vmatpush1.msk.msra.mxu0 %vm6424_vm9, %v2863_v10  ;;  %v8166_v49 = vpop.permute.xlu0 %3135  ;;  %4664 = vmatprep.subr.msk.mxu1 %vm6385_vm5, %v9116_v41  ;;  %v3759_v33 = vsel %vm2163_vm12, %v9137_v9, %v9136_v20  ;;  %v9138_v10 = vld [vmem:[#allocation111_spill] sm:$0xff]  ;;  %v9140_v41 = vld [vmem:[#allocation64_spill] sm:$0xff]  ;;  %v9158_v61 = vld [vmem:[#allocation97_spill] sm:$0xff] }
0x111c   : > { %4712 = vmatprep.subr.msk.mxu0 %vm6415_vm8, %v2862_v31  ;;  %4665 = vmatpush1.msk.msra.mxu1 %vm6389_vm6, %v9120_v47  ;;  %v3102_v39 = vsel %vm2081_vm11, %v9140_v41, %v9139_v2  ;;  %v9141_v31 = vld [vmem:[#allocation17_spill] sm:$0xff]  ;;  %v9143_v47 = vld [vmem:[#allocation98_spill] sm:$0xff]  ;;  %v9163_v2 = vld [vmem:[#allocation75_spill] sm:$0xff] }
0x111d   : > { %4713 = vmatpush1.msk.msra.mxu0 %vm6424_vm9, %v2861_v0  ;;  %4666 = vmatprep.subr.msk.mxu1 %vm6385_vm5, %v9121_v35  ;;  %v3101_v17 = vsel %vm2081_vm11, %v9141_v31, %v9140_v41  ;;  %v9142_v0 = vld [vmem:[#allocation103_spill] sm:$0xff]  ;;  %v3757_v46 = vsel %vm2163_vm12, %v9144_v8, %v9143_v47  ;;  %v9159_v20 = vld [vmem:[#allocation50_spill] sm:$0xff] }
0x111e   : > { %3989 = vmatprep.subr.mxu0 %v3108_v56  ;;  %4667 = vmatpush1.msk.msra.mxu1 %vm6389_vm6, %v9124_v63  ;;  %v3758_v35 = vsel %vm2163_vm12, %v9143_v47, %v9142_v0  ;;  %v9145_v56 = vld [vmem:[#allocation56_spill] sm:$0xff]  ;;  %v9146_v63 = vld [vmem:[#allocation87_spill] sm:$0xff]  ;;  %v9165_v31 = vld [vmem:[#allocation90_spill] sm:$0xff] }
0x111f   : > { %3990 = vmatpush1.msra.mxu0 %v3107_v21  ;;  %v3754_v14 = vpop.permute.xlu0 %3753  ;;  %4668 = vmatprep.subr.msk.mxu1 %vm6385_vm5, %v9126_v34  ;;  %v3756_v21 = vsel %vm2163_vm12, %v9147_v42, %v9146_v63  ;;  %v9166_v0 = vld [vmem:[#allocation69_spill] sm:$0xff]  ;;  %v9169_v63 = vld [vmem:[#allocation59_spill] sm:$0xff] }
0x1120   : > { %3991 = vmatprep.subr.mxu0 %v3106_v58  ;;  %4669 = vmatpush1.msk.msra.mxu1 %vm6389_vm6, %v9129_v29  ;;  %v3762_v13 = vsel %vm2163_vm12, %v9131_v11, %v3754_v14  ;;  %v9148_v14 = vld [vmem:[#allocation15_spill] sm:$0xff]  ;;  %v3586_v58 = vsel %vm1983_vm13, %v7957_v55, %v8092_v60  ;;  %v9150_v29 = vld [vmem:[#allocation54_spill] sm:$0xff]  ;;  %v3187_v47 = vsel %vm2163_vm12, %v9166_v0, %v9163_v2 }
0x1121   : > { %3992 = vmatpush1.msra.mxu0 %v3105_v59  ;;  %3815 = vmatprep.subr.mxu1 %v3762_v13  ;;  %v3585_v59 = vsel %vm1983_vm13, %v9151_v6, %v7957_v55  ;;  %v9152_v11 = vld [vmem:[#allocation18_spill] sm:$0xff]  ;;  %v8269_v13 = vpop.permute.xlu1 %3125 }
0x1122   : > { %3993 = vmatprep.subr.mxu0 %v3104_v22  ;;  %3816 = vmatpush2.msra.mxu1 %v3761_v16  ;;  %v9154_v60 = vld [vmem:[#allocation102_spill] sm:$0xff]  ;;  %v9155_v16 = vld [vmem:[#allocation13_spill] sm:$0xff]  ;;  %v9157_v22 = vld [vmem:[#allocation104_spill] sm:$0xff] }
0x1123   : > { %3994 = vmatpush1.msra.mxu0 %v3103_v5  ;;  %v8224_v43 = vpop.permute.xlu0 %3051  ;;  %3817 = vmatprep.subr.mxu1 %v9138_v10  ;;  %v3583_v55 = vsel %vm1983_vm13, %v9154_v60, %v7819_v32  ;;  %v3582_v5 = vsel %vm1983_vm13, %v9158_v61, %v9157_v22  ;;  %v9160_v32 = vld [vmem:[#allocation89_spill] sm:$0xff]  ;;  %v9162_v10 = vld [vmem:[#allocation44_spill] sm:$0xff] }
0x1124   : > { %3995 = vmatprep.subr.mxu0 %v3102_v39  ;;  %3818 = vmatpush2.msra.mxu1 %v3759_v33  ;;  %v3581_v9 = vsel %vm1983_vm13, %v9160_v32, %v9158_v61  ;;  %v9161_v33 = vld [vmem:[#allocation21_spill] sm:$0xff]  ;;  %v3188_v41 = vsel %vm2163_vm12, %v9163_v2, %v9162_v10  ;;  %v9164_v39 = vld [vmem:[#allocation91_spill] sm:$0xff]  ;;  %v9175_v60 = vld [vmem:[#allocation20_spill] sm:$0xff] }
0x1125   : > { %3996 = vmatpush1.msra.mxu0 %v3101_v17  ;;  %3819 = vmatprep.subr.mxu1 %v3758_v35  ;;  %v3580_v17 = vsel %vm1983_vm13, %v9165_v31, %v9164_v39  ;;  %v9167_v35 = vld [vmem:[#allocation46_spill] sm:$0xff]  ;;  %v9182_v2 = vld [vmem:[#allocation93_spill] sm:$0xff] }
0x1126   : > { %4714 = vmatprep.subr.msk.mxu0 %vm6385_vm5, %v9145_v56  ;;  %3820 = vmatpush2.msra.mxu1 %v3757_v46  ;;  %v3579_v8 = vsel %vm1983_vm13, %v9167_v35, %v9165_v31  ;;  %v9168_v56 = vld [vmem:[#allocation48_spill] sm:$0xff]  ;;  %v9177_v61 = vld [vmem:[#allocation14_spill] sm:$0xff] }
0x1127   : > { %4715 = vmatpush1.msk.msra.mxu0 %vm6389_vm6, %v9148_v14  ;;  %v8250_v34 = vpop.permute.xlu0 %3133  ;;  %3821 = vmatprep.subr.mxu1 %v3756_v21  ;;  %v3186_v42 = vsel %vm2163_vm12, %v9169_v63, %v9168_v56  ;;  %v8322_v21 = vpop.permute.xlu1 %3041  ;;  %v9170_v14 = vld [vmem:[#allocation114_spill] sm:$0xff]  ;;  %v9187_v35 = vld [vmem:[#allocation92_spill] sm:$0xff] }
0x1128   : > { %4716 = vmatprep.subr.msk.mxu0 %vm6385_vm5, %v9150_v29  ;;  %3822 = vmatpush2.msra.mxu1 %v3755_v1  ;;  %v9171_v1 = vld [vmem:[#allocation41_spill] sm:$0xff]  ;;  %v9172_v29 = vld [vmem:[#allocation116_spill] sm:$0xff]  ;;  %v9179_v32 = vld [vmem:[#allocation106_spill] sm:$0xff] }
0x1129   : > { %4717 = vmatpush1.msk.msra.mxu0 %vm6389_vm6, %v9152_v11  ;;  %4670 = vmatprep.subr.msk.mxu1 %vm6385_vm5, %v3586_v58  ;;  %v3185_v58 = vsel %vm2163_vm12, %v9171_v1, %v9169_v63  ;;  %v3537_v6 = vsel %vm1934_vm14, %v9172_v29, %v9170_v14  ;;  %v9174_v11 = vld [vmem:[#allocation26_spill] sm:$0xff] }
0x112a   : > { %4718 = vmatprep.subr.msk.mxu0 %vm6385_vm5, %v9153_v18  ;;  %4671 = vmatpush2.msk.msra.mxu1 %vm6389_vm6, %v3585_v59  ;;  %v9173_v59 = vld [vmem:[#allocation33_spill] sm:$0xff]  ;;  %v9184_v39 = vld [vmem:[#allocation78_spill] sm:$0xff] }
0x112b   : > { %4719 = vmatpush1.msk.msra.mxu0 %vm6389_vm6, %v9155_v16  ;;  %v8282_v12 = vpop.permute.xlu0 %3129  ;;  %4672 = vmatprep.subr.msk.mxu1 %vm6385_vm5, %v9156_v15  ;;  %v3184_v18 = vsel %vm2163_vm12, %v9174_v11, %v9173_v59  ;;  %v9176_v16 = vld [vmem:[#allocation105_spill] sm:$0xff]  ;;  %v9188_v56 = vld [vmem:[#allocation74_spill] sm:$0xff] }
0x112c   : > { %4720 = vmatprep.subr.msk.mxu0 %vm6385_vm5, %v9159_v20  ;;  %4673 = vmatpush2.msk.msra.mxu1 %vm6389_vm6, %v3583_v55  ;;  %v3183_v55 = vsel %vm2163_vm12, %v9175_v60, %v9174_v11  ;;  %v3535_v15 = vsel %vm1934_vm14, %v9176_v16, %v7827_v27  ;;  %v9181_v27 = vld [vmem:[#allocation60_spill] sm:$0xff]  ;;  %v3531_v63 = vsel %vm1934_vm14, %v9188_v56, %v9187_v35 }
0x112d   : > { %4721 = vmatpush1.msk.msra.mxu0 %vm6389_vm6, %v9161_v33  ;;  %4674 = vmatprep.subr.msk.mxu1 %vm6385_vm5, %v3582_v5  ;;  %v9178_v5 = vld [vmem:[#allocation66_spill] sm:$0xff]  ;;  %v9194_v60 = vld [vmem:[#allocation32_spill] sm:$0xff]  ;;  %v2959_v56 = vsel %vm1934_vm14, %v8024_v7, %v7973_v54 }
0x112e   : > { %4005 = vmatprep.subr.mxu0 %v3188_v41  ;;  %4675 = vmatpush2.msk.msra.mxu1 %vm6389_vm6, %v3581_v9  ;;  %v3182_v20 = vsel %vm2163_vm12, %v9178_v5, %v9177_v61  ;;  %v9180_v9 = vld [vmem:[#allocation99_spill] sm:$0xff]  ;;  %v3181_v10 = vsel %vm2163_vm12, %v9181_v27, %v9178_v5  ;;  %v9195_v16 = vld [vmem:[#allocation12_spill] sm:$0xff]  ;;  %v9199_v27 = vld [vmem:[#allocation109_spill] sm:$0xff] }
0x112f   : > { %4006 = vmatpush2.msra.mxu0 %v3187_v47  ;;  %v3530_v46 = vpop.permute.xlu0 %3529  ;;  %4676 = vmatprep.subr.msk.mxu1 %vm6385_vm5, %v3580_v17  ;;  %v3534_v33 = vsel %vm1934_vm14, %v9180_v9, %v9179_v32  ;;  %v9183_v41 = vld [vmem:[#allocation47_spill] sm:$0xff]  ;;  %v9185_v17 = vld [vmem:[#allocation45_spill] sm:$0xff]  ;;  %v9186_v47 = vld [vmem:[#allocation94_spill] sm:$0xff] }
0x1130   : > { %v3538_v44 = vsel %vm1934_vm14, %v9170_v14, %v3530_v46  ;;  %4007 = vmatprep.subr.mxu0 %v3186_v42  ;;  %4677 = vmatpush2.msk.msra.mxu1 %vm6389_vm6, %v3579_v8  ;;  %v3012_v31 = vsel %vm1983_vm13, %v9184_v39, %v9183_v41  ;;  %v3011_v0 = vsel %vm1983_vm13, %v9185_v17, %v9184_v39  ;;  %v8377_v46 = vpop.permute.xlu1 %3037  ;;  %v9189_v14 = vld [vmem:[#allocation51_spill] sm:$0xff]  ;;  %v9196_v61 = vld [vmem:[#allocation16_spill] sm:$0xff]  ;;  %v9198_v32 = vld [vmem:[#allocation9_spill] sm:$0xff] }
0x1131   : > { %4008 = vmatpush2.msra.mxu0 %v3185_v58  ;;  %4678 = vmatprep.subr.msk.mxu1 %vm6415_vm8, %v3538_v44  ;;  %v3532_v8 = vsel %vm1934_vm14, %v9187_v35, %v9186_v47  ;;  %v9190_v44 = vld [vmem:[#allocation61_spill] sm:$0xff]  ;;  %v9191_v58 = vld [vmem:[#allocation43_spill] sm:$0xff]  ;;  %v9197_v5 = vld [vmem:[#allocation68_spill] sm:$0xff]  ;;  %v3715_v47 = vsel %vm2122_vm0, %v7965_v45, %v7924_v52 }
0x1132   : > { %4009 = vmatprep.subr.mxu0 %v3184_v18  ;;  %4679 = vmatpush2.msk.msra.mxu1 %vm6424_vm9, %v3537_v6  ;;  %v3010_v1 = vsel %vm1983_vm13, %v9190_v44, %v9189_v14  ;;  %v3009_v29 = vsel %vm1983_vm13, %v9191_v58, %v9190_v44  ;;  %v9192_v6 = vld [vmem:[#allocation117_spill] sm:$0xff]  ;;  %v9193_v18 = vld [vmem:[#allocation35_spill] sm:$0xff]  ;;  %v3384_v52 = vld [vmem:[%s8672_s6 + $0x1a8] sm:$0xff] }
0x1133   : > { %4010 = vmatpush2.msra.mxu0 %v3183_v55  ;;  %v8347_v22 = vpop.permute.xlu0 %3045  ;;  %4680 = vmatprep.subr.msk.mxu1 %vm6415_vm8, %v7904_v4  ;;  %v3533_v4 = vsel %vm1934_vm14, %v9182_v2, %v9180_v9  ;;  %v3721_v11 = vsel %vm2122_vm0, %v7920_v19, %v9192_v6  ;;  %v3008_v55 = vsel %vm1983_vm13, %v9194_v60, %v9193_v18  ;;  %v9201_v2 = vld [vmem:[#allocation100_spill] sm:$0xff]  ;;  %v9203_v41 = vld [vmem:[#allocation79_spill] sm:$0xff]  ;;  %v9205_v45 = vld [vmem:[#allocation118_spill] sm:$0xff] }
0x1134   : > { %4011 = vmatprep.subr.mxu0 %v3182_v20  ;;  %4681 = vmatpush2.msk.msra.mxu1 %vm6424_vm9, %v3535_v15  ;;  %v3007_v15 = vsel %vm1983_vm13, %v9195_v16, %v9194_v60  ;;  %v3006_v20 = vsel %vm1983_vm13, %v9197_v5, %v9196_v61  ;;  %v3005_v9 = vsel %vm1983_vm13, %v9198_v32, %v9197_v5  ;;  %v9207_v14 = vld [vmem:[#allocation119_spill] sm:$0xff]  ;;  %v9208_v7 = vld [vmem:[#allocation120_spill] sm:$0xff]  ;;  %v3389_v18 = vld [vmem:[%s8672_s6 + $0x1d0] sm:$0xff] }
0x1135   : > { %4012 = vmatpush2.msra.mxu0 %v3181_v10  ;;  %4682 = vmatprep.subr.msk.mxu1 %vm6415_vm8, %v3534_v33  ;;  %v8426_v33 = vpop.permute.xlu1 %3119  ;;  %v9200_v10 = vld [vmem:[#allocation107_spill] sm:$0xff]  ;;  %v2963_v28 = vsel %vm1934_vm14, %v7949_v30, %v9203_v41  ;;  %v2962_v30 = vsel %vm1934_vm14, %v7959_v25, %v7969_v62  ;;  %v2960_v62 = vsel %vm1934_vm14, %v7973_v54, %v9205_v45  ;;  %v2807_v32 = vld [vmem:[%s8672_s6 + $0x130] sm:$0xff] }
0x1136   : > { %4722 = vmatprep.subr.msk.mxu0 %vm6385_vm5, %v3012_v31  ;;  %4683 = vmatpush2.msk.msra.mxu1 %vm6424_vm9, %v3533_v4  ;;  %v3718_v4 = vsel %vm2122_vm0, %v9201_v2, %v9200_v10  ;;  %v9204_v31 = vld [vmem:[#allocation95_spill] sm:$0xff]  ;;  %v3060_v25 = vsel %vm2032_vm15, %v8037_v38, %v8224_v43  ;;  %v2958_v44 = vsel %vm1934_vm14, %v9207_v14, %v8101_v57  ;;  %v3382_v57 = vld [vmem:[%s8672_s6 + $0x198] sm:$0xff] }
0x1137   : > { %4723 = vmatpush2.msk.msra.mxu0 %vm6389_vm6, %v3011_v0  ;;  %v3714_v42 = vpop.permute.xlu0 %3713  ;;  %4684 = vmatprep.subr.msk.mxu1 %vm6415_vm8, %v3532_v8  ;;  %v3717_v17 = vsel %vm2122_vm0, %v9204_v31, %v9201_v2  ;;  %v3379_v0 = vld [vmem:[%s8672_s6 + $0x180] sm:$0xff]  ;;  %v9206_v8 = vmov 0.0   ;;  %v3058_v54 = vsel %vm2032_vm15, %v8230_v51, %v8347_v22  ;;  %v2814_v2 = vld [vmem:[%s8672_s6 + $0x168] sm:$0xff] }
0x1138   : > { %4724 = vmatprep.subr.msk.mxu0 %vm6385_vm5, %v3010_v1  ;;  %4685 = vmatpush2.msk.msra.mxu1 %vm6424_vm9, %v3531_v63  ;;  %v3722_v59 = vsel %vm2122_vm0, %v9192_v6, %v3714_v42  ;;  %v3059_v63 = vsel %vm2032_vm15, %v8190_v53, %v8037_v38  ;;  %v3383_v42 = vld [vmem:[%s8672_s6 + $0x1a0] sm:$0xff]  ;;  %v2957_v38 = vsel %vm1934_vm14, %v9208_v7, %v9207_v14 }
0x1139   : > { %4725 = vmatpush2.msk.msra.mxu0 %vm6389_vm6, %v3009_v29  ;;  %3839 = vmatprep.subr.mxu1 %v3722_v59  ;;  %v3036_v24 = vpop.permute.xlu1 %3035  ;;  %v3057_v53 = vsel %vm2032_vm15, %v8322_v21, %v8230_v51  ;;  %v3387_v1 = vld [vmem:[%s8672_s6 + $0x1c0] sm:$0xff]  ;;  %v3148_v51 = vsel %vm2122_vm0, %v8133_v3, %v7984_v26  ;;  %v3386_v29 = vld [vmem:[%s8672_s6 + $0x1b8] sm:$0xff]  ;;  %v3147_v6 = vsel %vm2122_vm0, %v8166_v49, %v8133_v3  ;;  %v3385_v26 = vld [vmem:[%s8672_s6 + $0x1b0] sm:$0xff] }
0x113a   : > { %4726 = vmatprep.subr.msk.mxu0 %vm6385_vm5, %v3008_v55  ;;  %3840 = vmatpush2.msra.mxu1 %v3721_v11  ;;  %v3055_v59 = vsel %vm2032_vm15, %v3036_v24, %v8377_v46  ;;  %v3146_v3 = vsel %vm2122_vm0, %v8144_v48, %v8250_v34  ;;  %v3145_v49 = vsel %vm2122_vm0, %v8282_v12, %v8144_v48  ;;  %v2806_v48 = vld [vmem:[%s8672_s6 + $0x128] sm:$0xff]  ;;  %v2809_v5 = vld [vmem:[%s8672_s6 + $0x140] sm:$0xff] }
0x113b   : > { %4727 = vmatpush2.msk.msra.mxu0 %vm6389_vm6, %v3007_v15  ;;  %v8417_v19 = vpop.permute.xlu0 %3127  ;;  %3841 = vmatprep.subr.mxu1 %v7955_v37  ;;  %v9202_v37 = vld [vmem:[#allocation77_spill] sm:$0xff]  ;;  %v3388_v12 = vld [vmem:[%s8672_s6 + $0x1c8] sm:$0xff]  ;;  %v2813_v10 = vld [vmem:[%s8672_s6 + $0x160] sm:$0xff] }
0x113c   : > { %4728 = vmatprep.subr.msk.mxu0 %vm6385_vm5, %v3006_v20  ;;  %3842 = vmatpush2.msra.mxu1 %v9199_v27  ;;  %v2964_v39 = vsel %vm1934_vm14, %v9203_v41, %v9202_v37  ;;  %v3144_v34 = vsel %vm2122_vm0, %v8269_v13, %v8417_v19  ;;  %v2805_v19 = vld [vmem:[%s8672_s6 + $0x120] sm:$0xff]  ;;  %v2815_v27 = vld [vmem:[%s8672_s6 + $0x170] sm:$0xff] }
0x113d   : > { %4729 = vmatpush2.msk.msra.mxu0 %vm6389_vm6, %v3005_v9  ;;  %3843 = vmatprep.subr.mxu1 %v3718_v4  ;;  %v3032_v58 = vpop.permute.xlu1 %3031  ;;  %v2808_v9 = vld [vmem:[%s8672_s6 + $0x138] sm:$0xff] }
0x113e   : > { %4730 = vmatprep.subr.msk.mxu0 %vm6415_vm8, %v2964_v39  ;;  %3844 = vmatpush2.msra.mxu1 %v3717_v17  ;;  %v2816_v4 = vld [vmem:[%s8672_s6 + $0x178] sm:$0xff] }
0x113f   : > { %4731 = vmatpush2.msk.msra.mxu0 %vm6424_vm9, %v2963_v28  ;;  %v8461_v35 = vpop.permute.xlu0 %3123  ;;  %3845 = vmatprep.subr.mxu1 %v3716_v36 }
0x1140   : > { %4732 = vmatprep.subr.msk.mxu0 %vm6415_vm8, %v2962_v30  ;;  %3846 = vmatpush2.msra.mxu1 %v3715_v47  ;;  %v3143_v55 = vsel %vm2122_vm0, %v8461_v35, %v8269_v13 }
0x1141   : > { %4733 = vmatpush2.msk.msra.mxu0 %vm6424_vm9, %v2961_v50  ;;  %3848 = vmatmul.mubr.f32.vlgmr.msra.gmra.mxu1 %v3379_v0  ;;  %v3030_v60 = vpop.permute.xlu1 %3029 }
0x1142   : > { %3942 = vmatprep.mubr.f32.mxu0 %v9206_v8  ;;  %4734 = vmatprep.subr.msk.mxu0 %vm6415_vm8, %v2960_v62  ;;  %v3053_v20 = vsel %vm2032_vm15, %v3030_v60, %v3032_v58 }
0x1143   : > { %4738 = vmatprep.subr.msk.mxu1 %vm6415_vm8, %v3060_v25  ;;  %4695 = vmatmul.mubr.msk.f32.gmra.mxu0 %vm677_vm3, %v3384_v52  ;;  %v3040_v43 = vpop.permute.xlu0 %3039 }
0x1144   : > { %4735 = vmatpush2.msk.msra.mxu0 %vm6424_vm9, %v2959_v56  ;;  %4739 = vmatpush1.msk.msra.mxu1 %vm6424_vm9, %v3059_v63  ;;  %v3056_v22 = vsel %vm2032_vm15, %v8377_v46, %v3040_v43  ;;  %v3390_v46 = vld [vmem:[%s8672_s6 + $0x1d8] sm:$0xff] }
0x1145   : > { %4736 = vmatprep.subr.msk.mxu0 %vm6415_vm8, %v2958_v44  ;;  %4740 = vmatprep.subr.msk.mxu1 %vm6415_vm8, %v3058_v54 }
0x1146   : > { %3853 = vmatprep.mubr.f32.mxu1 %v3383_v42  ;;  %4737 = vmatpush2.msk.msra.mxu0 %vm6424_vm9, %v2957_v38 }
0x1147   : > { %4741 = vmatpush1.msk.msra.mxu1 %vm6424_vm9, %v3057_v53  ;;  %3948 = vmatprep.mubr.f32.mxu0 %v9206_v8  ;;  %v3122_v21 = vpop.permute.xlu0 %3121 }
0x1148   : > { %3854 = vmatmul.mubr.f32.gmra.mxu1 %v3382_v57  ;;  %4029 = vmatprep.subr.mxu0 %v3148_v51  ;;  %v3142_v15 = vsel %vm2122_vm0, %v8426_v33, %v3122_v21 }
0x1149   : > { %4742 = vmatprep.subr.msk.mxu1 %vm6415_vm8, %v3056_v22  ;;  %4696 = vmatmul.mubr.msk.f32.gmra.mxu0 %vm677_vm3, %v3387_v1 }
0x114a   : > { %4030 = vmatpush2.msra.mxu0 %v3147_v6  ;;  %4743 = vmatpush1.msk.msra.mxu1 %vm6424_vm9, %v3055_v59 }
0x114b   : > { %4031 = vmatprep.subr.mxu0 %v3146_v3  ;;  %3859 = vmatprep.mubr.f32.mxu1 %v3386_v29  ;;  %v3118_v11 = vpop.permute.xlu0 %3117 }
0x114c   : > { %4032 = vmatpush2.msra.mxu0 %v3145_v49  ;;  %3860 = vmatmul.mubr.f32.gmra.mxu1 %v3385_v26  ;;  %v3141_v16 = vsel %vm2122_vm0, %v3118_v11, %v8426_v33  ;;  %v2811_v33 = vld [vmem:[%s8672_s6 + $0x150] sm:$0xff] }
0x114d   : > { %3954 = vmatprep.mubr.f32.mxu0 %v9206_v8  ;;  %4033 = vmatprep.subr.mxu0 %v3144_v34 }
0x114e   : > { %4697 = vmatmul.mubr.msk.f32.gmra.mxu0 %vm677_vm3, %v3390_v46  ;;  %3865 = vmatprep.mubr.f32.mxu1 %v3389_v18 }
0x114f   : > { %4034 = vmatpush2.msra.mxu0 %v3143_v55  ;;  %4037 = vmatprep.mubr.f32.mxu0 %v2806_v48  ;;  %v3034_v61 = vpop.permute.xlu0 %3033 }
0x1150   : > { %4035 = vmatprep.subr.mxu0 %v3142_v15  ;;  %3866 = vmatmul.mubr.f32.gmra.mxu1 %v3388_v12  ;;  %v3054_v13 = vsel %vm2032_vm15, %v3032_v58, %v3034_v61 }
0x1151   : > { %4036 = vmatpush2.msra.mxu0 %v3141_v16  ;;  %4744 = vmatprep.subr.msk.mxu1 %vm6415_vm8, %v3054_v13 }
0x1152   : > { %4038 = vmatmul.mubr.f32.vlgmr.msra.gmra.mxu0 %v2805_v19  ;;  %4745 = vmatpush1.msk.msra.mxu1 %vm6424_vm9, %v3053_v20 }
0x1153   : > { %4043 = vmatprep.mubr.f32.mxu0 %v2809_v5  ;;  %4126 = vmatprep.mubr.f32.mxu1 %v9206_v8 }
0x1154   : > { %4746 = vmatmul.mubr.msk.f32.vlgmr.msra.gmra.mxu1 %vm677_vm3, %v2807_v32 }
0x1155   : > { %4132 = vmatprep.mubr.f32.mxu1 %v9206_v8  ;;  %v4157_v51 = vpop.permute.xlu1 %4156 }
0x1156   : > { %4044 = vmatmul.mubr.f32.gmra.mxu0 %v2808_v9 }
0x1157   : > { %4049 = vmatprep.mubr.f32.mxu0 %v2812_v23 }
0x1158   : > { %4747 = vmatmul.mubr.msk.f32.gmra.mxu1 %vm677_vm3, %v2810_v40 }
0x1159   : > { %4138 = vmatprep.mubr.f32.mxu1 %v9206_v8 }
0x115a   : > { %4050 = vmatmul.mubr.f32.gmra.mxu0 %v2811_v33 }
0x115b   : > { %4055 = vmatprep.mubr.f32.mxu0 %v2815_v27 }
0x115c   : > { %4748 = vmatmul.mubr.msk.f32.gmra.mxu1 %vm677_vm3, %v2813_v10  ;;  %v4153_v44 = vpop.permute.xlu0 %4152 }
0x115d   : > { %4144 = vmatprep.mubr.f32.mxu1 %v9206_v8 }
0x115e   : > { %4056 = vmatmul.mubr.f32.gmra.mxu0 %v2814_v2 }
0x1160   : > { %4749 = vmatmul.mubr.msk.f32.gmra.mxu1 %vm677_vm3, %v2816_v4  ;;  %v4161_v18 = vpop.permute.xlu0 %4160 }
0x1161   : > { %4395 = vmatprep.mubr.f32.mxu1 %v9206_v8 }
0x11ce   : > { %v3938_v37 = vpop.f32.mrf.mxu0 }
0x11d0   : > { %v3940_v41 = vpop.f32.mrf.mxu0 }
0x1201   : > { %v3849_v39 = vpop.f32.mrf.mxu1 }
0x1202   : > { %v3939_v25 = vadd.f32 %v3938_v37, %v3849_v39  ;;  %v4165_v39 = vpop.permute.xlu0 %4164 }
0x1203   : > { %v3944_v31 = vpop.f32.mrf.mxu0  ;;  %v3851_v17 = vpop.f32.mrf.mxu1 }
0x1204   : > { %v3941_v63 = vadd.f32 %v3940_v41, %v3851_v17 }
0x1205   : > { %v3946_v28 = vpop.f32.mrf.mxu0 }
0x1208   : > { %v3855_v36 = vpop.f32.mrf.mxu1 }
0x1209   : > { %v3950_v0 = vpop.f32.mrf.mxu0  ;;  %v3945_v14 = vadd.f32 %v3944_v31, %v3855_v36 }
0x120a   : > { %v3857_v47 = vpop.f32.mrf.mxu1 }
0x120b   : > { %v3952_v30 = vpop.f32.mrf.mxu0  ;;  %v3947_v53 = vadd.f32 %v3946_v28, %v3857_v47 }
0x120c   : > { %v3861_v35 = vpop.f32.mrf.mxu1 }
0x120d   : > { %v3951_v21 = vadd.f32 %v3950_v0, %v3861_v35 }
0x120e   : > { %v3956_v50 = vpop.f32.mrf.mxu0  ;;  %v3863_v52 = vpop.f32.mrf.mxu1 }
0x120f   : > { %v3953_v49 = vadd.f32 %v3952_v30, %v3863_v52 }
0x1210   : > { %v3958_v45 = vpop.f32.mrf.mxu0  ;;  %v3867_v62 = vpop.f32.mrf.mxu1 }
0x1211   : > { %v3957_v55 = vadd.f32 %v3956_v50, %v3867_v62 }
0x1212   : > { %v4039_v24 = vpop.f32.mrf.mxu0  ;;  %v3869_v56 = vpop.f32.mrf.mxu1 }
0x1213   : > { %v4040_v8 = vadd.f32 %v4039_v24, %v3939_v25  ;;  %v3959_v9 = vadd.f32 %v3958_v45, %v3869_v56 }
0x1214   : > { %v4041_v43 = vpop.f32.mrf.mxu0  ;;  %v4128_v42 = vpop.f32.mrf.mxu1 }
0x1215   : > { %v4042_v54 = vadd.f32 %v4041_v43, %v3941_v63  ;;  %v4129_v7 = vadd.f32 %v4128_v42, %v4040_v8 }
0x1216   : > { %v4045_v38 = vpop.f32.mrf.mxu0  ;;  %v4130_v57 = vpop.f32.mrf.mxu1 }
0x1217   : > { %v4046_v22 = vadd.f32 %v4045_v38, %v3945_v14  ;;  %v4131_v1 = vadd.f32 %v4130_v57, %v4042_v54  ;;  %v4167_v6 = vadd.f32 %v4153_v44, %v4129_v7 }
0x1218   : > { %v4047_v58 = vpop.f32.mrf.mxu0  ;;  %v4134_v29 = vpop.f32.mrf.mxu1 }
0x1219   : > { %v4048_v59 = vadd.f32 %v4047_v58, %v3947_v53  ;;  %v4168_v26 = vadd.f32 %v4153_v44, %v4131_v1  ;;  %v4135_v3 = vadd.f32 %v4134_v29, %v4046_v22  ;;  %v5348_v1 = vmov 10  }
0x121a   : > { %v4051_v46 = vpop.f32.mrf.mxu0  ;;  %v4136_v11 = vpop.f32.mrf.mxu1  ;;  %5188 = vset.pattern.permute.xlu1 %v5348_v1  ;;  %5187 = vset.pattern.permute.xlu0 %v5348_v1 }
0x121b   : > { %v4175_v34 = vadd.f32 %v4168_v26, %v4167_v6  ;;  %v4052_v48 = vadd.f32 %v4051_v46, %v3951_v21  ;;  %v4137_v12 = vadd.f32 %v4136_v11, %v4048_v59  ;;  %v4169_v60 = vadd.f32 %v4157_v51, %v4135_v3 }
0x121c   : > { %v4053_v16 = vpop.f32.mrf.mxu0  ;;  %v4140_v15 = vpop.f32.mrf.mxu1 }
0x121d   : > { %v4054_v19 = vadd.f32 %v4053_v16, %v3953_v49  ;;  %v4170_v61 = vadd.f32 %v4157_v51, %v4137_v12  ;;  %v4176_v13 = vadd.f32 %v4175_v34, %v4169_v60  ;;  %v4141_v5 = vadd.f32 %v4140_v15, %v4052_v48  ;;  %v9209_v51 = vld [vmem:[#allocation29_spill] sm:$0xff] }
0x121e   : > { %v4057_v20 = vpop.f32.mrf.mxu0  ;;  %v4142_v32 = vpop.f32.mrf.mxu1 }
0x121f   : > { %v4177_v23 = vadd.f32 %v4176_v13, %v4170_v61  ;;  %v4058_v40 = vadd.f32 %v4057_v20, %v3957_v55  ;;  %v4143_v33 = vadd.f32 %v4142_v32, %v4054_v19  ;;  %v4171_v2 = vadd.f32 %v4161_v18, %v4141_v5 }
0x1220   : > { %v4059_v27 = vpop.f32.mrf.mxu0  ;;  %v4146_v10 = vpop.f32.mrf.mxu1 }
0x1221   : > { %v4060_v4 = vadd.f32 %v4059_v27, %v3959_v9  ;;  %v4172_v37 = vadd.f32 %v4161_v18, %v4143_v33  ;;  %v4147_v41 = vadd.f32 %v4146_v10, %v4058_v40  ;;  %4178 = vadd.xlane.f32.xlu1 %v4177_v23  ;;  %v9210_v33 = vld [vmem:[#allocation28_spill] sm:$0xff]  ;;  %v5349_v27 = vmov 11   ;;  %v5223_v10 = vld [vmem:[#allocation6 + $0x8] sm:$0xff] }
0x1222   : > { %v4148_v31 = vpop.f32.mrf.mxu1 }
0x1223   : > { %v4217_v17 = vadd.f32 %v4172_v37, %v4171_v2  ;;  %v4173_v28 = vadd.f32 %v4165_v39, %v4147_v41  ;;  %v4149_v36 = vadd.f32 %v4148_v31, %v4060_v4  ;;  %v8649_v4 = vld [vmem:[%s8674_s8] sm:$0xf] }
0x1225   : > { %v4218_v0 = vadd.f32 %v4217_v17, %v4173_v28  ;;  %v4174_v47 = vadd.f32 %v4165_v39, %v4149_v36 }
0x1227   : > { %v4219_v30 = vadd.f32 %v4218_v0, %v4174_v47 }
0x1229   : > { %4220 = vadd.xlane.f32.xlu1 %v4219_v30 }
0x12aa   : > { %v4179_v35 = vpop.xlane.xlu1 %4178 }
0x12ab   : > { %v4180_v50 = vrot.slane %v4179_v35, 4 }
0x12ad   : > { %v4181_v52 = vadd.f32 %v4180_v50, %v4179_v35 }
0x12af   : > { %v4182_v45 = vrot.slane %v4181_v52, 2 }
0x12b1   : > { %v4183_v62 = vadd.f32 %v4182_v45, %v4181_v52 }
0x12b2   : > { %v4221_v21 = vpop.xlane.xlu1 %4220 }
0x12b3   : > { %v4184_v25 = vrot.slane %v4183_v62, 1  ;;  %v4222_v58 = vrot.slane %v4221_v21, 4 }
0x12b5   : > { %v4185_v24 = vadd.f32 %v4184_v25, %v4183_v62  ;;  %v4223_v29 = vadd.f32 %v4222_v58, %v4221_v21 }
0x12b7   : > { %5084 = vpush %v4185_v24 }
0x12e8   : > { %s5085_s16 = spop %5084 }
0x12e9   : > { %v4187_v56 = vstv %s5085_s16 }
0x12ea   : > { %v4188_v63 = vmul.f32 0.00024414063, %v4187_v56 }
0x12ec   : > { %v8624_v8 = vsub.f32 %v4167_v6, %v4188_v63  ;;  %v8626_v43 = vsub.f32 %v4168_v26, %v4188_v63  ;;  %v8628_v42 = vsub.f32 %v4169_v60, %v4188_v63  ;;  %v8630_v14 = vsub.f32 %v4170_v61, %v4188_v63 }
0x12ed   : > { %v4224_v6 = vrot.slane %v4223_v29, 2 }
0x12ee   : > { %v4193_v44 = vmul.f32 %v8624_v8, %v8624_v8  ;;  %v4194_v54 = vmul.f32 %v8626_v43, %v8626_v43  ;;  %v4195_v7 = vmul.f32 %v8628_v42, %v8628_v42  ;;  %v4196_v57 = vmul.f32 %v8630_v14, %v8630_v14 }
0x12ef   : > { %v4225_v49 = vadd.f32 %v4224_v6, %v4223_v29 }
0x12f0   : > { %v4197_v38 = vadd.f32 %v4194_v54, %v4193_v44 }
0x12f1   : > { %v4226_v18 = vrot.slane %v4225_v49, 1 }
0x12f2   : > { %v4198_v53 = vadd.f32 %v4197_v38, %v4195_v7 }
0x12f3   : > { %v4227_v12 = vadd.f32 %v4226_v18, %v4225_v49 }
0x12f4   : > { %v4199_v22 = vadd.f32 %v4198_v53, %v4196_v57 }
0x12f6   : > { %4200 = vadd.xlane.f32.xlu0 %v4199_v22 }
0x130c   : > { %4272 = vperm.xlu0 %5187, %v9209_v51  }
0x137f   : > { %v4201_v59 = vpop.xlane.xlu0 %4200 }
0x1380   : > { %v4202_v26 = vrot.slane %v4201_v59, 4 }
0x1382   : > { %v4203_v3 = vadd.f32 %v4202_v26, %v4201_v59 }
0x1384   : > { %v4204_v46 = vrot.slane %v4203_v3, 2 }
0x1386   : > { %v4205_v11 = vadd.f32 %v4204_v46, %v4203_v3 }
0x1387   : > { %v4273_v57 = vpop.permute.xlu0 %4272 }
0x1388   : > { %v4206_v34 = vrot.slane %v4205_v11, 1 }
0x138a   : > { %v4207_v48 = vadd.f32 %v4206_v34, %v4205_v11 }
0x138c   : > { %5086 = vpush %v4207_v48 }
0x138d   : > { %5088 = vpush %v4227_v12 }
0x13bd   : > { %s8641_s28 = spop %5086 }
0x13be   : > { %s5089_s17 = spop %5088  ;;  %v4209_v30 = vstv %s8641_s28 }
0x13bf   : > { %v4229_v60 = vstv %s5089_s17  ;;  %v4210_v35 = vmul.f32 0.00024414063, %v4209_v30 }
0x13c0   : > { %v4230_v55 = vmul.f32 0.00024414063, %v4229_v60 }
0x13c1   : > { %v4211_v52 = vadd.f32 1e-05, %v4210_v35 }
0x13c2   : > { %v4231_v16 = vsub.f32 %v4171_v2, %v4230_v55  ;;  %v4232_v15 = vsub.f32 %v4172_v37, %v4230_v55  ;;  %v4233_v19 = vsub.f32 %v4173_v28, %v4230_v55  ;;  %v4234_v61 = vsub.f32 %v4174_v47, %v4230_v55  ;;  %v5224_v2 = vld [vmem:[#allocation6] sm:$0xff] }
0x13c3   : > { %v5350_v37 = vmov 32   ;;  %5207 = vrsqrt.f32 %v4211_v52 }
0x13c4   : > { %v4235_v13 = vmul.f32 %v4231_v16, %v4231_v16  ;;  %v4236_v5 = vmul.f32 %v4232_v15, %v4232_v15  ;;  %v4237_v20 = vmul.f32 %v4233_v19, %v4233_v19  ;;  %v4238_v9 = vmul.f32 %v4234_v61, %v4234_v61  ;;  %5194 = vset.pattern.permute.xlu0 %v5350_v37 }
0x13c5   : > { %4326 = vperm.xlu0 %5194, %v8649_v4  }
0x13c6   : > { %v4239_v32 = vadd.f32 %v4236_v5, %v4235_v13 }
0x13c8   : > { %v4240_v23 = vadd.f32 %v4239_v32, %v4237_v20 }
0x13ca   : > { %v4241_v40 = vadd.f32 %v4240_v23, %v4238_v9 }
0x13cc   : > { %4242 = vadd.xlane.f32.xlu1 %v4241_v40 }
0x13d0   : > { %v5208_v44 = vpop.eup %5207 }
0x13d1   : > { %v4216_v38 = vmul.f32 %v5208_v44, %v8630_v14  ;;  %v4215_v21 = vmul.f32 %v5208_v44, %v8628_v42  ;;  %v4214_v29 = vmul.f32 %v5208_v44, %v8626_v43  ;;  %v4213_v46 = vmul.f32 %v5208_v44, %v8624_v8 }
0x13dd   : > { %4268 = vperm.xlu1 %5188, %v9210_v33  }
0x13e1   : > { %5189 = vset.pattern.permute.xlu1 %v5349_v27 }
0x13e2   : > { %4296 = vperm.xlu1 %5189, %v9209_v51  }
0x13e6   : > { %5190 = vset.pattern.permute.xlu1 %v5348_v1 }
0x13e7   : > { %4264 = vperm.xlu1 %5190, %v5223_v10  }
0x13eb   : > { %5191 = vset.pattern.permute.xlu1 %v5349_v27 }
0x13ec   : > { %4292 = vperm.xlu1 %5191, %v9210_v33  }
0x13f0   : > { %5192 = vset.pattern.permute.xlu1 %v5348_v1 }
0x13f1   : > { %4260 = vperm.xlu1 %5192, %v5224_v2  }
0x13f5   : > { %5193 = vset.pattern.permute.xlu1 %v5349_v27 }
0x13f6   : > { %4288 = vperm.xlu1 %5193, %v5223_v10  }
0x13fa   : > { %4284 = vperm.xlu1 %5193, %v5224_v2  }
0x1455   : > { %v4243_v41 = vpop.xlane.xlu1 %4242 }
0x1456   : > { %v4244_v39 = vrot.slane %v4243_v41, 4 }
0x1458   : > { %v4245_v31 = vadd.f32 %v4244_v39, %v4243_v41  ;;  %v4327_v39 = vpop.permute.xlu0 %4326 }
0x1459   : > { %v4269_v47 = vpop.permute.xlu1 %4268 }
0x145a   : > { %v4246_v17 = vrot.slane %v4245_v31, 2 }
0x145c   : > { %v4247_v28 = vadd.f32 %v4246_v17, %v4245_v31 }
0x145d   : > { %v4297_v50 = vpop.permute.xlu1 %4296 }
0x145e   : > { %v4248_v36 = vrot.slane %v4247_v28, 1 }
0x1460   : > { %v4249_v0 = vadd.f32 %v4248_v36, %v4247_v28 }
0x1462   : > { %5090 = vpush %v4249_v0  ;;  %v4265_v45 = vpop.permute.xlu1 %4264 }
0x1463   : > { %v4278_v58 = vmul.f32 %v4265_v45, %v4216_v38  ;;  %v4277_v49 = vmul.f32 %v4265_v45, %v4215_v21 }
0x1467   : > { %v4293_v56 = vpop.permute.xlu1 %4292 }
0x146c   : > { %v4261_v63 = vpop.permute.xlu1 %4260 }
0x146d   : > { %v4276_v11 = vmul.f32 %v4261_v63, %v4214_v29  ;;  %v4275_v55 = vmul.f32 %v4261_v63, %v4213_v46 }
0x1471   : > { %v4289_v54 = vpop.permute.xlu1 %4288 }
0x1472   : > { %v4302_v18 = vadd.f32 %v4289_v54, %v4278_v58 }
0x1474   : > { %v4310_v5 = vmul.f32 0.2, %v4302_v18 }
0x1475   : > { %v4285_v14 = vpop.permute.xlu1 %4284 }
0x1476   : > { %v4300_v42 = vadd.f32 %v4285_v14, %v4276_v11  ;;  %v4318_v27 = vmax.f32 %v4302_v18, %v4310_v5 }
0x1478   : > { %v4308_v8 = vmul.f32 0.2, %v4300_v42 }
0x147a   : > { %v4316_v2 = vmax.f32 %v4300_v42, %v4308_v8 }
0x1493   : > { %s5091_s27 = spop %5090 }
0x1494   : > { %v4251_v62 = vstv %s5091_s27 }
0x1495   : > { %v4252_v25 = vmul.f32 0.00024414063, %v4251_v62 }
0x1497   : > { %v4253_v24 = vadd.f32 1e-05, %v4252_v25 }
0x1499   : > { %5209 = vrsqrt.f32 %v4253_v24 }
0x14a6   : > { %v5210_v7 = vpop.eup %5209 }
0x14a7   : > { %v4257_v53 = vmul.f32 %v5210_v7, %v4233_v19  ;;  %v4258_v22 = vmul.f32 %v5210_v7, %v4234_v61  ;;  %v4256_v1 = vmul.f32 %v5210_v7, %v4232_v15  ;;  %v4255_v51 = vmul.f32 %v5210_v7, %v4231_v16 }
0x14a8   : > { %v4301_v16 = vadd.f32 %v4289_v54, %v4277_v49  ;;  %v4299_v61 = vadd.f32 %v4285_v14, %v4275_v55 }
0x14a9   : > { %v4281_v6 = vmul.f32 %v4273_v57, %v4257_v53  ;;  %v4282_v59 = vmul.f32 %v4273_v57, %v4258_v22  ;;  %v4280_v26 = vmul.f32 %v4269_v47, %v4256_v1  ;;  %v4279_v3 = vmul.f32 %v4269_v47, %v4255_v51 }
0x14aa   : > { %v4309_v9 = vmul.f32 0.2, %v4301_v16  ;;  %v4307_v40 = vmul.f32 0.2, %v4299_v61 }
0x14ab   : > { %v4305_v34 = vadd.f32 %v4297_v50, %v4281_v6  ;;  %v4306_v48 = vadd.f32 %v4297_v50, %v4282_v59  ;;  %v4304_v12 = vadd.f32 %v4293_v56, %v4280_v26  ;;  %v4303_v60 = vadd.f32 %v4293_v56, %v4279_v3 }
0x14ac   : > { %v4317_v10 = vmax.f32 %v4301_v16, %v4309_v9  ;;  %v4315_v37 = vmax.f32 %v4299_v61, %v4307_v40 }
0x14ad   : > { %v4313_v15 = vmul.f32 0.2, %v4305_v34  ;;  %v4314_v19 = vmul.f32 0.2, %v4306_v48  ;;  %v4312_v43 = vmul.f32 0.2, %v4304_v12 }
0x14ae   : > { %v4311_v13 = vmul.f32 0.2, %v4303_v60 }
0x14af   : > { %v4321_v20 = vmax.f32 %v4305_v34, %v4313_v15  ;;  %v4322_v32 = vmax.f32 %v4306_v48, %v4314_v19  ;;  %v4320_v23 = vmax.f32 %v4304_v12, %v4312_v43 }
0x14b0   : > { %v4319_v33 = vmax.f32 %v4303_v60, %v4311_v13 }
0x14b1   : > { %4355 = vmatprep.subr.mxu1 %v4322_v32 }
0x14b2   : > { %4356 = vmatpush1.msra.mxu1 %v4321_v20 }
0x14b3   : > { %4357 = vmatprep.subr.mxu1 %v4320_v23 }
0x14b4   : > { %4358 = vmatpush1.msra.mxu1 %v4319_v33 }
0x14b5   : > { %4359 = vmatprep.subr.mxu1 %v4318_v27 }
0x14b6   : > { %4360 = vmatpush1.msra.mxu1 %v4317_v10 }
0x14b7   : > { %4361 = vmatprep.subr.mxu1 %v4316_v2 }
0x14b8   : > { %4362 = vmatpush1.msra.mxu1 %v4315_v37 }
0x14b9   : > { %4750 = vmatmul.mubr.msk.f32.vlgmr.msra.gmra.mxu1 %vm677_vm3, %v8649_v4 }
0x1579   : > { %v4397_v41 = vpop.f32.mrf.mxu1 }
0x157a   : > { %v4398_v17 = vadd.f32 %v4397_v41, %v4327_v39 }
0x157b   : > { %v4399_v31 = vpop.f32.mrf.mxu1 }
0x157c   : > { %v4400_v28 = vadd.f32 %v4399_v31, %v4327_v39 }
0x157e   : > { %v4404_v36 = vcombine.low %v4398_v17, %v4400_v28 }
0x1580   : > { %4406 = vst [vmem:[%s396_s19] sm:$0xff] %v4404_v36 }
0x1581 PF: > { %s21_s30 = sadd.s32 1, %s5317_s30  }
0x1582   : > { %p18_p2 = scmp.ge.s32.totalorder %s21_s30, 4  }
0x1584   :  { %20 = sbr.rel (!%p18_p2) target bundleno = 2 (0x2), region = 102 }
0x1589   :  { %4428 = vsyncpa [#allocation3], 1 }
0x158a   :  { %4430 = vsyncpa [#allocation3 + $0x1], 1 }
0x158b   :  { %4431 = vsyncpa [#allocation5], 1 }

</bundles_post_ra>
